<compile_context>
chip_gen: v5e
topology: v5e:2x2
jax: 0.10.0
libtpu: 0.0.40
codegen_flags: <defaults>
</compile_context>

<pallas_src>
import jax
import jax.numpy as jnp
import numpy as np
from jax.experimental import pallas as pl
from jax.experimental.pallas import tpu as pltpu

# ----------------------------- problem sizes -------------------------------
B = 2            # batch
T = 8            # T_enc == T_dec
D = 32           # model dim
H = 4            # attention heads
DK = D // H      # per-head dim
DFF = 64         # feed-forward hidden dim
EPS = 1e-5       # LayerNorm epsilon
NEG = -1e9       # masked-logit additive bias
SCALE = float(1.0 / np.sqrt(DK))
HI = jax.lax.Precision.HIGHEST

LANES = 128
assert 4 * D == LANES and 2 * DFF == LANES

# ------------- packed parameter buffer layout: (N_ROWS, 128) f32 ------------
ROW_LN = 0                      # 1 row : [ln1_g | ln1_b | ln2_g | ln2_b]
ROW_WA = 8                      # D rows: [Wq_s*c | Wk_s | Wv_s | Wk_m]
ROW_WB = ROW_WA + D             # D rows: [Wv_m | Wo_s | unused 64 lanes]
ROW_WMIX = ROW_WB + D           # D rows: [Wq_m*c | Wk_m | Wv_m | Wo_m]
ROW_W1 = ROW_WMIX + D           # D rows: [W1_enc | W1_dec]
ROW_W2 = ROW_W1 + D             # 2*DFF rows: [[W2_enc],[W2_dec]] in lanes 0:D
ROW_BIAS = ROW_W2 + 2 * DFF     # 8 rows of biases (see pack_params)
N_ROWS = ROW_BIAS + 8           # = 272, multiple of 8 sublanes


# ------------------------------- helpers ------------------------------------
def _ln(x, g, b):
    mu = jnp.mean(x, axis=-1, keepdims=True)
    var = jnp.mean(jnp.square(x - mu), axis=-1, keepdims=True)
    return (x - mu) * jax.lax.rsqrt(var + EPS) * g + b


def _dot(a, b):
    return jnp.dot(a, b, precision=HI, preferred_element_type=jnp.float32)


def _attend(q2, k2, v2, bias):
    """q2 (T,D), k2/v2 (Tk,D), bias (T,Tk) additive {0, NEG}.  Returns (T,D).

    The 1/sqrt(dk) score scale is already folded into q2 (via the packed Wq).
    """
    tk = k2.shape[0]
    q = q2.reshape(T, H, DK)
    k = k2.reshape(tk, H, DK)
    v = v2.reshape(tk, H, DK)
    s = jnp.einsum('qhd,khd->hqk', q, k, precision=HI,
                   preferred_element_type=jnp.float32)          # (H, T, Tk)
    s = s + bias[None, :, :]
    s = s - jnp.max(s, axis=-1, keepdims=True)
    p = jnp.exp(s)
    p = p * pl.reciprocal(jnp.sum(p, axis=-1, keepdims=True), approx=True)
    ctx = jnp.einsum('hqk,khd->qhd', p, v, precision=HI,
                     preferred_element_type=jnp.float32)
    return ctx.reshape(T, D)


# ------------------------------- kernel -------------------------------------
def decoder_layer_kernel(x_ref, bself_ref, bmix_ref, p_ref, out_ref):
    x = x_ref[...]              # (B, 2T, D) = [memory ; tgt] per batch
    bias_self = bself_ref[...]  # (B, T, T)   additive {0, NEG}
    bias_mix = bmix_ref[...]    # (B, T, 2T)  additive {0, NEG}

    # ---- unpack the packed parameter buffer (all static slices) ------------
    ln = p_ref[ROW_LN:ROW_LN + 1, :]
    ln1_g, ln1_b = ln[:, 0:D], ln[:, D:2 * D]
    ln2_g, ln2_b = ln[:, 2 * D:3 * D], ln[:, 3 * D:4 * D]
    w_a = p_ref[ROW_WA:ROW_WA + D, :]              # [Wq_s*c | Wk_s | Wv_s | Wk_m]
    w_b = p_ref[ROW_WB:ROW_WB + D, 0:2 * D]        # [Wv_m | Wo_s]
    w_mix = p_ref[ROW_WMIX:ROW_WMIX + D, :]        # [Wq_m*c | Wk_m | Wv_m | Wo_m]
    w1 = p_ref[ROW_W1:ROW_W1 + D, :]               # [W1_enc | W1_dec]
    w2 = p_ref[ROW_W2:ROW_W2 + 2 * DFF, 0:D]       # stacked [[W2_enc],[W2_dec]]
    bias_rows = p_ref[ROW_BIAS:ROW_BIAS + 8, :]    # one (8,128) load, sliced below
    b_a = bias_rows[0:1, :]                        # [bq_s*c | bk_s | bv_s | bk_m]
    b_b = bias_rows[1:2, 0:2 * D]                  # [bv_m | bo_s]
    b_mix = bias_rows[2:3, :]                      # [bq_m*c | bk_m | bv_m | bo_m]
    b_1 = bias_rows[3:4, :]                        # [b1_enc | b1_dec]
    b_2 = bias_rows[4:5, 0:2 * D]                  # [b2_enc | b2_dec]

    # ---- block 1: LN1 + fused projections over folded (B*2T, D) rows -------
    xn = _ln(x, ln1_g, ln1_b)                      # (B, 2T, D)
    xn_flat = xn.reshape(B * 2 * T, D)
    # enc rows consume lanes [Wq_s|Wk_s|Wv_s]; dec rows consume lane block Wk_m.
    pa = _dot(xn_flat, w_a) + b_a                  # (B*2T, 128)
    # independent second matmul: decoder-side mixed V (issued pre-softmax too)
    pvm = _dot(xn_flat, w_b[:, 0:D]) + b_b[:, 0:D]  # (B*2T, D)
    pa = pa.reshape(B, 2 * T, LANES)
    pvm = pvm.reshape(B, 2 * T, D)

    # self-attention on the encoder half (statically unrolled over B=2)
    ctx_s = []
    for b in range(B):
        enc_p = pa[b, :T, :]
        ctx_s.append(_attend(enc_p[:, 0:D], enc_p[:, D:2 * D],
                             enc_p[:, 2 * D:3 * D], bias_self[b]))
    ctx_s = jnp.concatenate(ctx_s, axis=0)         # (B*T, D)

    # serialized tail of the chain: output proj + mixed Q/K_enc/V_enc proj
    enc_att = _dot(ctx_s, w_b[:, D:2 * D]) + b_b[:, D:2 * D]     # (B*T, D)
    pm = _dot(enc_att, w_mix[:, 0:3 * D]) + b_mix[:, 0:3 * D]    # (B*T, 3D)
    pm = pm.reshape(B, T, 3 * D)
    enc_att = enc_att.reshape(B, T, D)

    # mixed attention: query = enc_att, keys/values = [enc_att ; dec0]
    ctx_m = []
    for b in range(B):
        k_m = jnp.concatenate([pm[b, :, D:2 * D],
                               pa[b, T:, 3 * D:4 * D]], axis=0)   # (2T, D)
        v_m = jnp.concatenate([pm[b, :, 2 * D:3 * D],
                               pvm[b, T:, :]], axis=0)            # (2T, D)
        ctx_m.append(_attend(pm[b, :, 0:D], k_m, v_m, bias_mix[b]))
    ctx_m = jnp.concatenate(ctx_m, axis=0)                        # (B*T, D)
    dec_att = (_dot(ctx_m, w_mix[:, 3 * D:]) + b_mix[:, 3 * D:]).reshape(B, T, D)

    y = xn + jnp.concatenate([enc_att, dec_att], axis=1)          # (B, 2T, D)

    # ---- block 2: LN2 + fused dual-branch position-wise FFN ----------------
    yn = _ln(y, ln2_g, ln2_b)                                     # (B, 2T, D)
    yn_flat = yn.reshape(B * 2 * T, D)
    h = jnp.maximum(_dot(yn_flat, w1) + b_1, 0.0)                 # (B*2T, 2*DFF)
    # route each row to its branch: enc rows keep lanes [0:DFF], dec rows the rest
    row = jax.lax.broadcasted_iota(jnp.int32, (B * 2 * T, 1), 0)
    is_enc = (row % (2 * T)) < T                                  # (B*2T, 1)
    lane_is_enc = jax.lax.broadcasted_iota(jnp.int32, (1, 2 * DFF), 1) < DFF
    keep = (is_enc & lane_is_enc) | (~is_enc & ~lane_is_enc)
    h = jnp.where(keep, h, 0.0)
    f = _dot(h, w2)                                               # (B*2T, D)
    f = f + jnp.where(is_enc, b_2[:, 0:D], b_2[:, D:2 * D])
    out_ref[...] = (yn_flat + f).reshape(B, 2 * T, D)


# ------------------------------- wrapper -------------------------------------
def pack_params(p):
    """Pack all layer parameters into one lane-dense (N_ROWS, 128) buffer.

    The 1/sqrt(dk) attention scale is folded into the Q weights/biases here
    (one-time, wrapper-side) so the kernel never scales the scores.
    """
    pn = {k: np.asarray(v, np.float32) for k, v in p.items()}
    buf = np.zeros((N_ROWS, LANES), np.float32)
    buf[ROW_LN, :] = np.concatenate(
        [pn["ln1_g"], pn["ln1_b"], pn["ln2_g"], pn["ln2_b"]])
    buf[ROW_WA:ROW_WA + D, :] = np.concatenate(
        [pn["self_wq"] * SCALE, pn["self_wk"], pn["self_wv"], pn["mix_wk"]], axis=1)
    buf[ROW_WB:ROW_WB + D, 0:2 * D] = np.concatenate(
        [pn["mix_wv"], pn["self_wo"]], axis=1)
    buf[ROW_WMIX:ROW_WMIX + D, :] = np.concatenate(
        [pn["mix_wq"] * SCALE, pn["mix_wk"], pn["mix_wv"], pn["mix_wo"]], axis=1)
    buf[ROW_W1:ROW_W1 + D, :] = np.concatenate(
        [pn["enc_w1"], pn["dec_w1"]], axis=1)
    buf[ROW_W2:ROW_W2 + 2 * DFF, 0:D] = np.concatenate(
        [pn["enc_w2"], pn["dec_w2"]], axis=0)
    buf[ROW_BIAS + 0, :] = np.concatenate(
        [pn["self_bq"] * SCALE, pn["self_bk"], pn["self_bv"], pn["mix_bk"]])
    buf[ROW_BIAS + 1, 0:2 * D] = np.concatenate([pn["mix_bv"], pn["self_bo"]])
    buf[ROW_BIAS + 2, :] = np.concatenate(
        [pn["mix_bq"] * SCALE, pn["mix_bk"], pn["mix_bv"], pn["mix_bo"]])
    buf[ROW_BIAS + 3, :] = np.concatenate([pn["enc_b1"], pn["dec_b1"]])
    buf[ROW_BIAS + 4, 0:2 * D] = np.concatenate([pn["enc_b2"], pn["dec_b2"]])
    return jnp.asarray(buf)


def decoder_layer(tgt, tgt_mask, memory, memory_mask, packed_params):
    """Pallas forward of DecoderLayer. Returns (dec, tgt_mask, enc, memory_mask)."""
    x_cat = jnp.concatenate([memory, tgt], axis=1).astype(jnp.float32)  # (B, 2T, D)
    # additive mask biases precomputed wrapper-side (0 = visible, NEG = masked)
    neg_bias = (1.0 - tgt_mask.astype(jnp.float32)) * NEG               # (B, T, T)
    bias_self = neg_bias
    bias_mix = jnp.concatenate(
        [jnp.zeros((B, T, T), jnp.float32), neg_bias], axis=2)          # (B, T, 2T)

    out = pl.pallas_call(
        decoder_layer_kernel,
        out_shape=jax.ShapeDtypeStruct((B, 2 * T, D), jnp.float32),
        in_specs=[
            pl.BlockSpec(memory_space=pltpu.MemorySpace.VMEM),
            pl.BlockSpec(memory_space=pltpu.MemorySpace.VMEM),
            pl.BlockSpec(memory_space=pltpu.MemorySpace.VMEM),
            pl.BlockSpec(memory_space=pltpu.MemorySpace.VMEM),
        ],
        out_specs=pl.BlockSpec(memory_space=pltpu.MemorySpace.VMEM),
    )(x_cat, bias_self, bias_mix, packed_params)

    enc = out[:, :T, :]
    dec = out[:, T:, :]
    return dec, tgt_mask, enc, memory_mask


# ----------------------------- pure-JAX reference ----------------------------
def reference(tgt, tgt_mask, memory, memory_mask, p):
    def mm(a, b):
        return jnp.dot(a, b, precision=HI)

    def mha_ref(q_in, kv_in, mask, pre):
        q = mm(q_in, p[pre + "_wq"]) + p[pre + "_bq"]
        k = mm(kv_in, p[pre + "_wk"]) + p[pre + "_bk"]
        v = mm(kv_in, p[pre + "_wv"]) + p[pre + "_bv"]
        heads = []
        for h in range(H):
            sl = slice(h * DK, (h + 1) * DK)
            s = mm(q[:, sl], k[:, sl].T) / np.sqrt(DK)
            s = jnp.where(mask > 0, s, NEG)
            a = jax.nn.softmax(s, axis=-1)
            a = jnp.where(mask > 0, a, 0.0)
            heads.append(mm(a, v[:, sl]))
        return mm(jnp.concatenate(heads, axis=-1), p[pre + "_wo"]) + p[pre + "_bo"]

    def ffn_ref(x, pre):
        hdn = jnp.maximum(mm(x, p[pre + "_w1"]) + p[pre + "_b1"], 0.0)
        return mm(hdn, p[pre + "_w2"]) + p[pre + "_b2"]

    enc_l, dec_l = [], []
    for b in range(B):
        mask_b = tgt_mask[b].astype(jnp.float32)
        x = jnp.concatenate([memory[b], tgt[b]], axis=0)
        x = _ln(x, p["ln1_g"], p["ln1_b"])
        enc, dec = x[:T], x[T:]
        res_e, res_d = enc, dec
        enc = mha_ref(enc, enc, mask_b, "self")
        kv = jnp.concatenate([enc, dec], axis=0)
        mmask = jnp.concatenate([jnp.ones((T, T), jnp.float32), mask_b], axis=1)
        dec = mha_ref(enc, kv, mmask, "mix")
        enc, dec = res_e + enc, res_d + dec
        x = jnp.concatenate([enc, dec], axis=0)
        x = _ln(x, p["ln2_g"], p["ln2_b"])
        enc, dec = x[:T], x[T:]
        enc = enc + ffn_ref(enc, "enc")
        dec = dec + ffn_ref(dec, "dec")
        enc_l.append(enc)
        dec_l.append(dec)
    return jnp.stack(dec_l), tgt_mask, jnp.stack(enc_l), memory_mask


# --------------------------------- main ---------------------------------------
def make_params(key):
    ks = iter(jax.random.split(key, 32))

    def lin(shape, fan_in):
        return (jax.random.normal(next(ks), shape, jnp.float32)
                / np.sqrt(fan_in)).astype(jnp.float32)

    def bias(shape):
        return (0.02 * jax.random.normal(next(ks), shape, jnp.float32))

    p = {"ln1_g": jnp.ones((D,), jnp.float32), "ln1_b": jnp.zeros((D,), jnp.float32),
         "ln2_g": jnp.ones((D,), jnp.float32), "ln2_b": jnp.zeros((D,), jnp.float32)}
    for pre in ("self", "mix"):
        for n in ("wq", "wk", "wv", "wo"):
            p[f"{pre}_{n}"] = lin((D, D), D)
        for n in ("bq", "bk", "bv", "bo"):
            p[f"{pre}_{n}"] = bias((D,))
    for pre in ("enc", "dec"):
        p[f"{pre}_w1"] = lin((D, DFF), D)
        p[f"{pre}_b1"] = bias((DFF,))
        p[f"{pre}_w2"] = lin((DFF, D), DFF)
        p[f"{pre}_b2"] = bias((D,))
    return p


if __name__ == "__main__":
    key = jax.random.PRNGKey(0)
    k_tgt, k_mem, k_par = jax.random.split(key, 3)

    tgt = jax.random.normal(k_tgt, (B, T, D), jnp.float32)
    memory = jax.random.normal(k_mem, (B, T, D), jnp.float32)
    tgt_mask = jnp.broadcast_to(jnp.tril(jnp.ones((T, T), jnp.float32)), (B, T, T))
    memory_mask = jnp.ones((B, 1, T), jnp.float32)

    params = make_params(k_par)
    packed = pack_params(params)

    dec, tmask_out, enc, mmask_out = decoder_layer(tgt, tgt_mask, memory,
                                                   memory_mask, packed)
    jax.block_until_ready((dec, enc))

    dec_ref, _, enc_ref, _ = reference(tgt, tgt_mask, memory, memory_mask, params)
    # All matmuls (kernel and reference) run at Precision.HIGHEST; the remaining
    # difference vs. the exact-division reference is the EUP approximate
    # reciprocal in the kernel softmax, comfortably inside 5e-3.
    np.testing.assert_allclose(np.asarray(dec), np.asarray(dec_ref),
                               rtol=5e-3, atol=5e-3)
    np.testing.assert_allclose(np.asarray(enc), np.asarray(enc_ref),
                               rtol=5e-3, atol=5e-3)

    print("KERNEL_OK")
</pallas_src>

<mosaic_0001>
module attributes {stable_mosaic.version = 11 : i64} {
  func.func @decoder_layer_kernel(%arg0: memref<2x16x32xf32, #tpu.memory_space<vmem>>, %arg1: memref<2x8x8xf32, #tpu.memory_space<vmem>>, %arg2: memref<2x8x16xf32, #tpu.memory_space<vmem>>, %arg3: memref<272x128xf32, #tpu.memory_space<vmem>>, %arg4: memref<2x16x32xf32, #tpu.memory_space<vmem>>) attributes {dimension_semantics = [], scalar_prefetch = 0 : i64, scratch_operands = 0 : i64, tpu.core_type = #tpu.core_type<tc>} {
    %c0 = arith.constant 0 : index
    %c0_0 = arith.constant 0 : index
    %c0_1 = arith.constant 0 : index
    %0 = vector.load %arg0[%c0, %c0_0, %c0_1] : memref<2x16x32xf32, #tpu.memory_space<vmem>>, vector<2x16x32xf32>
    %c0_2 = arith.constant 0 : index
    %c0_3 = arith.constant 0 : index
    %c0_4 = arith.constant 0 : index
    %1 = vector.load %arg1[%c0_2, %c0_3, %c0_4] : memref<2x8x8xf32, #tpu.memory_space<vmem>>, vector<2x8x8xf32>
    %c0_5 = arith.constant 0 : index
    %c0_6 = arith.constant 0 : index
    %c0_7 = arith.constant 0 : index
    %2 = vector.load %arg2[%c0_5, %c0_6, %c0_7] : memref<2x8x16xf32, #tpu.memory_space<vmem>>, vector<2x8x16xf32>
    %c0_8 = arith.constant 0 : index
    %c0_9 = arith.constant 0 : index
    %3 = vector.load %arg3[%c0_8, %c0_9] : memref<272x128xf32, #tpu.memory_space<vmem>>, vector<1x128xf32>
    %4 = vector.extract_strided_slice %3 {offsets = [0, 0], sizes = [1, 32], strides = [1, 1]} : vector<1x128xf32> to vector<1x32xf32>
    %5 = vector.extract_strided_slice %3 {offsets = [0, 32], sizes = [1, 32], strides = [1, 1]} : vector<1x128xf32> to vector<1x32xf32>
    %6 = vector.extract_strided_slice %3 {offsets = [0, 64], sizes = [1, 32], strides = [1, 1]} : vector<1x128xf32> to vector<1x32xf32>
    %7 = vector.extract_strided_slice %3 {offsets = [0, 96], sizes = [1, 32], strides = [1, 1]} : vector<1x128xf32> to vector<1x32xf32>
    %c8 = arith.constant 8 : index
    %c0_10 = arith.constant 0 : index
    %8 = vector.load %arg3[%c8, %c0_10] : memref<272x128xf32, #tpu.memory_space<vmem>>, vector<32x128xf32>
    %c40 = arith.constant 40 : index
    %c0_11 = arith.constant 0 : index
    %9 = vector.load %arg3[%c40, %c0_11] : memref<272x128xf32, #tpu.memory_space<vmem>>, vector<32x64xf32>
    %c72 = arith.constant 72 : index
    %c0_12 = arith.constant 0 : index
    %10 = vector.load %arg3[%c72, %c0_12] : memref<272x128xf32, #tpu.memory_space<vmem>>, vector<32x128xf32>
    %c104 = arith.constant 104 : index
    %c0_13 = arith.constant 0 : index
    %11 = vector.load %arg3[%c104, %c0_13] : memref<272x128xf32, #tpu.memory_space<vmem>>, vector<32x128xf32>
    %c136 = arith.constant 136 : index
    %c0_14 = arith.constant 0 : index
    %12 = vector.load %arg3[%c136, %c0_14] : memref<272x128xf32, #tpu.memory_space<vmem>>, vector<128x32xf32>
    %c264 = arith.constant 264 : index
    %c0_15 = arith.constant 0 : index
    %13 = vector.load %arg3[%c264, %c0_15] : memref<272x128xf32, #tpu.memory_space<vmem>>, vector<8x128xf32>
    %14 = vector.extract_strided_slice %13 {offsets = [0, 0], sizes = [1, 128], strides = [1, 1]} : vector<8x128xf32> to vector<1x128xf32>
    %15 = vector.extract_strided_slice %13 {offsets = [1, 0], sizes = [1, 64], strides = [1, 1]} : vector<8x128xf32> to vector<1x64xf32>
    %16 = vector.extract_strided_slice %13 {offsets = [2, 0], sizes = [1, 128], strides = [1, 1]} : vector<8x128xf32> to vector<1x128xf32>
    %17 = vector.extract_strided_slice %13 {offsets = [3, 0], sizes = [1, 128], strides = [1, 1]} : vector<8x128xf32> to vector<1x128xf32>
    %18 = vector.extract_strided_slice %13 {offsets = [4, 0], sizes = [1, 64], strides = [1, 1]} : vector<8x128xf32> to vector<1x64xf32>
    %cst = arith.constant dense<0.000000e+00> : vector<2x16xf32>
    %19 = vector.multi_reduction <add>, %0, %cst [2] : vector<2x16x32xf32> to vector<2x16xf32>
    %20 = vector.shape_cast %19 : vector<2x16xf32> to vector<2x16x1xf32>
    %cst_16 = arith.constant 3.200000e+01 : f32
    %21 = vector.broadcast %cst_16 : f32 to vector<2x16x1xf32>
    %22 = arith.divf %20, %21 : vector<2x16x1xf32>
    %23 = vector.broadcast %22 : vector<2x16x1xf32> to vector<2x16x32xf32>
    %24 = arith.subf %0, %23 : vector<2x16x32xf32>
    %25 = arith.mulf %24, %24 : vector<2x16x32xf32>
    %cst_17 = arith.constant dense<0.000000e+00> : vector<2x16xf32>
    %26 = vector.multi_reduction <add>, %25, %cst_17 [2] : vector<2x16x32xf32> to vector<2x16xf32>
    %27 = vector.shape_cast %26 : vector<2x16xf32> to vector<2x16x1xf32>
    %cst_18 = arith.constant 3.200000e+01 : f32
    %28 = vector.broadcast %cst_18 : f32 to vector<2x16x1xf32>
    %29 = arith.divf %27, %28 : vector<2x16x1xf32>
    %30 = vector.broadcast %22 : vector<2x16x1xf32> to vector<2x16x32xf32>
    %31 = arith.subf %0, %30 : vector<2x16x32xf32>
    %cst_19 = arith.constant 9.99999974E-6 : f32
    %32 = vector.broadcast %cst_19 : f32 to vector<2x16x1xf32>
    %33 = arith.addf %29, %32 : vector<2x16x1xf32>
    %34 = math.rsqrt %33 : vector<2x16x1xf32>
    %35 = vector.broadcast %34 : vector<2x16x1xf32> to vector<2x16x32xf32>
    %36 = arith.mulf %31, %35 : vector<2x16x32xf32>
    %37 = vector.shape_cast %4 : vector<1x32xf32> to vector<1x1x32xf32>
    %38 = vector.broadcast %37 : vector<1x1x32xf32> to vector<2x16x32xf32>
    %39 = arith.mulf %36, %38 : vector<2x16x32xf32>
    %40 = vector.shape_cast %5 : vector<1x32xf32> to vector<1x1x32xf32>
    %41 = vector.broadcast %40 : vector<1x1x32xf32> to vector<2x16x32xf32>
    %42 = arith.addf %39, %41 : vector<2x16x32xf32>
    %43 = vector.shape_cast %42 : vector<2x16x32xf32> to vector<32x32xf32>
    %cst_20 = arith.constant dense<0.000000e+00> : vector<32x128xf32>
    %44 = tpu.matmul %43, %8, %cst_20 {dimension_numbers = #tpu.dot_dimension_numbers<[1], [0], [0], [1], [0, 0, 1, 1], [], []>, precision = #tpu.contract_precision<fp32>} : vector<32x32xf32>, vector<32x128xf32>, vector<32x128xf32> -> vector<32x128xf32>
    %45 = vector.broadcast %14 : vector<1x128xf32> to vector<32x128xf32>
    %46 = arith.addf %44, %45 : vector<32x128xf32>
    %47 = vector.extract_strided_slice %9 {offsets = [0, 0], sizes = [32, 32], strides = [1, 1]} : vector<32x64xf32> to vector<32x32xf32>
    %cst_21 = arith.constant dense<0.000000e+00> : vector<32x32xf32>
    %48 = tpu.matmul %43, %47, %cst_21 {dimension_numbers = #tpu.dot_dimension_numbers<[1], [0], [0], [1], [0, 0, 1, 1], [], []>, precision = #tpu.contract_precision<fp32>} : vector<32x32xf32>, vector<32x32xf32>, vector<32x32xf32> -> vector<32x32xf32>
    %49 = vector.extract_strided_slice %15 {offsets = [0, 0], sizes = [1, 32], strides = [1, 1]} : vector<1x64xf32> to vector<1x32xf32>
    %50 = vector.broadcast %49 : vector<1x32xf32> to vector<32x32xf32>
    %51 = arith.addf %48, %50 : vector<32x32xf32>
    %52 = vector.shape_cast %46 : vector<32x128xf32> to vector<2x16x128xf32>
    %53 = vector.shape_cast %51 : vector<32x32xf32> to vector<2x16x32xf32>
    %54 = vector.extract_strided_slice %52 {offsets = [0, 0, 0], sizes = [1, 8, 128], strides = [1, 1, 1]} : vector<2x16x128xf32> to vector<1x8x128xf32>
    %55 = vector.shape_cast %54 : vector<1x8x128xf32> to vector<8x128xf32>
    %56 = vector.extract_strided_slice %55 {offsets = [0, 0], sizes = [8, 32], strides = [1, 1]} : vector<8x128xf32> to vector<8x32xf32>
    %57 = vector.extract_strided_slice %55 {offsets = [0, 32], sizes = [8, 32], strides = [1, 1]} : vector<8x128xf32> to vector<8x32xf32>
    %58 = vector.extract_strided_slice %55 {offsets = [0, 64], sizes = [8, 32], strides = [1, 1]} : vector<8x128xf32> to vector<8x32xf32>
    %59 = vector.extract_strided_slice %1 {offsets = [0, 0, 0], sizes = [1, 8, 8], strides = [1, 1, 1]} : vector<2x8x8xf32> to vector<1x8x8xf32>
    %60 = vector.shape_cast %59 : vector<1x8x8xf32> to vector<8x8xf32>
    %61 = vector.shape_cast %56 : vector<8x32xf32> to vector<8x4x8xf32>
    %62 = vector.shape_cast %57 : vector<8x32xf32> to vector<8x4x8xf32>
    %63 = vector.shape_cast %58 : vector<8x32xf32> to vector<8x4x8xf32>
    "tpu.trace_start"() <{level = 10 : i32, message = "qhd,khd->hqk"}> : () -> ()
    %cst_22 = arith.constant dense<0.000000e+00> : vector<4x8x8xf32>
    %64 = tpu.matmul %61, %62, %cst_22 {dimension_numbers = #tpu.dot_dimension_numbers<[2], [2], [0], [0], [0, 1, 0, 0, 1, 0], [1], [1]>, precision = #tpu.contract_precision<fp32>} : vector<8x4x8xf32>, vector<8x4x8xf32>, vector<4x8x8xf32> -> vector<4x8x8xf32>
    "tpu.trace_stop"() : () -> ()
    %65 = vector.shape_cast %60 : vector<8x8xf32> to vector<1x8x8xf32>
    %66 = vector.broadcast %65 : vector<1x8x8xf32> to vector<4x8x8xf32>
    %67 = arith.addf %64, %66 : vector<4x8x8xf32>
    %cst_23 = arith.constant dense<0xFF800000> : vector<4x8xf32>
    %68 = vector.multi_reduction <maximumf>, %67, %cst_23 [2] : vector<4x8x8xf32> to vector<4x8xf32>
    %69 = vector.shape_cast %68 : vector<4x8xf32> to vector<4x8x1xf32>
    %70 = vector.broadcast %69 : vector<4x8x1xf32> to vector<4x8x8xf32>
    %71 = arith.subf %67, %70 : vector<4x8x8xf32>
    %72 = math.exp %71 : vector<4x8x8xf32>
    %cst_24 = arith.constant dense<0.000000e+00> : vector<4x8xf32>
    %73 = vector.multi_reduction <add>, %72, %cst_24 [2] : vector<4x8x8xf32> to vector<4x8xf32>
    %74 = vector.shape_cast %73 : vector<4x8xf32> to vector<4x8x1xf32>
    %75 = tpu.reciprocal %74 {approx = true} : vector<4x8x1xf32> -> vector<4x8x1xf32>
    %76 = vector.broadcast %75 : vector<4x8x1xf32> to vector<4x8x8xf32>
    %77 = arith.mulf %72, %76 : vector<4x8x8xf32>
    "tpu.trace_start"() <{level = 10 : i32, message = "hqk,khd->qhd"}> : () -> ()
    %cst_25 = arith.constant dense<0.000000e+00> : vector<4x8x8xf32>
    %78 = tpu.matmul %63, %77, %cst_25 {dimension_numbers = #tpu.dot_dimension_numbers<[0], [2], [2], [1], [0, 1, 0, 2, 1, 1], [1], [0]>, precision = #tpu.contract_precision<fp32>} : vector<8x4x8xf32>, vector<4x8x8xf32>, vector<4x8x8xf32> -> vector<4x8x8xf32>
    %79 = tpu.transpose %78, [2, 0, 1] : vector<4x8x8xf32> -> vector<8x4x8xf32>
    "tpu.trace_stop"() : () -> ()
    %80 = vector.shape_cast %79 : vector<8x4x8xf32> to vector<8x32xf32>
    %81 = vector.extract_strided_slice %52 {offsets = [1, 0, 0], sizes = [1, 8, 128], strides = [1, 1, 1]} : vector<2x16x128xf32> to vector<1x8x128xf32>
    %82 = vector.shape_cast %81 : vector<1x8x128xf32> to vector<8x128xf32>
    %83 = vector.extract_strided_slice %82 {offsets = [0, 0], sizes = [8, 32], strides = [1, 1]} : vector<8x128xf32> to vector<8x32xf32>
    %84 = vector.extract_strided_slice %82 {offsets = [0, 32], sizes = [8, 32], strides = [1, 1]} : vector<8x128xf32> to vector<8x32xf32>
    %85 = vector.extract_strided_slice %82 {offsets = [0, 64], sizes = [8, 32], strides = [1, 1]} : vector<8x128xf32> to vector<8x32xf32>
    %86 = vector.extract_strided_slice %1 {offsets = [1, 0, 0], sizes = [1, 8, 8], strides = [1, 1, 1]} : vector<2x8x8xf32> to vector<1x8x8xf32>
    %87 = vector.shape_cast %86 : vector<1x8x8xf32> to vector<8x8xf32>
    %88 = vector.shape_cast %83 : vector<8x32xf32> to vector<8x4x8xf32>
    %89 = vector.shape_cast %84 : vector<8x32xf32> to vector<8x4x8xf32>
    %90 = vector.shape_cast %85 : vector<8x32xf32> to vector<8x4x8xf32>
    "tpu.trace_start"() <{level = 10 : i32, message = "qhd,khd->hqk"}> : () -> ()
    %cst_26 = arith.constant dense<0.000000e+00> : vector<4x8x8xf32>
    %91 = tpu.matmul %88, %89, %cst_26 {dimension_numbers = #tpu.dot_dimension_numbers<[2], [2], [0], [0], [0, 1, 0, 0, 1, 0], [1], [1]>, precision = #tpu.contract_precision<fp32>} : vector<8x4x8xf32>, vector<8x4x8xf32>, vector<4x8x8xf32> -> vector<4x8x8xf32>
    "tpu.trace_stop"() : () -> ()
    %92 = vector.shape_cast %87 : vector<8x8xf32> to vector<1x8x8xf32>
    %93 = vector.broadcast %92 : vector<1x8x8xf32> to vector<4x8x8xf32>
    %94 = arith.addf %91, %93 : vector<4x8x8xf32>
    %cst_27 = arith.constant dense<0xFF800000> : vector<4x8xf32>
    %95 = vector.multi_reduction <maximumf>, %94, %cst_27 [2] : vector<4x8x8xf32> to vector<4x8xf32>
    %96 = vector.shape_cast %95 : vector<4x8xf32> to vector<4x8x1xf32>
    %97 = vector.broadcast %96 : vector<4x8x1xf32> to vector<4x8x8xf32>
    %98 = arith.subf %94, %97 : vector<4x8x8xf32>
    %99 = math.exp %98 : vector<4x8x8xf32>
    %cst_28 = arith.constant dense<0.000000e+00> : vector<4x8xf32>
    %100 = vector.multi_reduction <add>, %99, %cst_28 [2] : vector<4x8x8xf32> to vector<4x8xf32>
    %101 = vector.shape_cast %100 : vector<4x8xf32> to vector<4x8x1xf32>
    %102 = tpu.reciprocal %101 {approx = true} : vector<4x8x1xf32> -> vector<4x8x1xf32>
    %103 = vector.broadcast %102 : vector<4x8x1xf32> to vector<4x8x8xf32>
    %104 = arith.mulf %99, %103 : vector<4x8x8xf32>
    "tpu.trace_start"() <{level = 10 : i32, message = "hqk,khd->qhd"}> : () -> ()
    %cst_29 = arith.constant dense<0.000000e+00> : vector<4x8x8xf32>
    %105 = tpu.matmul %90, %104, %cst_29 {dimension_numbers = #tpu.dot_dimension_numbers<[0], [2], [2], [1], [0, 1, 0, 2, 1, 1], [1], [0]>, precision = #tpu.contract_precision<fp32>} : vector<8x4x8xf32>, vector<4x8x8xf32>, vector<4x8x8xf32> -> vector<4x8x8xf32>
    %106 = tpu.transpose %105, [2, 0, 1] : vector<4x8x8xf32> -> vector<8x4x8xf32>
    "tpu.trace_stop"() : () -> ()
    %107 = vector.shape_cast %106 : vector<8x4x8xf32> to vector<8x32xf32>
    %108 = tpu.concatenate %80, %107 in 0 : vector<8x32xf32>, vector<8x32xf32> -> vector<16x32xf32>
    %109 = vector.extract_strided_slice %9 {offsets = [0, 32], sizes = [32, 32], strides = [1, 1]} : vector<32x64xf32> to vector<32x32xf32>
    %cst_30 = arith.constant dense<0.000000e+00> : vector<16x32xf32>
    %110 = tpu.matmul %108, %109, %cst_30 {dimension_numbers = #tpu.dot_dimension_numbers<[1], [0], [0], [1], [0, 0, 1, 1], [], []>, precision = #tpu.contract_precision<fp32>} : vector<16x32xf32>, vector<32x32xf32>, vector<16x32xf32> -> vector<16x32xf32>
    %111 = vector.extract_strided_slice %15 {offsets = [0, 32], sizes = [1, 32], strides = [1, 1]} : vector<1x64xf32> to vector<1x32xf32>
    %112 = vector.broadcast %111 : vector<1x32xf32> to vector<16x32xf32>
    %113 = arith.addf %110, %112 : vector<16x32xf32>
    %114 = vector.extract_strided_slice %10 {offsets = [0, 0], sizes = [32, 96], strides = [1, 1]} : vector<32x128xf32> to vector<32x96xf32>
    %cst_31 = arith.constant dense<0.000000e+00> : vector<16x96xf32>
    %115 = tpu.matmul %113, %114, %cst_31 {dimension_numbers = #tpu.dot_dimension_numbers<[1], [0], [0], [1], [0, 0, 1, 1], [], []>, precision = #tpu.contract_precision<fp32>} : vector<16x32xf32>, vector<32x96xf32>, vector<16x96xf32> -> vector<16x96xf32>
    %116 = vector.extract_strided_slice %16 {offsets = [0, 0], sizes = [1, 96], strides = [1, 1]} : vector<1x128xf32> to vector<1x96xf32>
    %117 = vector.broadcast %116 : vector<1x96xf32> to vector<16x96xf32>
    %118 = arith.addf %115, %117 : vector<16x96xf32>
    %119 = vector.shape_cast %118 : vector<16x96xf32> to vector<2x8x96xf32>
    %120 = vector.shape_cast %113 : vector<16x32xf32> to vector<2x8x32xf32>
    %121 = vector.extract_strided_slice %119 {offsets = [0, 0, 32], sizes = [1, 8, 32], strides = [1, 1, 1]} : vector<2x8x96xf32> to vector<1x8x32xf32>
    %122 = vector.shape_cast %121 : vector<1x8x32xf32> to vector<8x32xf32>
    %123 = vector.extract_strided_slice %52 {offsets = [0, 8, 96], sizes = [1, 8, 32], strides = [1, 1, 1]} : vector<2x16x128xf32> to vector<1x8x32xf32>
    %124 = vector.shape_cast %123 : vector<1x8x32xf32> to vector<8x32xf32>
    %125 = tpu.concatenate %122, %124 in 0 : vector<8x32xf32>, vector<8x32xf32> -> vector<16x32xf32>
    %126 = vector.extract_strided_slice %119 {offsets = [0, 0, 64], sizes = [1, 8, 32], strides = [1, 1, 1]} : vector<2x8x96xf32> to vector<1x8x32xf32>
    %127 = vector.shape_cast %126 : vector<1x8x32xf32> to vector<8x32xf32>
    %128 = vector.extract_strided_slice %53 {offsets = [0, 8, 0], sizes = [1, 8, 32], strides = [1, 1, 1]} : vector<2x16x32xf32> to vector<1x8x32xf32>
    %129 = vector.shape_cast %128 : vector<1x8x32xf32> to vector<8x32xf32>
    %130 = tpu.concatenate %127, %129 in 0 : vector<8x32xf32>, vector<8x32xf32> -> vector<16x32xf32>
    %131 = vector.extract_strided_slice %119 {offsets = [0, 0, 0], sizes = [1, 8, 32], strides = [1, 1, 1]} : vector<2x8x96xf32> to vector<1x8x32xf32>
    %132 = vector.shape_cast %131 : vector<1x8x32xf32> to vector<8x32xf32>
    %133 = vector.extract_strided_slice %2 {offsets = [0, 0, 0], sizes = [1, 8, 16], strides = [1, 1, 1]} : vector<2x8x16xf32> to vector<1x8x16xf32>
    %134 = vector.shape_cast %133 : vector<1x8x16xf32> to vector<8x16xf32>
    %135 = vector.shape_cast %132 : vector<8x32xf32> to vector<8x4x8xf32>
    %136 = vector.shape_cast %125 : vector<16x32xf32> to vector<16x4x8xf32>
    %137 = vector.shape_cast %130 : vector<16x32xf32> to vector<16x4x8xf32>
    "tpu.trace_start"() <{level = 10 : i32, message = "qhd,khd->hqk"}> : () -> ()
    %cst_32 = arith.constant dense<0.000000e+00> : vector<4x8x16xf32>
    %138 = tpu.matmul %135, %136, %cst_32 {dimension_numbers = #tpu.dot_dimension_numbers<[2], [2], [0], [0], [0, 1, 0, 0, 1, 0], [1], [1]>, precision = #tpu.contract_precision<fp32>} : vector<8x4x8xf32>, vector<16x4x8xf32>, vector<4x8x16xf32> -> vector<4x8x16xf32>
    "tpu.trace_stop"() : () -> ()
    %139 = vector.shape_cast %134 : vector<8x16xf32> to vector<1x8x16xf32>
    %140 = vector.broadcast %139 : vector<1x8x16xf32> to vector<4x8x16xf32>
    %141 = arith.addf %138, %140 : vector<4x8x16xf32>
    %cst_33 = arith.constant dense<0xFF800000> : vector<4x8xf32>
    %142 = vector.multi_reduction <maximumf>, %141, %cst_33 [2] : vector<4x8x16xf32> to vector<4x8xf32>
    %143 = vector.shape_cast %142 : vector<4x8xf32> to vector<4x8x1xf32>
    %144 = vector.broadcast %143 : vector<4x8x1xf32> to vector<4x8x16xf32>
    %145 = arith.subf %141, %144 : vector<4x8x16xf32>
    %146 = math.exp %145 : vector<4x8x16xf32>
    %cst_34 = arith.constant dense<0.000000e+00> : vector<4x8xf32>
    %147 = vector.multi_reduction <add>, %146, %cst_34 [2] : vector<4x8x16xf32> to vector<4x8xf32>
    %148 = vector.shape_cast %147 : vector<4x8xf32> to vector<4x8x1xf32>
    %149 = tpu.reciprocal %148 {approx = true} : vector<4x8x1xf32> -> vector<4x8x1xf32>
    %150 = vector.broadcast %149 : vector<4x8x1xf32> to vector<4x8x16xf32>
    %151 = arith.mulf %146, %150 : vector<4x8x16xf32>
    "tpu.trace_start"() <{level = 10 : i32, message = "hqk,khd->qhd"}> : () -> ()
    %cst_35 = arith.constant dense<0.000000e+00> : vector<4x8x8xf32>
    %152 = tpu.matmul %137, %151, %cst_35 {dimension_numbers = #tpu.dot_dimension_numbers<[0], [2], [2], [1], [0, 1, 0, 2, 1, 1], [1], [0]>, precision = #tpu.contract_precision<fp32>} : vector<16x4x8xf32>, vector<4x8x16xf32>, vector<4x8x8xf32> -> vector<4x8x8xf32>
    %153 = tpu.transpose %152, [2, 0, 1] : vector<4x8x8xf32> -> vector<8x4x8xf32>
    "tpu.trace_stop"() : () -> ()
    %154 = vector.shape_cast %153 : vector<8x4x8xf32> to vector<8x32xf32>
    %155 = vector.extract_strided_slice %119 {offsets = [1, 0, 32], sizes = [1, 8, 32], strides = [1, 1, 1]} : vector<2x8x96xf32> to vector<1x8x32xf32>
    %156 = vector.shape_cast %155 : vector<1x8x32xf32> to vector<8x32xf32>
    %157 = vector.extract_strided_slice %52 {offsets = [1, 8, 96], sizes = [1, 8, 32], strides = [1, 1, 1]} : vector<2x16x128xf32> to vector<1x8x32xf32>
    %158 = vector.shape_cast %157 : vector<1x8x32xf32> to vector<8x32xf32>
    %159 = tpu.concatenate %156, %158 in 0 : vector<8x32xf32>, vector<8x32xf32> -> vector<16x32xf32>
    %160 = vector.extract_strided_slice %119 {offsets = [1, 0, 64], sizes = [1, 8, 32], strides = [1, 1, 1]} : vector<2x8x96xf32> to vector<1x8x32xf32>
    %161 = vector.shape_cast %160 : vector<1x8x32xf32> to vector<8x32xf32>
    %162 = vector.extract_strided_slice %53 {offsets = [1, 8, 0], sizes = [1, 8, 32], strides = [1, 1, 1]} : vector<2x16x32xf32> to vector<1x8x32xf32>
    %163 = vector.shape_cast %162 : vector<1x8x32xf32> to vector<8x32xf32>
    %164 = tpu.concatenate %161, %163 in 0 : vector<8x32xf32>, vector<8x32xf32> -> vector<16x32xf32>
    %165 = vector.extract_strided_slice %119 {offsets = [1, 0, 0], sizes = [1, 8, 32], strides = [1, 1, 1]} : vector<2x8x96xf32> to vector<1x8x32xf32>
    %166 = vector.shape_cast %165 : vector<1x8x32xf32> to vector<8x32xf32>
    %167 = vector.extract_strided_slice %2 {offsets = [1, 0, 0], sizes = [1, 8, 16], strides = [1, 1, 1]} : vector<2x8x16xf32> to vector<1x8x16xf32>
    %168 = vector.shape_cast %167 : vector<1x8x16xf32> to vector<8x16xf32>
    %169 = vector.shape_cast %166 : vector<8x32xf32> to vector<8x4x8xf32>
    %170 = vector.shape_cast %159 : vector<16x32xf32> to vector<16x4x8xf32>
    %171 = vector.shape_cast %164 : vector<16x32xf32> to vector<16x4x8xf32>
    "tpu.trace_start"() <{level = 10 : i32, message = "qhd,khd->hqk"}> : () -> ()
    %cst_36 = arith.constant dense<0.000000e+00> : vector<4x8x16xf32>
    %172 = tpu.matmul %169, %170, %cst_36 {dimension_numbers = #tpu.dot_dimension_numbers<[2], [2], [0], [0], [0, 1, 0, 0, 1, 0], [1], [1]>, precision = #tpu.contract_precision<fp32>} : vector<8x4x8xf32>, vector<16x4x8xf32>, vector<4x8x16xf32> -> vector<4x8x16xf32>
    "tpu.trace_stop"() : () -> ()
    %173 = vector.shape_cast %168 : vector<8x16xf32> to vector<1x8x16xf32>
    %174 = vector.broadcast %173 : vector<1x8x16xf32> to vector<4x8x16xf32>
    %175 = arith.addf %172, %174 : vector<4x8x16xf32>
    %cst_37 = arith.constant dense<0xFF800000> : vector<4x8xf32>
    %176 = vector.multi_reduction <maximumf>, %175, %cst_37 [2] : vector<4x8x16xf32> to vector<4x8xf32>
    %177 = vector.shape_cast %176 : vector<4x8xf32> to vector<4x8x1xf32>
    %178 = vector.broadcast %177 : vector<4x8x1xf32> to vector<4x8x16xf32>
    %179 = arith.subf %175, %178 : vector<4x8x16xf32>
    %180 = math.exp %179 : vector<4x8x16xf32>
    %cst_38 = arith.constant dense<0.000000e+00> : vector<4x8xf32>
    %181 = vector.multi_reduction <add>, %180, %cst_38 [2] : vector<4x8x16xf32> to vector<4x8xf32>
    %182 = vector.shape_cast %181 : vector<4x8xf32> to vector<4x8x1xf32>
    %183 = tpu.reciprocal %182 {approx = true} : vector<4x8x1xf32> -> vector<4x8x1xf32>
    %184 = vector.broadcast %183 : vector<4x8x1xf32> to vector<4x8x16xf32>
    %185 = arith.mulf %180, %184 : vector<4x8x16xf32>
    "tpu.trace_start"() <{level = 10 : i32, message = "hqk,khd->qhd"}> : () -> ()
    %cst_39 = arith.constant dense<0.000000e+00> : vector<4x8x8xf32>
    %186 = tpu.matmul %171, %185, %cst_39 {dimension_numbers = #tpu.dot_dimension_numbers<[0], [2], [2], [1], [0, 1, 0, 2, 1, 1], [1], [0]>, precision = #tpu.contract_precision<fp32>} : vector<16x4x8xf32>, vector<4x8x16xf32>, vector<4x8x8xf32> -> vector<4x8x8xf32>
    %187 = tpu.transpose %186, [2, 0, 1] : vector<4x8x8xf32> -> vector<8x4x8xf32>
    "tpu.trace_stop"() : () -> ()
    %188 = vector.shape_cast %187 : vector<8x4x8xf32> to vector<8x32xf32>
    %189 = tpu.concatenate %154, %188 in 0 : vector<8x32xf32>, vector<8x32xf32> -> vector<16x32xf32>
    %190 = vector.extract_strided_slice %10 {offsets = [0, 96], sizes = [32, 32], strides = [1, 1]} : vector<32x128xf32> to vector<32x32xf32>
    %cst_40 = arith.constant dense<0.000000e+00> : vector<16x32xf32>
    %191 = tpu.matmul %189, %190, %cst_40 {dimension_numbers = #tpu.dot_dimension_numbers<[1], [0], [0], [1], [0, 0, 1, 1], [], []>, precision = #tpu.contract_precision<fp32>} : vector<16x32xf32>, vector<32x32xf32>, vector<16x32xf32> -> vector<16x32xf32>
    %192 = vector.extract_strided_slice %16 {offsets = [0, 96], sizes = [1, 32], strides = [1, 1]} : vector<1x128xf32> to vector<1x32xf32>
    %193 = vector.broadcast %192 : vector<1x32xf32> to vector<16x32xf32>
    %194 = arith.addf %191, %193 : vector<16x32xf32>
    %195 = vector.shape_cast %194 : vector<16x32xf32> to vector<2x8x32xf32>
    %196 = tpu.concatenate %120, %195 in 1 : vector<2x8x32xf32>, vector<2x8x32xf32> -> vector<2x16x32xf32>
    %197 = arith.addf %42, %196 : vector<2x16x32xf32>
    %cst_41 = arith.constant dense<0.000000e+00> : vector<2x16xf32>
    %198 = vector.multi_reduction <add>, %197, %cst_41 [2] : vector<2x16x32xf32> to vector<2x16xf32>
    %199 = vector.shape_cast %198 : vector<2x16xf32> to vector<2x16x1xf32>
    %cst_42 = arith.constant 3.200000e+01 : f32
    %200 = vector.broadcast %cst_42 : f32 to vector<2x16x1xf32>
    %201 = arith.divf %199, %200 : vector<2x16x1xf32>
    %202 = vector.broadcast %201 : vector<2x16x1xf32> to vector<2x16x32xf32>
    %203 = arith.subf %197, %202 : vector<2x16x32xf32>
    %204 = arith.mulf %203, %203 : vector<2x16x32xf32>
    %cst_43 = arith.constant dense<0.000000e+00> : vector<2x16xf32>
    %205 = vector.multi_reduction <add>, %204, %cst_43 [2] : vector<2x16x32xf32> to vector<2x16xf32>
    %206 = vector.shape_cast %205 : vector<2x16xf32> to vector<2x16x1xf32>
    %cst_44 = arith.constant 3.200000e+01 : f32
    %207 = vector.broadcast %cst_44 : f32 to vector<2x16x1xf32>
    %208 = arith.divf %206, %207 : vector<2x16x1xf32>
    %209 = vector.broadcast %201 : vector<2x16x1xf32> to vector<2x16x32xf32>
    %210 = arith.subf %197, %209 : vector<2x16x32xf32>
    %cst_45 = arith.constant 9.99999974E-6 : f32
    %211 = vector.broadcast %cst_45 : f32 to vector<2x16x1xf32>
    %212 = arith.addf %208, %211 : vector<2x16x1xf32>
    %213 = math.rsqrt %212 : vector<2x16x1xf32>
    %214 = vector.broadcast %213 : vector<2x16x1xf32> to vector<2x16x32xf32>
    %215 = arith.mulf %210, %214 : vector<2x16x32xf32>
    %216 = vector.shape_cast %6 : vector<1x32xf32> to vector<1x1x32xf32>
    %217 = vector.broadcast %216 : vector<1x1x32xf32> to vector<2x16x32xf32>
    %218 = arith.mulf %215, %217 : vector<2x16x32xf32>
    %219 = vector.shape_cast %7 : vector<1x32xf32> to vector<1x1x32xf32>
    %220 = vector.broadcast %219 : vector<1x1x32xf32> to vector<2x16x32xf32>
    %221 = arith.addf %218, %220 : vector<2x16x32xf32>
    %222 = vector.shape_cast %221 : vector<2x16x32xf32> to vector<32x32xf32>
    %cst_46 = arith.constant dense<0.000000e+00> : vector<32x128xf32>
    %223 = tpu.matmul %222, %11, %cst_46 {dimension_numbers = #tpu.dot_dimension_numbers<[1], [0], [0], [1], [0, 0, 1, 1], [], []>, precision = #tpu.contract_precision<fp32>} : vector<32x32xf32>, vector<32x128xf32>, vector<32x128xf32> -> vector<32x128xf32>
    %224 = vector.broadcast %17 : vector<1x128xf32> to vector<32x128xf32>
    %225 = arith.addf %223, %224 : vector<32x128xf32>
    %cst_47 = arith.constant 0.000000e+00 : f32
    %226 = vector.broadcast %cst_47 : f32 to vector<32x128xf32>
    %227 = arith.maximumf %225, %226 : vector<32x128xf32>
    %228 = tpu.iota {dimensions = array<i32: 0>} : vector<32x1xi32>
    %c16_i32 = arith.constant 16 : i32
    %c0_i32 = arith.constant 0 : i32
    %229 = arith.cmpi eq, %c16_i32, %c0_i32 : i32
    %c1_i32 = arith.constant 1 : i32
    %230 = arith.select %229, %c1_i32, %c16_i32 : i32
    %231 = vector.broadcast %230 : i32 to vector<32x1xi32>
    %232 = arith.remsi %228, %231 : vector<32x1xi32>
    %c0_i32_48 = arith.constant 0 : i32
    %233 = vector.broadcast %c0_i32_48 : i32 to vector<32x1xi32>
    %234 = arith.cmpi ne, %232, %233 : vector<32x1xi32>
    %c0_i32_49 = arith.constant 0 : i32
    %235 = vector.broadcast %c0_i32_49 : i32 to vector<32x1xi32>
    %236 = arith.cmpi slt, %232, %235 : vector<32x1xi32>
    %c0_i32_50 = arith.constant 0 : i32
    %237 = arith.cmpi slt, %230, %c0_i32_50 : i32
    %238 = vector.broadcast %237 : i1 to vector<32x1xi1>
    %239 = vector.broadcast %238 : vector<32x1xi1> to vector<32x1xi1>
    %240 = arith.xori %236, %239 : vector<32x1xi1>
    %241 = arith.andi %240, %234 : vector<32x1xi1>
    %242 = vector.broadcast %230 : i32 to vector<32x1xi32>
    %243 = arith.addi %232, %242 : vector<32x1xi32>
    %244 = arith.select %241, %243, %232 : vector<32x1xi1>, vector<32x1xi32>
    %c8_i32 = arith.constant 8 : i32
    %245 = vector.broadcast %c8_i32 : i32 to vector<32x1xi32>
    %246 = arith.cmpi slt, %244, %245 : vector<32x1xi32>
    %247 = tpu.iota {dimensions = array<i32: 1>} : vector<1x128xi32>
    %c64_i32 = arith.constant 64 : i32
    %248 = vector.broadcast %c64_i32 : i32 to vector<1x128xi32>
    %249 = arith.cmpi slt, %247, %248 : vector<1x128xi32>
    %250 = vector.broadcast %246 : vector<32x1xi1> to vector<32x128xi1>
    %251 = vector.broadcast %249 : vector<1x128xi1> to vector<32x128xi1>
    %252 = arith.andi %250, %251 : vector<32x128xi1>
    %cst_51 = arith.constant dense<true> : vector<32x1xi1>
    %253 = arith.xori %246, %cst_51 : vector<32x1xi1>
    %cst_52 = arith.constant dense<true> : vector<1x128xi1>
    %254 = arith.xori %249, %cst_52 : vector<1x128xi1>
    %255 = vector.broadcast %253 : vector<32x1xi1> to vector<32x128xi1>
    %256 = vector.broadcast %254 : vector<1x128xi1> to vector<32x128xi1>
    %257 = arith.andi %255, %256 : vector<32x128xi1>
    %258 = arith.ori %252, %257 : vector<32x128xi1>
    %cst_53 = arith.constant 0.000000e+00 : f32
    %259 = vector.broadcast %cst_53 : f32 to vector<32x128xf32>
    %260 = arith.select %258, %227, %259 : vector<32x128xi1>, vector<32x128xf32>
    %cst_54 = arith.constant dense<0.000000e+00> : vector<32x32xf32>
    %261 = tpu.matmul %260, %12, %cst_54 {dimension_numbers = #tpu.dot_dimension_numbers<[1], [0], [0], [1], [0, 0, 1, 1], [], []>, precision = #tpu.contract_precision<fp32>} : vector<32x128xf32>, vector<128x32xf32>, vector<32x32xf32> -> vector<32x32xf32>
    %262 = vector.extract_strided_slice %18 {offsets = [0, 0], sizes = [1, 32], strides = [1, 1]} : vector<1x64xf32> to vector<1x32xf32>
    %263 = vector.extract_strided_slice %18 {offsets = [0, 32], sizes = [1, 32], strides = [1, 1]} : vector<1x64xf32> to vector<1x32xf32>
    %264 = vector.shape_cast %246 : vector<32x1xi1> to vector<32x1xi1>
    %265 = vector.broadcast %264 : vector<32x1xi1> to vector<32x32xi1>
    %266 = vector.shape_cast %262 : vector<1x32xf32> to vector<1x32xf32>
    %267 = vector.broadcast %266 : vector<1x32xf32> to vector<32x32xf32>
    %268 = vector.shape_cast %263 : vector<1x32xf32> to vector<1x32xf32>
    %269 = vector.broadcast %268 : vector<1x32xf32> to vector<32x32xf32>
    %270 = arith.select %265, %267, %269 : vector<32x32xi1>, vector<32x32xf32>
    %271 = arith.addf %261, %270 : vector<32x32xf32>
    %272 = arith.addf %222, %271 : vector<32x32xf32>
    %273 = vector.shape_cast %272 : vector<32x32xf32> to vector<2x16x32xf32>
    %c0_55 = arith.constant 0 : index
    %c0_56 = arith.constant 0 : index
    %c0_57 = arith.constant 0 : index
    %274 = vector.load %arg4[%c0_55, %c0_56, %c0_57] : memref<2x16x32xf32, #tpu.memory_space<vmem>>, vector<2x16x32xf32>
    tpu.vector_store %arg4[%c0_55, %c0_56, %c0_57], %273 {strides = array<i32>} : memref<2x16x32xf32, #tpu.memory_space<vmem>>, vector<2x16x32xf32>,
    return
  }
}

</mosaic_0001>

<bundles_post_ra>
// kernel: tpu_custom_call.1
= control target key start
LH: loop header
LB: loop body
LE: loop exit
PB: predicated region body
PF: predicated region fallthrough
CT: control target
= control target key end

     0   :  { %9 = vsyncpa [#allocation3], 0  ;;  %s11716_s0 = inlined_call_operand.hbm [shape: f32[2,16,32], index: 0, kind: input, shape index: {}]   ;;  %s11717_s1 = inlined_call_operand.hbm [shape: f32[2,8,8], index: 1, kind: input, shape index: {}]   ;;  %s11718_s2 = inlined_call_operand.hbm [shape: f32[2,8,16], index: 2, kind: input, shape index: {}]   ;;  %s11719_s3 = inlined_call_operand.hbm [shape: f32[272,128], index: 3, kind: input, shape index: {}]   ;;  %s11720_s4 = inlined_call_operand.hbm [shape: f32[2,16,32], index: 4, kind: output, shape index: {}]  }
   0x1   :  { %10 = vsyncpa [#allocation6], 0 }
   0x2   :  { %11 = vsyncpa [#allocation9], 0 }
   0x3   :  { %12 = vsyncpa [#allocation4], 0  ;;  %s30_s17 = sshll.u32 %s11717_s1, 4  ;;  %s10179_s18 = smov [#allocation5]   ;;  %s31_s17 = int_to_ptr.hbm [resolvable:$true] %s30_s17 }
   0x4   :  { %s32_s19 = sshll.u32 %s10179_s18, 4  ;;  %s17_s22 = sshll.u32 %s11716_s0, 4  ;;  %s33_s19 = int_to_ptr.vmem [resolvable:$true] %s32_s19  ;;  %s18_s22 = int_to_ptr.hbm [resolvable:$true] %s17_s22 }
   0x5   :  { %s10180_s23 = smov 128   ;;  %s10181_s24 = smov 8  }
   0x6   :  { %38 = dma.hbm_to_vmem [thread:$0]  %s31_s17, 256, %s33_s19, [#allocation6], %s10180_s23, %s10180_s23, %s10181_s24  }
   0x7   :  { %s10182_s25 = smov [#allocation2]   ;;  %s43_s1 = sshll.u32 %s11718_s2, 4  ;;  %s44_s1 = int_to_ptr.hbm [resolvable:$true] %s43_s1 }
   0x8   :  { %s19_s26 = sshll.u32 %s10182_s25, 4  ;;  %s56_s30 = sshll.u32 %s11719_s3, 4  ;;  %s20_s26 = int_to_ptr.vmem [resolvable:$true] %s19_s26  ;;  %s57_s30 = int_to_ptr.hbm [resolvable:$true] %s56_s30 }
   0x9   :  { %25 = dma.hbm_to_vmem [thread:$0]  %s18_s22, 512, %s20_s26, [#allocation3], %s10180_s23, %s10180_s23, %s10181_s24  }
   0xa   :  { %s10183_s5 = smov [#allocation7]   ;;  %s10184_s7 = smov [#allocation8]  }
   0xb   :  { %s45_s6 = sshll.u32 %s10183_s5, 4  ;;  %s58_s2 = sshll.u32 %s10184_s7, 4  ;;  %s46_s6 = int_to_ptr.vmem [resolvable:$true] %s45_s6  ;;  %s59_s2 = int_to_ptr.vmem [resolvable:$true] %s58_s2 }
   0xc   :  { %51 = dma.hbm_to_vmem [thread:$0]  %s44_s1, 256, %s46_s6, [#allocation6], %s10180_s23, %s10180_s23, %s10181_s24  }
   0xd   :  { %64 = dma.hbm_to_vmem [thread:$0]  %s57_s30, 4352, %s59_s2, [#allocation9], %s10180_s23, %s10180_s23, %s10181_s24  }
   0xe   :  { %10171 = dma.done.wait [#allocation3], 512  }
   0xf   :  { %10172 = vsyncadd [#allocation3], 4294966784 }
  0x10   :  { %10173 = dma.done.wait [#allocation6], 512  }
  0x11   :  { %10174 = vsyncadd [#allocation6], 4294966784 }
  0x12   :  { %10175 = dma.done.wait [#allocation9], 4352  }
  0x13   :  { %10176 = vsyncadd [#allocation9], 4294962944  ;;  %vm123_vm0 = vcmask 261120   ;;  %v82_v0 = vld [vmem:[#allocation2 + $0x8] sm:$0xff]  ;;  %v81_v1 = vld [vmem:[#allocation2] sm:$0xff]  ;;  %v10185_v8 = vmov 32.0  }
  0x14   :  { %v127_v2 = vsel %vm123_vm0, %v82_v0, 0.0  ;;  %v124_v3 = vsel %vm123_vm0, %v81_v1, 0.0  ;;  %v83_v4 = vld [vmem:[#allocation2 + $0x10] sm:$0xff]  ;;  %v84_v5 = vld [vmem:[#allocation2 + $0x18] sm:$0xff]  ;;  %9958 = vrcp.f32 %v10185_v8  ;;  %v10277_v35 = vld [vmem:[#allocation8] ss:$0 sm:$0xff] }
  0x15   :  { %128 = vadd.xlane.f32.xlu1 %v127_v2  ;;  %125 = vadd.xlane.f32.xlu0 %v124_v3  ;;  %v130_v6 = vsel %vm123_vm0, %v83_v4, 0.0  ;;  %v133_v7 = vsel %vm123_vm0, %v84_v5, 0.0  ;;  %s10186_s3 = smov 96   ;;  %v93_v36 = vld [vmem:[#allocation8 + $0x20] sm:$0xff]  ;;  %v92_v38 = vld [vmem:[#allocation8 + $0x18] sm:$0xff]  ;;  %v91_v41 = vld [vmem:[#allocation8 + $0x10] sm:$0xff] }
  0x16   :  { %v257_v37 = vand.u32 4294901760, %v93_v36  ;;  %v259_v40 = vand.u32 4294901760, %v92_v38  ;;  %v261_v44 = vand.u32 4294901760, %v91_v41  ;;  %v90_v45 = vld [vmem:[#allocation8 + $0x8] sm:$0xff]  ;;  %s10187_s8 = smov 104   ;;  %s10188_s9 = smov 112  }
  0x17   :  { %v263_v49 = vand.u32 4294901760, %v90_v45  ;;  %s10189_s10 = smov 120   ;;  %s10190_s11 = smov 64   ;;  %vm937_vm14 = vcmask 64512   ;;  %vm2451_vm15 = vcmask 1047556  }
  0x18   :  { %v311_v39 = vsub.f32 %v93_v36, %v257_v37  ;;  %258 = vmatpush.msra.mxu0 %v257_v37  ;;  %9929 = vmatpush.msra.mxu2 %v257_v37  ;;  %v317_v43 = vsub.f32 %v92_v38, %v259_v40  ;;  %v323_v48 = vsub.f32 %v91_v41, %v261_v44  ;;  %s10193_s12 = smov 24   ;;  %s10194_s13 = smov 16  }
  0x19   :  { %v329_v53 = vsub.f32 %v90_v45, %v263_v49  ;;  %s10195_s14 = smov 32   ;;  %s10197_s15 = smov [#allocation10]  }
  0x1a   :  { %v9959_v9 = vpop.eup %9958  ;;  %v312_v42 = vand.u32 4294901760, %v311_v39  ;;  %260 = vmatpush.msra.mxu0 %v259_v40  ;;  %9930 = vmatpush.msra.mxu2 %v259_v40  ;;  %v318_v47 = vand.u32 4294901760, %v317_v43  ;;  %v324_v52 = vand.u32 4294901760, %v323_v48  ;;  %s9912_s16 = sshll.u32 %s10197_s15, 4  ;;  %s9914_s19 = sshll.u32 %s11720_s4, 4  ;;  %s9913_s16 = int_to_ptr.vmem [resolvable:$true] %s9912_s16  ;;  %s9915_s19 = int_to_ptr.hbm [resolvable:$true] %s9914_s19 }
  0x1b   :  { %v137_v10 = vmul.f32 32.0, %v9959_v9  ;;  %vm141_vm1 = vweird.f32 %v9959_v9  ;;  %v330_v56 = vand.u32 4294901760, %v329_v53 }
  0x1c   :  { %v313_v46 = vsub.f32 %v311_v39, %v312_v42  ;;  %262 = vmatpush.msra.mxu0 %v261_v44  ;;  %9931 = vmatpush.msra.mxu2 %v261_v44  ;;  %v319_v51 = vsub.f32 %v317_v43, %v318_v47  ;;  %v325_v55 = vsub.f32 %v323_v48, %v324_v52 }
  0x1d   :  { %131 = vadd.xlane.f32.xlu1 %v130_v6  ;;  %134 = vadd.xlane.f32.xlu0 %v133_v7  ;;  %v138_v11 = vsub.f32 1.0, %v137_v10  ;;  %v331_v58 = vsub.f32 %v329_v53, %v330_v56 }
  0x1e   :  { %v314_v50 = vand.u32 4294901760, %v313_v46  ;;  %264 = vmatpush.msra.mxu0 %v263_v49  ;;  %9932 = vmatpush.msra.mxu2 %v263_v49  ;;  %v320_v54 = vand.u32 4294901760, %v319_v51  ;;  %v326_v57 = vand.u32 4294901760, %v325_v55 }
  0x1f   :  { %v139_v12 = vmul.f32 %v9959_v9, %v138_v11  ;;  %v332_v59 = vand.u32 4294901760, %v331_v58  ;;  %v96_v58 = vld [vmem:[#allocation8 + $0x38] sm:$0xff] }
  0x20   :  { %365 = vmatpush.msrb.mxu2 %v311_v39  ;;  %456 = vmatpush.msrb.mxu0 %v312_v42 }
  0x21   :  { %v140_v13 = vadd.f32 %v9959_v9, %v139_v12  ;;  %315 = vmatpush.msra.mxu1 %v314_v50  ;;  %9933 = vmatpush.msra.mxu3 %v314_v50 }
  0x22   :  { %368 = vmatpush.msrb.mxu2 %v317_v43  ;;  %460 = vmatpush.msrb.mxu0 %v318_v47 }
  0x23   :  { %v10251_v14 = vsel %vm141_vm1, %v9959_v9, %v140_v13  ;;  %321 = vmatpush.msra.mxu1 %v320_v54  ;;  %9934 = vmatpush.msra.mxu3 %v320_v54  ;;  %vm2574_vm1 = vcmask 130048  }
  0x24   :  { %11728 = vst [vmem:[#allocation15_spill] sm:$0xff] %v10251_v14  ;;  %371 = vmatpush.msrb.mxu2 %v323_v48  ;;  %464 = vmatpush.msrb.mxu0 %v324_v52  ;;  %v97_v52 = vld [vmem:[#allocation8 + $0x40] sm:$0xff] }
  0x25   :  { %327 = vmatpush.msra.mxu1 %v326_v57  ;;  %9935 = vmatpush.msra.mxu3 %v326_v57  ;;  %v10307_v55 = vand.u32 4294901760, %v97_v52 }
  0x26   :  { %374 = vmatpush.msrb.mxu2 %v329_v53  ;;  %468 = vmatpush.msrb.mxu0 %v330_v56 }
  0x27   :  { %333 = vmatpush.msra.mxu1 %v332_v59  ;;  %9936 = vmatpush.msra.mxu3 %v332_v59 }
  0x29   :  { %409 = vmatpush.msrb.mxu3 %v257_v37  ;;  %499 = vmatpush.msrb.mxu1 %v257_v37 }
  0x2b   :  { %411 = vmatpush.msrb.mxu3 %v259_v40  ;;  %501 = vmatpush.msrb.mxu1 %v259_v40 }
  0x2d   :  { %413 = vmatpush.msrb.mxu3 %v261_v44  ;;  %503 = vmatpush.msrb.mxu1 %v261_v44 }
  0x2f   :  { %415 = vmatpush.msrb.mxu3 %v263_v49  ;;  %505 = vmatpush.msrb.mxu1 %v263_v49 }
  0x88   :  { %v129_v15 = vpop.xlane.xlu1 %128  ;;  %v126_v16 = vpop.xlane.xlu0 %125 }
  0x89   :  { %v144_v17 = vmul.f32 %v10251_v14, %v129_v15  ;;  %v143_v18 = vmul.f32 %v10251_v14, %v126_v16 }
  0x8b   :  { %v10255_v19 = vsub.f32 %v82_v0, %v144_v17  ;;  %v10257_v20 = vsub.f32 %v81_v1, %v143_v18 }
  0x8d   :  { %v152_v21 = vmul.f32 %v10255_v19, %v10255_v19  ;;  %v151_v22 = vmul.f32 %v10257_v20, %v10257_v20 }
  0x8f   :  { %v158_v23 = vsel %vm123_vm0, %v152_v21, 0.0  ;;  %v155_v24 = vsel %vm123_vm0, %v151_v22, 0.0 }
  0x90   :  { %v132_v25 = vpop.xlane.xlu1 %131  ;;  %159 = vadd.xlane.f32.xlu0 %v158_v23  ;;  %156 = vadd.xlane.f32.xlu2 %v155_v24  ;;  %v135_v26 = vpop.xlane.xlu0 %134 }
  0x91   :  { %v145_v27 = vmul.f32 %v10251_v14, %v132_v25  ;;  %v146_v28 = vmul.f32 %v10251_v14, %v135_v26 }
  0x93   :  { %v10267_v29 = vsub.f32 %v83_v4, %v145_v27  ;;  %v10269_v30 = vsub.f32 %v84_v5, %v146_v28 }
  0x95   :  { %v153_v31 = vmul.f32 %v10267_v29, %v10267_v29  ;;  %v154_v32 = vmul.f32 %v10269_v30, %v10269_v30 }
  0x97   :  { %v161_v33 = vsel %vm123_vm0, %v153_v31, 0.0  ;;  %v164_v34 = vsel %vm123_vm0, %v154_v32, 0.0 }
  0x98   :  { %162 = vadd.xlane.f32.xlu1 %v161_v33  ;;  %165 = vadd.xlane.f32.xlu2 %v164_v34 }
  0xb0   :  { %225 = vrot.lane.b32.xlu2 %v10277_v35, %s10186_s3 }
 0x103   :  { %v157_v60 = vpop.xlane.xlu2 %156  ;;  %v160_v61 = vpop.xlane.xlu0 %159 }
 0x104   :  { %v167_v62 = vmul.f32 %v157_v60, %v10251_v14  ;;  %v168_v63 = vmul.f32 %v160_v61, %v10251_v14  ;;  %v538_v60 = vand.u32 4294901760, %v96_v58 }
 0x106   :  { %v171_v0 = vadd.f32 1e-05, %v167_v62  ;;  %v172_v1 = vadd.f32 1e-05, %v168_v63  ;;  %v95_v62 = vld [vmem:[#allocation8 + $0x30] sm:$0xff] }
 0x108   :  { %9960 = vrsqrt.f32 %v171_v0  ;;  %vm191_vm3 = vweird.f32 %v172_v1  ;;  %vm181_vm5 = vweird.f32 %v171_v0 }
 0x109   :  { %9962 = vrsqrt.f32 %v172_v1 }
 0x10b   :  { %v163_v2 = vpop.xlane.xlu1 %162  ;;  %v166_v3 = vpop.xlane.xlu2 %165 }
 0x10c   :  { %v169_v4 = vmul.f32 %v163_v2, %v10251_v14  ;;  %v170_v5 = vmul.f32 %v166_v3, %v10251_v14 }
 0x10e   :  { %v9961_v6 = vpop.eup %9960  ;;  %v173_v7 = vadd.f32 1e-05, %v169_v4  ;;  %v174_v8 = vadd.f32 1e-05, %v170_v5  ;;  %v540_v4 = vand.u32 4294901760, %v95_v62  ;;  %v94_v5 = vld [vmem:[#allocation8 + $0x28] sm:$0xff] }
 0x10f   :  { %v9963_v9 = vpop.eup %9962  ;;  %v176_v10 = vmul.f32 %v9961_v6, %v171_v0  ;;  %vm182_vm2 = vweird.f32 %v9961_v6 }
 0x110   :  { %v186_v11 = vmul.f32 %v9963_v9, %v172_v1  ;;  %9964 = vrsqrt.f32 %v173_v7  ;;  %vm192_vm4 = vweird.f32 %v9963_v9  ;;  %vm183_vm6 = vmor %vm181_vm5, %vm182_vm2  ;;  %vm201_vm8 = vweird.f32 %v173_v7 }
 0x111   :  { %v177_v12 = vmul.f32 %v9961_v6, %v176_v10  ;;  %9966 = vrsqrt.f32 %v174_v8  ;;  %vm193_vm7 = vmor %vm191_vm3, %vm192_vm4  ;;  %vm211_vm12 = vweird.f32 %v174_v8  ;;  %vm2576_vm2 = vcmask 195584  }
 0x112   :  { %v187_v13 = vmul.f32 %v9963_v9, %v186_v11 }
 0x113   :  { %v178_v15 = vmul.f32 0.5, %v177_v12  ;;  %v226_v37 = vpop.permute.xlu2 %225  ;;  %v600_v12 = vsub.f32 %v95_v62, %v540_v4 }
 0x114   :  { %v188_v16 = vmul.f32 0.5, %v187_v13 }
 0x115   :  { %v179_v17 = vsub.f32 1.5, %v178_v15  ;;  %v542_v15 = vand.u32 4294901760, %v94_v5 }
 0x116   :  { %v9965_v18 = vpop.eup %9964  ;;  %v189_v21 = vsub.f32 1.5, %v188_v16 }
 0x117   :  { %v9967_v22 = vpop.eup %9966  ;;  %v180_v23 = vmul.f32 %v9961_v6, %v179_v17  ;;  %v196_v24 = vmul.f32 %v9965_v18, %v173_v7  ;;  %vm202_vm9 = vweird.f32 %v9965_v18 }
 0x118   :  { %v190_v25 = vmul.f32 %v9963_v9, %v189_v21  ;;  %v206_v26 = vmul.f32 %v9967_v22, %v174_v8  ;;  %vm212_vm10 = vweird.f32 %v9967_v22  ;;  %vm203_vm11 = vmor %vm201_vm8, %vm202_vm9 }
 0x119   :  { %v184_v27 = vsel %vm183_vm6, %v9961_v6, %v180_v23  ;;  %v197_v28 = vmul.f32 %v9965_v18, %v196_v24  ;;  %vm213_vm13 = vmor %vm211_vm12, %vm212_vm10  ;;  %v606_v23 = vsub.f32 %v94_v5, %v542_v15 }
 0x11a   :  { %v215_v31 = vmul.f32 %v184_v27, %v10257_v20  ;;  %v194_v32 = vsel %vm193_vm7, %v9963_v9, %v190_v25  ;;  %v207_v33 = vmul.f32 %v9967_v22, %v206_v26 }
 0x11b   :  { %v216_v34 = vmul.f32 %v194_v32, %v10255_v19  ;;  %v198_v36 = vmul.f32 0.5, %v197_v28  ;;  %v607_v27 = vand.u32 4294901760, %v606_v23 }
 0x11c   :  { %v208_v38 = vmul.f32 0.5, %v207_v33  ;;  %v220_v39 = vmul.f32 %v10277_v35, %v215_v31 }
 0x11d   :  { %v199_v40 = vsub.f32 1.5, %v198_v36  ;;  %v221_v41 = vmul.f32 %v10277_v35, %v216_v34  ;;  %v608_v34 = vsub.f32 %v606_v23, %v607_v27 }
 0x11e   :  { %v209_v42 = vsub.f32 1.5, %v208_v38  ;;  %v10289_v43 = vadd.f32 %v226_v37, %v220_v39 }
 0x11f   :  { %v200_v44 = vmul.f32 %v9965_v18, %v199_v40  ;;  %v10291_v20 = vadd.f32 %v226_v37, %v221_v41 }
 0x120   :  { %11729 = vst [vmem:[#allocation16_spill] sm:$0xff] %v10289_v43  ;;  %v210_v45 = vmul.f32 %v9967_v22, %v209_v42  ;;  %v234_v19 = vsel %vm123_vm0, %v10289_v43, 0 }
 0x121   :  { %11730 = vst [vmem:[#allocation17_spill] sm:$0xff] %v10291_v20  ;;  %v204_v46 = vsel %vm203_vm11, %v9965_v18, %v200_v44  ;;  %v237_v47 = vsel %vm123_vm0, %v10291_v20, 0  ;;  %v10297_v48 = vand.u32 4294901760, %v234_v19  ;;  %v601_v18 = vand.u32 4294901760, %v600_v12 }
 0x122   :  { %v217_v49 = vmul.f32 %v204_v46, %v10267_v29  ;;  %v214_v50 = vsel %vm213_vm13, %v9967_v22, %v210_v45  ;;  %v10300_v51 = vand.u32 4294901760, %v237_v47  ;;  %v122_v46 = vld [vmem:[#allocation8 + $0x108] sm:$0xff] }
 0x123   :  { %v218_v53 = vmul.f32 %v214_v50, %v10269_v30  ;;  %335 = vmatmul.f32.vlgmr.msra.gmra.mxu1 %v10297_v48  ;;  %v10305_v54 = vsub.f32 %v234_v19, %v10297_v48  ;;  %v10318_v30 = vsub.f32 %v97_v52, %v10307_v55  ;;  %v602_v26 = vsub.f32 %v600_v12, %v601_v18 }
 0x124   :  { %v222_v56 = vmul.f32 %v10277_v35, %v217_v49  ;;  %v10311_v57 = vsub.f32 %v237_v47, %v10300_v51  ;;  %682 = vmatpush.msra.mxu1 %v10307_v55  ;;  %v10414_v47 = vperm.slane %v122_v46, 0 }
 0x125   :  { %v223_v29 = vmul.f32 %v10277_v35, %v218_v53  ;;  %v10315_v59 = vand.u32 4294901760, %v10305_v54  ;;  %v589_v1 = vand.u32 4294901760, %v10318_v30  ;;  %v10328_v35 = vsub.f32 %v96_v58, %v538_v60 }
 0x126   :  { %v10321_v61 = vadd.f32 %v226_v37, %v222_v56  ;;  %684 = vmatpush.msra.mxu1 %v538_v60  ;;  %v10333_v3 = vand.u32 4294901760, %v10311_v57  ;;  %v603_v31 = vand.u32 4294901760, %v602_v26 }
 0x127   :  { %v10323_v63 = vadd.f32 %v226_v37, %v223_v29  ;;  %v268_v0 = vsub.f32 %v10305_v54, %v10315_v59  ;;  %v590_v9 = vsub.f32 %v10318_v30, %v589_v1  ;;  %v595_v11 = vand.u32 4294901760, %v10328_v35 }
 0x128   :  { %11731 = vst [vmem:[#allocation18_spill] sm:$0xff] %v10321_v61  ;;  %v240_v2 = vsel %vm123_vm0, %v10321_v61, 0  ;;  %686 = vmatpush.msra.mxu1 %v540_v4  ;;  %v276_v21 = vsub.f32 %v10311_v57, %v10333_v3  ;;  %v609_v37 = vand.u32 4294901760, %v608_v34 }
 0x129   :  { %11732 = vst [vmem:[#allocation19_spill] sm:$0xff] %v10323_v63  ;;  %v243_v6 = vsel %vm123_vm0, %v10323_v63, 0  ;;  %v10337_v7 = vand.u32 4294901760, %v240_v2  ;;  %v10339_v8 = vand.u32 4294901760, %v268_v0  ;;  %v591_v13 = vand.u32 4294901760, %v590_v9 }
 0x12a   :  { %v10344_v10 = vand.u32 4294901760, %v243_v6  ;;  %v596_v17 = vsub.f32 %v10328_v35, %v595_v11  ;;  %688 = vmatpush.msra.mxu1 %v542_v15  ;;  %v277_v32 = vand.u32 4294901760, %v276_v21 }
 0x12b   :  { %270 = vmatmul.f32.vlgmr.msra.gmra.mxu0 %v10339_v8  ;;  %339 = vmatmul.f32.gmra.mxu1 %v10300_v51  ;;  %v10358_v22 = vsub.f32 %v240_v2, %v10337_v7 }
 0x12c   :  { %347 = vmatmul.f32.vlgmr.msra.gmra.mxu3 %v10344_v10  ;;  %v10351_v16 = vsub.f32 %v243_v6, %v10344_v10  ;;  %640 = vmatpush.msra.mxu0 %v10318_v30  ;;  %v597_v25 = vand.u32 4294901760, %v596_v17 }
 0x12d   :  { %592 = vmatpush.msra.mxu3 %v591_v13  ;;  %v283_v33 = vand.u32 4294901760, %v10358_v22 }
 0x12e   :  { %v10361_v24 = vand.u32 4294901760, %v10351_v16  ;;  %643 = vmatpush.msra.mxu0 %v10328_v35 }
 0x12f   :  { %598 = vmatpush.msra.mxu3 %v597_v25  ;;  %v284_v38 = vsub.f32 %v10358_v22, %v283_v33 }
 0x130   :  { %v292_v28 = vsub.f32 %v10351_v16, %v10361_v24  ;;  %646 = vmatpush.msra.mxu0 %v600_v12 }
 0x131   :  { %604 = vmatpush.msra.mxu3 %v603_v31  ;;  %v285_v39 = vand.u32 4294901760, %v284_v38 }
 0x132   :  { %v293_v36 = vand.u32 4294901760, %v292_v28  ;;  %649 = vmatpush.msra.mxu0 %v606_v23 }
 0x133   :  { %278 = vmatmul.f32.gmra.mxu0 %v277_v32  ;;  %343 = vmatmul.f32.gmra.mxu1 %v10337_v7 }
 0x134   :  { %294 = vmatmul.f32.vlgmr.msra.gmra.mxu2 %v293_v36  ;;  %419 = vmatmul.f32.vlgmr.msrb.gmra.mxu3 %v10315_v59 }
 0x135   :  { %610 = vmatpush.msra.mxu3 %v609_v37  ;;  %537 = vmatpush.msra.mxu2 %v10307_v55 }
 0x137   :  { %768 = vmatpush.msrb.mxu3 %v10307_v55  ;;  %539 = vmatpush.msra.mxu2 %v538_v60 }
 0x139   :  { %770 = vmatpush.msrb.mxu3 %v538_v60  ;;  %541 = vmatpush.msra.mxu2 %v540_v4 }
 0x13b   :  { %772 = vmatpush.msrb.mxu3 %v540_v4  ;;  %286 = vmatmul.f32.gmra.mxu0 %v285_v39 }
 0x13c   :  { %507 = vmatmul.f32.vlgmr.msrb.gmra.mxu1 %v10297_v48  ;;  %377 = vmatmul.f32.vlgmr.msrb.gmra.mxu2 %v10305_v54 }
 0x13d   :  { %425 = vmatmul.f32.gmra.mxu3 %v10333_v3  ;;  %543 = vmatpush.msra.mxu2 %v542_v15 }
 0x13e   :  { %774 = vmatpush.msrb.mxu3 %v542_v15 }
 0x13f   :  { %727 = vmatpush.msrb.mxu2 %v589_v1 }
 0x141   :  { %731 = vmatpush.msrb.mxu2 %v595_v11 }
 0x143   :  { %735 = vmatpush.msrb.mxu2 %v601_v18  ;;  %470 = vmatmul.f32.vlgmr.msrb.gmra.mxu0 %v10297_v48 }
 0x144   :  { %511 = vmatmul.f32.gmra.mxu1 %v10300_v51  ;;  %382 = vmatmul.f32.gmra.mxu2 %v10311_v57 }
 0x145   :  { %431 = vmatmul.f32.gmra.mxu3 %v283_v33  ;;  %739 = vmatpush.msrb.mxu2 %v607_v27 }
 0x14b   :  { %474 = vmatmul.f32.gmra.mxu0 %v10300_v51 }
 0x14c   :  { %515 = vmatmul.f32.gmra.mxu1 %v10337_v7  ;;  %387 = vmatmul.f32.gmra.mxu2 %v10358_v22 }
 0x14d   :  { %437 = vmatmul.f32.gmra.mxu3 %v10361_v24 }
 0x153   :  { %478 = vmatmul.f32.gmra.mxu0 %v10337_v7 }
 0x154   :  { %519 = vmatmul.f32.gmra.mxu1 %v10344_v10  ;;  %392 = vmatmul.f32.gmra.mxu2 %v10351_v16 }
 0x155   :  { %612 = vmatmul.f32.vlgmr.msra.gmra.mxu3 %v10297_v48 }
 0x15b   :  { %482 = vmatmul.f32.gmra.mxu0 %v10344_v10 }
 0x15c   :  { %692 = vmatmul.f32.vlgmr.msra.gmra.mxu1 %v10315_v59  ;;  %549 = vmatmul.f32.vlgmr.msra.gmra.mxu2 %v10339_v8 }
 0x15d   :  { %615 = vmatmul.f32.gmra.mxu3 %v10300_v51 }
 0x163   :  { %652 = vmatmul.f32.vlgmr.msra.gmra.mxu0 %v10305_v54 }
 0x164   :  { %697 = vmatmul.f32.gmra.mxu1 %v10333_v3  ;;  %556 = vmatmul.f32.gmra.mxu2 %v277_v32 }
 0x165   :  { %619 = vmatmul.f32.gmra.mxu3 %v10337_v7 }
 0x16b   :  { %656 = vmatmul.f32.gmra.mxu0 %v10311_v57 }
 0x16c   :  { %703 = vmatmul.f32.gmra.mxu1 %v283_v33  ;;  %564 = vmatmul.f32.gmra.mxu2 %v285_v39 }
 0x16d   :  { %622 = vmatmul.f32.gmra.mxu3 %v10344_v10 }
 0x173   :  { %661 = vmatmul.f32.gmra.mxu0 %v10358_v22 }
 0x174   :  { %708 = vmatmul.f32.gmra.mxu1 %v10361_v24  ;;  %571 = vmatmul.f32.gmra.mxu2 %v293_v36 }
 0x175   :  { %776 = vmatmul.f32.vlgmr.msrb.gmra.mxu3 %v10297_v48 }
 0x17b   :  { %665 = vmatmul.f32.gmra.mxu0 %v10351_v16 }
 0x17c   :  { %741 = vmatmul.f32.vlgmr.msrb.gmra.mxu2 %v10297_v48 }
 0x17d   :  { %779 = vmatmul.f32.gmra.mxu3 %v10300_v51 }
 0x184   :  { %744 = vmatmul.f32.gmra.mxu2 %v10300_v51 }
 0x185   :  { %783 = vmatmul.f32.gmra.mxu3 %v10337_v7 }
 0x18c   :  { %748 = vmatmul.f32.gmra.mxu2 %v10337_v7 }
 0x18d   :  { %786 = vmatmul.f32.gmra.mxu3 %v10344_v10 }
 0x194   :  { %751 = vmatmul.f32.gmra.mxu2 %v10344_v10 }
 0x1a0   :  { %v336_v40 = vpop.f32.mrf.mxu1 }
 0x1a8   :  { %v271_v41 = vpop.f32.mrf.mxu0  ;;  %v10408_v42 = vpop.f32.mrf.mxu1 }
 0x1a9   :  { %v272_v52 = vadd.f32 %v271_v41, %v10414_v47 }
 0x1ab   :  { %v337_v53 = vadd.f32 %v336_v40, %v272_v52 }
 0x1af   :  { %v10410_v44 = vpop.f32.mrf.mxu3 }
 0x1b0   :  { %v10412_v45 = vpop.f32.mrf.mxu0  ;;  %v344_v19 = vpop.f32.mrf.mxu1 }
 0x1b7   :  { %v10416_v48 = vpop.f32.mrf.mxu2  ;;  %v420_v49 = vpop.f32.mrf.mxu3 }
 0x1b8   :  { %v287_v50 = vpop.f32.mrf.mxu0 }
 0x1b9   :  { %v508_v51 = vpop.f32.mrf.mxu1  ;;  %v288_v33 = vadd.f32 %v287_v50, %v10414_v47 }
 0x1bb   :  { %v345_v34 = vadd.f32 %v344_v19, %v288_v33 }
 0x1bf   :  { %v378_v54 = vpop.f32.mrf.mxu2 }
 0x1c0   :  { %v10419_v55 = vpop.f32.mrf.mxu3  ;;  %v379_v56 = vadd.f32 %v378_v54, %v337_v53  ;;  %v471_v57 = vpop.f32.mrf.mxu0 }
 0x1c1   :  { %v10421_v58 = vpop.f32.mrf.mxu1 }
 0x1c2   :  { %v421_v29 = vadd.f32 %v420_v49, %v379_v56 }
 0x1c4   :  { %v472_v59 = vadd.f32 %v471_v57, %v421_v29 }
 0x1c6   :  { %v10423_v30 = vadd.f32 %v508_v51, %v472_v59 }
 0x1c7   :  { %v10425_v60 = vpop.f32.mrf.mxu2 }
 0x1c8   :  { %v432_v62 = vpop.f32.mrf.mxu3  ;;  %795 = vrot.lane.b32.xlu2 %v10423_v30, %s10187_s8  ;;  %793 = vrot.lane.b32.xlu1 %v10423_v30, %s10188_s9  ;;  %v10431_v0 = vpop.f32.mrf.mxu0  ;;  %v938_v50 = vsel %vm937_vm14, %v10423_v30, 0 }
 0x1c9   :  { %v516_v1 = vpop.f32.mrf.mxu1  ;;  %791 = vrot.lane.b32.xlu0 %v10423_v30, %s10189_s10  ;;  %v957_v51 = vand.u32 4294901760, %v938_v50 }
 0x1cb   :  { %v958_v52 = vsub.f32 %v938_v50, %v957_v51 }
 0x1cd   :  { %v959_v54 = vand.u32 4294901760, %v958_v52 }
 0x1cf   :  { %v388_v35 = vpop.f32.mrf.mxu2  ;;  %v960_v56 = vsub.f32 %v958_v52, %v959_v54 }
 0x1d0   :  { %v10435_v2 = vpop.f32.mrf.mxu3  ;;  %v479_v3 = vpop.f32.mrf.mxu0  ;;  %v389_v36 = vadd.f32 %v388_v35, %v345_v34 }
 0x1d1   :  { %v10437_v4 = vpop.f32.mrf.mxu1  ;;  %797 = vrot.lane.b32.xlu0 %v10423_v30, %s10186_s3  ;;  %v961_v59 = vand.u32 4294901760, %v960_v56 }
 0x1d2   :  { %11733 = vst [vmem:[#allocation20_spill] sm:$0xff] %v10437_v4  ;;  %v433_v37 = vadd.f32 %v432_v62, %v389_v36 }
 0x1d4   :  { %v480_v40 = vadd.f32 %v479_v3, %v433_v37 }
 0x1d6   :  { %v10476_v41 = vadd.f32 %v516_v1, %v480_v40 }
 0x1d7   :  { %v10441_v5 = vpop.f32.mrf.mxu2 }
 0x1d8   :  { %v613_v6 = vpop.f32.mrf.mxu3  ;;  %v10443_v7 = vpop.f32.mrf.mxu0 }
 0x1d9   :  { %11734 = vst [vmem:[#allocation21_spill] sm:$0xff] %v10443_v7  ;;  %v693_v8 = vpop.f32.mrf.mxu1 }
 0x1df   :  { %v550_v9 = vpop.f32.mrf.mxu2 }
 0x1e0   :  { %v10445_v10 = vpop.f32.mrf.mxu3  ;;  %v653_v11 = vpop.f32.mrf.mxu0 }
 0x1e1   :  { %v10447_v12 = vpop.f32.mrf.mxu1 }
 0x1e7   :  { %v10449_v13 = vpop.f32.mrf.mxu2 }
 0x1e8   :  { %v620_v15 = vpop.f32.mrf.mxu3  ;;  %v10451_v16 = vpop.f32.mrf.mxu0 }
 0x1e9   :  { %v704_v17 = vpop.f32.mrf.mxu1  ;;  %v10496_v15 = vld [vmem:[#allocation5] sm:$0xff] }
 0x1ef   :  { %v565_v18 = vpop.f32.mrf.mxu2 }
 0x1f0   :  { %v10453_v21 = vpop.f32.mrf.mxu3  ;;  %v662_v22 = vpop.f32.mrf.mxu0 }
 0x1f1   :  { %11735 = vst [vmem:[#allocation22_spill] sm:$0xff] %v10453_v21  ;;  %v10490_v8 = vpop.f32.mrf.mxu1 }
 0x1f2   :  { %11738 = vst [vmem:[#allocation25_spill] sm:$0xff] %v10490_v8 }
 0x1f7   :  { %v10455_v23 = vpop.f32.mrf.mxu2 }
 0x1f8   :  { %11736 = vst [vmem:[#allocation23_spill] sm:$0xff] %v10455_v23  ;;  %v777_v24 = vpop.f32.mrf.mxu3  ;;  %v10488_v6 = vpop.f32.mrf.mxu0 }
 0x1f9   :  { %11737 = vst [vmem:[#allocation24_spill] sm:$0xff] %v10488_v6 }
 0x1ff   :  { %v742_v25 = vpop.f32.mrf.mxu2 }
 0x200   :  { %v10457_v26 = vpop.f32.mrf.mxu3 }
 0x207   :  { %v10459_v27 = vpop.f32.mrf.mxu2 }
 0x208   :  { %v784_v28 = vpop.f32.mrf.mxu3 }
 0x20f   :  { %v749_v31 = vpop.f32.mrf.mxu2 }
 0x210   :  { %v10494_v11 = vpop.f32.mrf.mxu3 }
 0x211   :  { %11740 = vst [vmem:[#allocation27_spill] sm:$0xff] %v10494_v11 }
 0x217   :  { %v10492_v9 = vpop.f32.mrf.mxu2 }
 0x218   :  { %11739 = vst [vmem:[#allocation26_spill] sm:$0xff] %v10492_v9 }
 0x222   :  { %v10461_v32 = vpop.permute.xlu2 %795 }
 0x223   :  { %803 = vrot.lane.b32.xlu0 %v10461_v32, %s10186_s3 }
 0x23a   :  { %v10466_v38 = vpop.permute.xlu1 %793 }
 0x23b   :  { %v10468_v39 = vpop.permute.xlu0 %791  ;;  %801 = vrot.lane.b32.xlu1 %v10466_v38, %s10186_s3 }
 0x23c   :  { %1576 = vrot.lane.b32.xlu0 %v10468_v39, %s10190_s11  ;;  %799 = vrot.lane.b32.xlu2 %v10468_v39, %s10186_s3  ;;  %v1086_v50 = vsel %vm937_vm14, %v10468_v39, 0 }
 0x243   :  { %2579 = vrot.lane.b32.xlu1 %v10476_v41, %s10189_s10  ;;  %v798_v19 = vpop.permute.xlu0 %797 }
 0x262   :  { %809 = vxpose.xlu2.b32.start.end [1/1] (short) (narrow) %v798_v19, 8 }
 0x295   :  { %v804_v49 = vpop.permute.xlu0 %803 }
 0x296   :  { %v800_v53 = vpop.permute.xlu2 %799 }
 0x2ad   :  { %v802_v46 = vpop.permute.xlu1 %801 }
 0x2ae   :  { %873 = vxpose.xlu0.b32.start.end [1/1] (short) (narrow) %v802_v46, 8  ;;  %v10505_v46 = vpop.permute.xlu0 %1576 }
 0x2b6   :  { %905 = vxpose.xlu0.b32.start.end [1/1] (short) (narrow) %v804_v49, 8 }
 0x2cb   :  { %1574 = vrot.lane.b32.xlu2 %v10423_v30, %s10190_s11 }
 0x2d3   :  { %1578 = vrot.lane.b32.xlu2 %v10466_v38, %s10190_s11 }
 0x2db   :  { %1580 = vrot.lane.b32.xlu2 %v10461_v32, %s10190_s11 }
 0x2fb   :  { %v825_v57 = vpop.trf.xlu2 }
 0x2fc   :  { %v955_v29 = vand.u32 4294901760, %v825_v57 }
 0x2fe   :  { %v982_v62 = vsub.f32 %v825_v57, %v955_v29  ;;  %956 = vmatpush.msrb.mxu0 %v955_v29  ;;  %1032 = vmatpush.msra.mxu3 %v955_v29 }
 0x2ff   :  { %962 = vmatmul.f32.vlgmr.msrb.gmra.mxu0 %v961_v59  ;;  %1036 = vmatmul.f32.vlgmr.msra.gmra.mxu3 %v959_v54 }
 0x300   :  { %v983_v1 = vand.u32 4294901760, %v982_v62  ;;  %1009 = vmatpush.msra.mxu2 %v982_v62 }
 0x301   :  { %1012 = vmatmul.f32.vlgmr.msra.gmra.mxu2 %v958_v52 }
 0x302   :  { %v984_v35 = vsub.f32 %v982_v62, %v983_v1  ;;  %1058 = vmatpush.msra.mxu0 %v983_v1 }
 0x304   :  { %v985_v3 = vand.u32 4294901760, %v984_v35 }
 0x306   :  { %986 = vmatpush.msrb.mxu1 %v985_v3 }
 0x307   :  { %988 = vmatmul.f32.vlgmr.msrb.gmra.mxu1 %v957_v51  ;;  %1060 = vmatmul.f32.vlgmr.msra.gmra.mxu0 %v957_v51 }
 0x308   :  { %1080 = vmatpush.msra.mxu1 %v955_v29  ;;  %v1234_v29 = vsel %vm937_vm14, %v10466_v38, 0 }
 0x309   :  { %v1253_v1 = vand.u32 4294901760, %v1234_v29 }
 0x30f   :  { %1082 = vmatmul.f32.vlgmr.msra.gmra.mxu1 %v957_v51  ;;  %v10509_v51 = vpop.permute.xlu1 %2579 }
 0x325   :  { %v1575_v30 = vpop.permute.xlu2 %1574 }
 0x326   :  { %1586 = vxpose.xlu1.b32.start.end [1/1] (short) (narrow) %v1575_v30, 8 }
 0x32e   :  { %841 = vxpose.xlu1.b32.start.end [1/1] (short) (narrow) %v800_v53, 8  ;;  %v1105_v53 = vand.u32 4294901760, %v1086_v50 }
 0x330   :  { %v1106_v56 = vsub.f32 %v1086_v50, %v1105_v53 }
 0x332   :  { %v1107_v62 = vand.u32 4294901760, %v1106_v56 }
 0x334   :  { %v1108_v3 = vsub.f32 %v1106_v56, %v1107_v62 }
 0x352   :  { %v889_v49 = vpop.trf.xlu0 }
 0x353   :  { %v1251_v52 = vand.u32 4294901760, %v889_v49 }
 0x355   :  { %v1278_v54 = vsub.f32 %v889_v49, %v1251_v52 }
 0x357   :  { %v1279_v59 = vand.u32 4294901760, %v1278_v54 }
 0x359   :  { %v1280_v35 = vsub.f32 %v1278_v54, %v1279_v59 }
 0x35a   :  { %v921_v30 = vpop.trf.xlu0 }
 0x37c   :  { %v963_v17 = vpop.f32.mrf.mxu0 }
 0x37d   :  { %v964_v18 = vadd.f32 %v963_v17, %v10496_v15  ;;  %v1254_v17 = vsub.f32 %v1234_v29, %v1253_v1 }
 0x382   :  { %v1037_v31 = vpop.f32.mrf.mxu3 }
 0x384   :  { %v989_v22 = vpop.f32.mrf.mxu1  ;;  %v1013_v25 = vpop.f32.mrf.mxu2 }
 0x385   :  { %v990_v24 = vadd.f32 %v989_v22, %v964_v18  ;;  %v1061_v34 = vpop.f32.mrf.mxu0  ;;  %v1281_v22 = vand.u32 4294901760, %v1280_v35 }
 0x387   :  { %v1014_v28 = vadd.f32 %v1013_v25, %v990_v24  ;;  %v1399_v24 = vand.u32 4294901760, %v921_v30  ;;  %v1109_v25 = vand.u32 4294901760, %v1108_v3  ;;  %v10517_v3 = vpop.permute.xlu2 %1578 }
 0x388   :  { %2581 = vrot.lane.b32.xlu1 %v10476_v41, %s10188_s9 }
 0x389   :  { %v1038_v33 = vadd.f32 %v1037_v31, %v1014_v28  ;;  %v1255_v31 = vand.u32 4294901760, %v1254_v17 }
 0x38b   :  { %v1062_v36 = vadd.f32 %v1061_v34, %v1038_v33  ;;  %v1426_v33 = vsub.f32 %v921_v30, %v1399_v24  ;;  %v1382_v34 = vsel %vm937_vm14, %v10461_v32, 0 }
 0x38c   :  { %v1083_v37 = vpop.f32.mrf.mxu1  ;;  %v1401_v50 = vand.u32 4294901760, %v1382_v34 }
 0x38d   :  { %v10501_v40 = vadd.f32 %v1083_v37, %v1062_v36  ;;  %v1256_v37 = vsub.f32 %v1254_v17, %v1255_v31  ;;  %v1427_v49 = vand.u32 4294901760, %v1426_v33 }
 0x38f   :  { %v1530_v19 = vsel %vm937_vm14, %v10501_v40, -inf  ;;  %v1257_v29 = vand.u32 4294901760, %v1256_v37 }
 0x390   :  { %1531 = vmax.xlane.f32.xlu2 %v1530_v19 }
 0x3ca   :  { %v10511_v57 = vpop.trf.xlu1 }
 0x3d2   :  { %v857_v18 = vpop.trf.xlu1 }
 0x3d3   :  { %v1103_v39 = vand.u32 4294901760, %v857_v18 }
 0x3d5   :  { %v1130_v28 = vsub.f32 %v857_v18, %v1103_v39  ;;  %1104 = vmatpush.msrb.mxu2 %v1103_v39  ;;  %1180 = vmatpush.msrb.mxu1 %v1103_v39 }
 0x3d6   :  { %1110 = vmatmul.f32.vlgmr.msrb.gmra.mxu2 %v1109_v25  ;;  %1184 = vmatmul.f32.vlgmr.msrb.gmra.mxu1 %v1107_v62  ;;  %v1402_v62 = vsub.f32 %v1382_v34, %v1401_v50 }
 0x3d7   :  { %1157 = vmatpush.msrb.mxu0 %v1130_v28  ;;  %v1131_v38 = vand.u32 4294901760, %v1130_v28  ;;  %1282 = vmatpush.msra.mxu1 %v1281_v22 }
 0x3d8   :  { %1160 = vmatmul.f32.vlgmr.msrb.gmra.mxu0 %v1106_v56  ;;  %v1428_v56 = vsub.f32 %v1426_v33, %v1427_v49  ;;  %v1403_v35 = vand.u32 4294901760, %v1402_v62 }
 0x3d9   :  { %1376 = vmatpush.msrb.mxu1 %v1251_v52  ;;  %1206 = vmatpush.msra.mxu2 %v1131_v38  ;;  %v1132_v36 = vsub.f32 %v1130_v28, %v1131_v38 }
 0x3da   :  { %1252 = vmatpush.msra.mxu0 %v1251_v52  ;;  %v1429_v32 = vand.u32 4294901760, %v1428_v56 }
 0x3db   :  { %1305 = vmatpush.msrb.mxu2 %v1278_v54  ;;  %v1133_v19 = vand.u32 4294901760, %v1132_v36  ;;  %v1404_v54 = vsub.f32 %v1402_v62, %v1403_v35 }
 0x3dc   :  { %1354 = vmatpush.msrb.mxu0 %v1279_v59 }
 0x3dd   :  { %1134 = vmatpush.msrb.mxu3 %v1133_v19  ;;  %v1405_v59 = vand.u32 4294901760, %v1404_v54 }
 0x3de   :  { %1136 = vmatmul.f32.vlgmr.msrb.gmra.mxu3 %v1105_v53  ;;  %1208 = vmatmul.f32.vlgmr.msra.gmra.mxu2 %v1105_v53 }
 0x3df   :  { %1228 = vmatpush.msra.mxu3 %v1103_v39  ;;  %1284 = vmatmul.f32.vlgmr.msra.gmra.mxu1 %v1253_v1 }
 0x3e0   :  { %1258 = vmatmul.f32.vlgmr.msra.gmra.mxu0 %v1257_v29  ;;  %1400 = vmatpush.msra.mxu2 %v1399_v24 }
 0x3e1   :  { %1328 = vmatpush.msrb.mxu3 %v1251_v52  ;;  %1476 = vmatpush.msra.mxu1 %v1399_v24  ;;  %v10519_v52 = vpop.permute.xlu2 %1580 }
 0x3e2   :  { %1453 = vmatpush.msra.mxu0 %v1426_v33 }
 0x3e6   :  { %1230 = vmatmul.f32.vlgmr.msra.gmra.mxu3 %v1105_v53  ;;  %1308 = vmatmul.f32.vlgmr.msrb.gmra.mxu2 %v1254_v17 }
 0x3e7   :  { %1378 = vmatmul.f32.vlgmr.msrb.gmra.mxu1 %v1253_v1  ;;  %1430 = vmatpush.msra.mxu3 %v1429_v32 }
 0x3e8   :  { %1356 = vmatmul.f32.vlgmr.msrb.gmra.mxu0 %v1253_v1  ;;  %1502 = vmatpush.msrb.mxu2 %v1427_v49 }
 0x3ee   :  { %1332 = vmatmul.f32.vlgmr.msrb.gmra.mxu3 %v1255_v31  ;;  %1406 = vmatmul.f32.vlgmr.msra.gmra.mxu2 %v1405_v59 }
 0x3ef   :  { %1480 = vmatmul.f32.vlgmr.msra.gmra.mxu1 %v1403_v35  ;;  %1524 = vmatpush.msrb.mxu3 %v1399_v24 }
 0x3f0   :  { %1456 = vmatmul.f32.vlgmr.msra.gmra.mxu0 %v1402_v62 }
 0x3f6   :  { %1432 = vmatmul.f32.vlgmr.msra.gmra.mxu3 %v1401_v50  ;;  %1504 = vmatmul.f32.vlgmr.msrb.gmra.mxu2 %v1401_v50 }
 0x3fe   :  { %1526 = vmatmul.f32.vlgmr.msrb.gmra.mxu3 %v1401_v50 }
 0x403   :  { %v1532_v53 = vpop.xlane.xlu2 %1531 }
 0x404   :  { %v1542_v30 = vsub.f32 %v10501_v40, %v1532_v53 }
 0x406   :  { %v1546_v17 = vmul.f32 1.442695, %v1542_v30 }
 0x408   :  { %9968 = vpow2.f32 %v1546_v17 }
 0x40e   :  { %v9969_v1 = vpop.eup %9968 }
 0x40f   :  { %v1554_v18 = vsel %vm937_vm14, %v9969_v1, 0.0 }
 0x410   :  { %1555 = vadd.xlane.f32.xlu1 %v1554_v18 }
 0x453   :  { %v1185_v24 = vpop.f32.mrf.mxu1 }
 0x455   :  { %v1161_v22 = vpop.f32.mrf.mxu0 }
 0x459   :  { %v1111_v39 = vpop.f32.mrf.mxu2 }
 0x45a   :  { %v1112_v25 = vadd.f32 %v1111_v39, %v10496_v15 }
 0x45c   :  { %v1285_v19 = vpop.f32.mrf.mxu1 }
 0x45d   :  { %v1259_v36 = vpop.f32.mrf.mxu0 }
 0x45e   :  { %v1260_v49 = vadd.f32 %v1259_v36, %v10496_v15 }
 0x460   :  { %v1286_v62 = vadd.f32 %v1285_v19, %v1260_v49 }
 0x461   :  { %v1137_v28 = vpop.f32.mrf.mxu3  ;;  %v1209_v31 = vpop.f32.mrf.mxu2 }
 0x462   :  { %v1138_v38 = vadd.f32 %v1137_v28, %v1112_v25  ;;  %v10528_v28 = vpop.permute.xlu1 %2581 }
 0x464   :  { %v1162_v33 = vadd.f32 %v1161_v22, %v1138_v38  ;;  %v1379_v53 = vpop.f32.mrf.mxu1 }
 0x465   :  { %v1357_v35 = vpop.f32.mrf.mxu0 }
 0x466   :  { %v1186_v34 = vadd.f32 %v1185_v24, %v1162_v33 }
 0x468   :  { %v1210_v37 = vadd.f32 %v1209_v31, %v1186_v34  ;;  %v1715_v34 = vsel %vm937_vm14, %v10511_v57, 0 }
 0x469   :  { %v1231_v40 = vpop.f32.mrf.mxu3  ;;  %v1309_v29 = vpop.f32.mrf.mxu2 }
 0x46a   :  { %v1232_v50 = vadd.f32 %v1231_v40, %v1210_v37  ;;  %v1310_v32 = vadd.f32 %v1309_v29, %v1286_v62  ;;  %v1737_v40 = vand.u32 4294901760, %v1715_v34 }
 0x46c   :  { %v1533_v56 = vsel %vm937_vm14, %v1232_v50, -inf  ;;  %v1481_v33 = vpop.f32.mrf.mxu1  ;;  %v1738_v62 = vsub.f32 %v1715_v34, %v1737_v40 }
 0x46d   :  { %1534 = vmax.xlane.f32.xlu0 %v1533_v56  ;;  %v1457_v31 = vpop.f32.mrf.mxu0 }
 0x471   :  { %v1333_v54 = vpop.f32.mrf.mxu3  ;;  %v1407_v17 = vpop.f32.mrf.mxu2 }
 0x472   :  { %v1334_v59 = vadd.f32 %v1333_v54, %v1310_v32  ;;  %v1408_v39 = vadd.f32 %v1407_v17, %v10496_v15  ;;  %v1739_v32 = vand.u32 4294901760, %v1738_v62 }
 0x474   :  { %v1358_v30 = vadd.f32 %v1357_v35, %v1334_v59  ;;  %v1740_v59 = vsub.f32 %v1738_v62, %v1739_v32 }
 0x476   :  { %v1380_v18 = vadd.f32 %v1379_v53, %v1358_v30  ;;  %v1741_v17 = vand.u32 4294901760, %v1740_v59 }
 0x478   :  { %v1536_v22 = vsel %vm937_vm14, %v1380_v18, -inf }
 0x479   :  { %v1433_v24 = vpop.f32.mrf.mxu3  ;;  %1537 = vmax.xlane.f32.xlu1 %v1536_v22  ;;  %v1505_v37 = vpop.f32.mrf.mxu2 }
 0x47a   :  { %v1434_v25 = vadd.f32 %v1433_v24, %v1408_v39 }
 0x47c   :  { %v1458_v38 = vadd.f32 %v1457_v31, %v1434_v25 }
 0x47e   :  { %v1482_v36 = vadd.f32 %v1481_v33, %v1458_v38 }
 0x480   :  { %v1506_v19 = vadd.f32 %v1505_v37, %v1482_v36 }
 0x481   :  { %v1527_v49 = vpop.f32.mrf.mxu3 }
 0x482   :  { %v1528_v29 = vadd.f32 %v1527_v49, %v1506_v19 }
 0x483   :  { %v1556_v15 = vpop.xlane.xlu1 %1555 }
 0x484   :  { %9970 = vrcp.f32 %v1556_v15  ;;  %v1539_v56 = vsel %vm937_vm14, %v1528_v29, -inf }
 0x485   :  { %1540 = vmax.xlane.f32.xlu1 %v1539_v56 }
 0x48a   :  { %v9971_v35 = vpop.eup %9970 }
 0x48b   :  { %v1570_v54 = vmul.f32 %v9971_v35, %v9969_v1 }
 0x48d   :  { %v1718_v53 = vsel %vm937_vm14, %v1570_v54, 0 }
 0x48e   :  { %v1735_v30 = vand.u32 4294901760, %v1718_v53 }
 0x490   :  { %1736 = vmatpush.xpose.msrb.mxu0 %v1735_v30  ;;  %1812 = vmatpush.xpose.msra.mxu3 %v1735_v30  ;;  %v1762_v57 = vsub.f32 %v1718_v53, %v1735_v30 }
 0x492   :  { %1789 = vmatpush.xpose.msra.mxu2 %v1762_v57  ;;  %v1763_v39 = vand.u32 4294901760, %v1762_v57 }
 0x493   :  { %1742 = vmatmul.f32.vlgmr.msrb.gmra.mxu0 %v1741_v17  ;;  %1816 = vmatmul.f32.vlgmr.msra.gmra.mxu3 %v1739_v32 }
 0x494   :  { %1838 = vmatpush.xpose.msra.mxu0 %v1763_v39  ;;  %v1764_v22 = vsub.f32 %v1762_v57, %v1763_v39 }
 0x495   :  { %1792 = vmatmul.f32.vlgmr.msra.gmra.mxu2 %v1738_v62 }
 0x496   :  { %v1765_v24 = vand.u32 4294901760, %v1764_v22 }
 0x498   :  { %1766 = vmatpush.xpose.msrb.mxu1 %v1765_v24 }
 0x49b   :  { %1768 = vmatmul.f32.vlgmr.msrb.gmra.mxu1 %v1737_v40  ;;  %1840 = vmatmul.f32.vlgmr.msra.gmra.mxu0 %v1737_v40 }
 0x49c   :  { %1860 = vmatpush.xpose.msra.mxu1 %v1735_v30 }
 0x4a3   :  { %1862 = vmatmul.f32.vlgmr.msra.gmra.mxu1 %v1737_v40 }
 0x4e0   :  { %v1535_v1 = vpop.xlane.xlu0 %1534 }
 0x4e1   :  { %v1543_v25 = vsub.f32 %v1232_v50, %v1535_v1 }
 0x4e3   :  { %v1548_v31 = vmul.f32 1.442695, %v1543_v25 }
 0x4e5   :  { %9972 = vpow2.f32 %v1548_v31 }
 0x4eb   :  { %v9973_v38 = vpop.eup %9972 }
 0x4ec   :  { %v1538_v33 = vpop.xlane.xlu1 %1537  ;;  %v1557_v34 = vsel %vm937_vm14, %v9973_v38, 0.0 }
 0x4ed   :  { %v1544_v36 = vsub.f32 %v1380_v18, %v1538_v33  ;;  %1558 = vadd.xlane.f32.xlu1 %v1557_v34 }
 0x4ef   :  { %v1550_v37 = vmul.f32 1.442695, %v1544_v36 }
 0x4f1   :  { %9974 = vpow2.f32 %v1550_v37 }
 0x4f7   :  { %v9975_v19 = vpop.eup %9974 }
 0x4f8   :  { %v1541_v49 = vpop.xlane.xlu1 %1540  ;;  %v1560_v15 = vsel %vm937_vm14, %v9975_v19, 0.0 }
 0x4f9   :  { %v1545_v56 = vsub.f32 %v1528_v29, %v1541_v49  ;;  %1561 = vadd.xlane.f32.xlu0 %v1560_v15 }
 0x4fb   :  { %v1552_v62 = vmul.f32 1.442695, %v1545_v56 }
 0x4fd   :  { %9976 = vpow2.f32 %v1552_v62 }
 0x503   :  { %v9977_v40 = vpop.eup %9976 }
 0x504   :  { %v1563_v50 = vsel %vm937_vm14, %v9977_v40, 0.0 }
 0x505   :  { %1564 = vadd.xlane.f32.xlu2 %v1563_v50 }
 0x522   :  { %1650 = vxpose.xlu0.b32.start.end [1/1] (short) (narrow) %v10517_v3, 8 }
 0x527   :  { %1682 = vxpose.xlu1.b32.start.end [1/1] (short) (narrow) %v10519_v52, 8 }
 0x52e   :  { %1618 = vxpose.xlu2.b32.start.end [1/1] (short) (narrow) %v10505_v46, 8 }
 0x560   :  { %v1559_v18 = vpop.xlane.xlu1 %1558 }
 0x561   :  { %9978 = vrcp.f32 %v1559_v18 }
 0x567   :  { %v9979_v32 = vpop.eup %9978 }
 0x568   :  { %v1571_v35 = vmul.f32 %v9979_v32, %v9973_v38 }
 0x56a   :  { %v1870_v54 = vsel %vm937_vm14, %v1571_v35, 0 }
 0x56b   :  { %v1887_v29 = vand.u32 4294901760, %v1870_v54 }
 0x56c   :  { %v1562_v59 = vpop.xlane.xlu0 %1561 }
 0x56d   :  { %9980 = vrcp.f32 %v1562_v59  ;;  %1888 = vmatpush.xpose.msrb.mxu2 %v1887_v29  ;;  %1964 = vmatpush.xpose.msrb.mxu1 %v1887_v29  ;;  %v1914_v53 = vsub.f32 %v1870_v54, %v1887_v29 }
 0x56f   :  { %1941 = vmatpush.xpose.msrb.mxu0 %v1914_v53  ;;  %v1915_v30 = vand.u32 4294901760, %v1914_v53 }
 0x571   :  { %1990 = vmatpush.xpose.msra.mxu2 %v1915_v30  ;;  %v1916_v3 = vsub.f32 %v1914_v53, %v1915_v30 }
 0x573   :  { %v9981_v57 = vpop.eup %9980  ;;  %v1917_v52 = vand.u32 4294901760, %v1916_v3 }
 0x574   :  { %v1572_v17 = vmul.f32 %v9981_v57, %v9975_v19 }
 0x575   :  { %1918 = vmatpush.xpose.msrb.mxu3 %v1917_v52 }
 0x576   :  { %v2022_v46 = vsel %vm937_vm14, %v1572_v17, 0 }
 0x577   :  { %v2039_v39 = vand.u32 4294901760, %v2022_v46 }
 0x578   :  { %v1565_v31 = vpop.xlane.xlu2 %1564 }
 0x579   :  { %2012 = vmatpush.xpose.msra.mxu3 %v1887_v29  ;;  %2040 = vmatpush.xpose.msra.mxu0 %v2039_v39  ;;  %v2066_v22 = vsub.f32 %v2022_v46, %v2039_v39  ;;  %9982 = vrcp.f32 %v1565_v31 }
 0x57b   :  { %v2067_v24 = vand.u32 4294901760, %v2066_v22 }
 0x57d   :  { %v2068_v1 = vsub.f32 %v2066_v22, %v2067_v24 }
 0x57f   :  { %v2069_v25 = vand.u32 4294901760, %v2068_v1  ;;  %v9983_v38 = vpop.eup %9982 }
 0x580   :  { %v1573_v33 = vmul.f32 %v9983_v38, %v9977_v40 }
 0x581   :  { %2589 = vrot.lane.b32.xlu1 %v10528_v28, %s10186_s3  ;;  %2070 = vmatpush.xpose.msra.mxu1 %v2069_v25 }
 0x582   :  { %v2174_v34 = vsel %vm937_vm14, %v1573_v33, 0 }
 0x583   :  { %v2191_v36 = vand.u32 4294901760, %v2174_v34 }
 0x585   :  { %v2218_v37 = vsub.f32 %v2174_v34, %v2191_v36  ;;  %v10564_v34 = vpop.f32.mrf.mxu0 }
 0x587   :  { %v2219_v32 = vand.u32 4294901760, %v2218_v37 }
 0x589   :  { %3361 = vrot.lane.b32.xlu1 %v10476_v41, %s10190_s11  ;;  %v2220_v3 = vsub.f32 %v2218_v37, %v2219_v32 }
 0x58b   :  { %v2221_v25 = vand.u32 4294901760, %v2220_v3 }
 0x590   :  { %2583 = vrot.lane.b32.xlu0 %v10476_v41, %s10187_s8 }
 0x598   :  { %2585 = vrot.lane.b32.xlu0 %v10476_v41, %s10186_s3 }
 0x5a0   :  { %2587 = vrot.lane.b32.xlu0 %v10509_v51, %s10186_s3 }
 0x5a8   :  { %3365 = vrot.lane.b32.xlu0 %v10528_v28, %s10190_s11 }
 0x5c6   :  { %v1666_v19 = vpop.trf.xlu0 }
 0x5c7   :  { %v1634_v49 = vpop.trf.xlu2  ;;  %v2019_v15 = vsel %vm937_vm14, %v1666_v19, 0  ;;  %v10570_v19 = vpop.f32.mrf.mxu0 }
 0x5c8   :  { %v1867_v56 = vsel %vm937_vm14, %v1634_v49, 0  ;;  %v2041_v62 = vand.u32 4294901760, %v2019_v15  ;;  %v10572_v49 = vpop.f32.mrf.mxu2 }
 0x5c9   :  { %v1889_v50 = vand.u32 4294901760, %v1867_v56 }
 0x5ca   :  { %v2042_v18 = vsub.f32 %v2019_v15, %v2041_v62 }
 0x5cb   :  { %v1890_v35 = vsub.f32 %v1867_v56, %v1889_v50  ;;  %1920 = vmatmul.f32.vlgmr.msrb.gmra.mxu3 %v1889_v50  ;;  %v1698_v54 = vpop.trf.xlu1 }
 0x5cc   :  { %v2043_v29 = vand.u32 4294901760, %v2042_v18  ;;  %2116 = vmatpush.xpose.msrb.mxu3 %v2039_v39  ;;  %v2171_v40 = vsel %vm937_vm14, %v1698_v54, 0 }
 0x5cd   :  { %v1891_v59 = vand.u32 4294901760, %v1890_v35  ;;  %1944 = vmatmul.f32.vlgmr.msrb.gmra.mxu0 %v1890_v35  ;;  %v2193_v53 = vand.u32 4294901760, %v2171_v40 }
 0x5ce   :  { %v2044_v30 = vsub.f32 %v2042_v18, %v2043_v29  ;;  %2142 = vmatpush.xpose.msrb.mxu0 %v2067_v24 }
 0x5cf   :  { %v1892_v57 = vsub.f32 %v1890_v35, %v1891_v59  ;;  %1968 = vmatmul.f32.vlgmr.msrb.gmra.mxu1 %v1891_v59  ;;  %v2194_v52 = vsub.f32 %v2171_v40, %v2193_v53 }
 0x5d0   :  { %2164 = vmatpush.xpose.msrb.mxu1 %v2039_v39  ;;  %v2045_v46 = vand.u32 4294901760, %v2044_v30 }
 0x5d1   :  { %v1893_v17 = vand.u32 4294901760, %v1892_v57  ;;  %v2195_v1 = vand.u32 4294901760, %v2194_v52 }
 0x5d3   :  { %1894 = vmatmul.f32.vlgmr.msrb.gmra.mxu2 %v1893_v17  ;;  %2014 = vmatmul.f32.vlgmr.msra.gmra.mxu3 %v1889_v50  ;;  %v2196_v31 = vsub.f32 %v2194_v52, %v2195_v1 }
 0x5d4   :  { %2093 = vmatpush.xpose.msrb.mxu2 %v2066_v22  ;;  %2222 = vmatpush.xpose.msra.mxu3 %v2221_v25 }
 0x5d5   :  { %2046 = vmatmul.f32.vlgmr.msra.gmra.mxu0 %v2045_v46  ;;  %v2197_v56 = vand.u32 4294901760, %v2196_v31 }
 0x5d6   :  { %2245 = vmatpush.xpose.msra.mxu0 %v2218_v37  ;;  %v10568_v37 = vpop.f32.mrf.mxu3 }
 0x5d7   :  { %2072 = vmatmul.f32.vlgmr.msra.gmra.mxu1 %v2041_v62 }
 0x5d8   :  { %2268 = vmatpush.xpose.msra.mxu1 %v2191_v36 }
 0x5db   :  { %1992 = vmatmul.f32.vlgmr.msra.gmra.mxu2 %v1889_v50  ;;  %2120 = vmatmul.f32.vlgmr.msrb.gmra.mxu3 %v2043_v29 }
 0x5dc   :  { %2192 = vmatpush.xpose.msra.mxu2 %v2191_v36  ;;  %2316 = vmatpush.xpose.msrb.mxu3 %v2191_v36  ;;  %v10566_v36 = vpop.f32.mrf.mxu1 }
 0x5dd   :  { %2144 = vmatmul.f32.vlgmr.msrb.gmra.mxu0 %v2041_v62 }
 0x5df   :  { %2166 = vmatmul.f32.vlgmr.msrb.gmra.mxu1 %v2041_v62 }
 0x5e3   :  { %2096 = vmatmul.f32.vlgmr.msrb.gmra.mxu2 %v2042_v18  ;;  %2224 = vmatmul.f32.vlgmr.msra.gmra.mxu3 %v2193_v53 }
 0x5e4   :  { %2294 = vmatpush.xpose.msrb.mxu2 %v2219_v32  ;;  %v10574_v15 = vpop.f32.mrf.mxu1 }
 0x5e5   :  { %2248 = vmatmul.f32.vlgmr.msra.gmra.mxu0 %v2194_v52 }
 0x5e7   :  { %2272 = vmatmul.f32.vlgmr.msra.gmra.mxu1 %v2195_v1 }
 0x5eb   :  { %2318 = vmatmul.f32.vlgmr.msrb.gmra.mxu3 %v2193_v53  ;;  %2198 = vmatmul.f32.vlgmr.msra.gmra.mxu2 %v2197_v56  ;;  %v2873_v56 = vsel %vm937_vm14, %v10509_v51, 0 }
 0x5f3   :  { %v2590_v39 = vpop.permute.xlu1 %2589  ;;  %2296 = vmatmul.f32.vlgmr.msrb.gmra.mxu2 %v2193_v53 }
 0x5fb   :  { %v3362_v24 = vpop.permute.xlu1 %3361 }
 0x5fc   :  { %3373 = vxpose.xlu1.b32.start.end [1/1] (short) (narrow) %v3362_v24, 8  ;;  %v2725_v24 = vsel %vm937_vm14, %v10476_v41, 0 }
 0x602   :  { %v10558_v22 = vpop.permute.xlu0 %2583 }
 0x603   :  { %2591 = vrot.lane.b32.xlu2 %v10558_v22, %s10186_s3 }
 0x60a   :  { %v2586_v38 = vpop.permute.xlu0 %2585 }
 0x60b   :  { %2597 = vxpose.xlu0.b32.start.end [1/1] (short) (narrow) %v2586_v38, 8  ;;  %3363 = vrot.lane.b32.xlu2 %v10509_v51, %s10190_s11  ;;  %v2744_v38 = vand.u32 4294901760, %v2725_v24  ;;  %v3021_v51 = vsel %vm937_vm14, %v10528_v28, 0 }
 0x612   :  { %v2588_v33 = vpop.permute.xlu0 %2587 }
 0x613   :  { %2629 = vxpose.xlu0.b32.start.end [1/1] (short) (narrow) %v2588_v33, 8  ;;  %v2745_v33 = vsub.f32 %v2725_v24, %v2744_v38  ;;  %v3040_v24 = vand.u32 4294901760, %v3021_v51 }
 0x61a   :  { %v3366_v3 = vpop.permute.xlu0 %3365 }
 0x61b   :  { %2661 = vxpose.xlu0.b32.start.end [1/1] (short) (narrow) %v2590_v39, 8 }
 0x64a   :  { %v10578_v50 = vpop.f32.mrf.mxu0 }
 0x64c   :  { %v10582_v32 = vpop.f32.mrf.mxu1 }
 0x64e   :  { %v10576_v62 = vpop.f32.mrf.mxu3 }
 0x652   :  { %v2047_v40 = vpop.f32.mrf.mxu0 }
 0x654   :  { %v2073_v59 = vpop.f32.mrf.mxu1 }
 0x655   :  { %v2074_v30 = vadd.f32 %v2073_v59, %v2047_v40  ;;  %v2892_v40 = vand.u32 4294901760, %v2873_v56 }
 0x656   :  { %v10580_v18 = vpop.f32.mrf.mxu2  ;;  %v10584_v35 = vpop.f32.mrf.mxu3 }
 0x65a   :  { %v2145_v1 = vpop.f32.mrf.mxu0 }
 0x65c   :  { %v2167_v31 = vpop.f32.mrf.mxu1 }
 0x65d   :  { %v2592_v54 = vpop.permute.xlu2 %2591 }
 0x65e   :  { %2693 = vxpose.xlu0.b32.start.end [1/1] (short) (narrow) %v2592_v54, 8  ;;  %v10586_v29 = vpop.f32.mrf.mxu2  ;;  %v2121_v17 = vpop.f32.mrf.mxu3  ;;  %v2746_v54 = vand.u32 4294901760, %v2745_v33 }
 0x660   :  { %v2747_v59 = vsub.f32 %v2745_v33, %v2746_v54 }
 0x665   :  { %v3364_v57 = vpop.permute.xlu2 %3363 }
 0x666   :  { %3405 = vxpose.xlu2.b32.start.end [1/1] (short) (narrow) %v3364_v57, 8  ;;  %3437 = vxpose.xlu0.b32.start.end [1/1] (short) (narrow) %v3366_v3, 8  ;;  %v2097_v52 = vpop.f32.mrf.mxu2  ;;  %v2893_v3 = vsub.f32 %v2873_v56, %v2892_v40 }
 0x667   :  { %v2098_v46 = vadd.f32 %v2097_v52, %v2074_v30  ;;  %v2748_v52 = vand.u32 4294901760, %v2747_v59 }
 0x669   :  { %v2122_v25 = vadd.f32 %v2121_v17, %v2098_v46  ;;  %v2894_v46 = vand.u32 4294901760, %v2893_v3 }
 0x66b   :  { %v2146_v53 = vadd.f32 %v2145_v1, %v2122_v25  ;;  %v2895_v25 = vsub.f32 %v2893_v3, %v2894_v46 }
 0x66d   :  { %v2168_v39 = vadd.f32 %v2167_v31, %v2146_v53  ;;  %v2896_v59 = vand.u32 4294901760, %v2895_v25 }
 0x66f   :  { %2386 = vxpose.xlu2.b32.start.end [1/1] (short) (narrow) %v2168_v39, 8 }
 0x6af   :  { %v2613_v57 = vpop.trf.xlu0 }
 0x6b0   :  { %v2742_v30 = vand.u32 4294901760, %v2613_v57 }
 0x6b2   :  { %v2769_v17 = vsub.f32 %v2613_v57, %v2742_v30  ;;  %2743 = vmatpush.msrb.mxu0 %v2742_v30  ;;  %2819 = vmatpush.msra.mxu3 %v2742_v30 }
 0x6b3   :  { %2749 = vmatmul.f32.vlgmr.msrb.gmra.mxu0 %v2748_v52  ;;  %2823 = vmatmul.f32.vlgmr.msra.gmra.mxu3 %v2746_v54 }
 0x6b4   :  { %v2770_v1 = vand.u32 4294901760, %v2769_v17  ;;  %2796 = vmatpush.msra.mxu2 %v2769_v17 }
 0x6b5   :  { %2799 = vmatmul.f32.vlgmr.msra.gmra.mxu2 %v2745_v33  ;;  %v3041_v33 = vsub.f32 %v3021_v51, %v3040_v24 }
 0x6b6   :  { %v2771_v41 = vsub.f32 %v2769_v17, %v2770_v1  ;;  %2845 = vmatpush.msra.mxu0 %v2770_v1 }
 0x6b7   :  { %v2645_v31 = vpop.trf.xlu0  ;;  %v3042_v1 = vand.u32 4294901760, %v3041_v33 }
 0x6b8   :  { %v2772_v53 = vand.u32 4294901760, %v2771_v41  ;;  %v2890_v39 = vand.u32 4294901760, %v2645_v31 }
 0x6ba   :  { %v2917_v56 = vsub.f32 %v2645_v31, %v2890_v39  ;;  %2773 = vmatpush.msrb.mxu1 %v2772_v53  ;;  %2891 = vmatpush.msrb.mxu2 %v2890_v39 }
 0x6bb   :  { %2775 = vmatmul.f32.vlgmr.msrb.gmra.mxu1 %v2744_v38  ;;  %2847 = vmatmul.f32.vlgmr.msra.gmra.mxu0 %v2744_v38 }
 0x6bc   :  { %v2918_v54 = vand.u32 4294901760, %v2917_v56  ;;  %2867 = vmatpush.msra.mxu1 %v2742_v30  ;;  %2944 = vmatpush.msrb.mxu0 %v2917_v56  ;;  %v3043_v30 = vsub.f32 %v3041_v33, %v3042_v1 }
 0x6bd   :  { %2897 = vmatmul.f32.vlgmr.msrb.gmra.mxu2 %v2896_v59 }
 0x6be   :  { %2967 = vmatpush.msrb.mxu1 %v2890_v39  ;;  %v2919_v57 = vsub.f32 %v2917_v56, %v2918_v54  ;;  %2993 = vmatpush.msra.mxu2 %v2918_v54  ;;  %v3044_v53 = vand.u32 4294901760, %v3043_v30 }
 0x6bf   :  { %v2677_v52 = vpop.trf.xlu0 }
 0x6c0   :  { %v2920_v28 = vand.u32 4294901760, %v2919_v57  ;;  %v3038_v17 = vand.u32 4294901760, %v2677_v52 }
 0x6c2   :  { %2921 = vmatpush.msrb.mxu3 %v2920_v28  ;;  %v3065_v41 = vsub.f32 %v2677_v52, %v3038_v17  ;;  %3039 = vmatpush.msra.mxu0 %v3038_v17 }
 0x6c3   :  { %2869 = vmatmul.f32.vlgmr.msra.gmra.mxu1 %v2744_v38  ;;  %2923 = vmatmul.f32.vlgmr.msrb.gmra.mxu3 %v2892_v40  ;;  %v3169_v38 = vsel %vm937_vm14, %v10558_v22, 0 }
 0x6c4   :  { %2947 = vmatmul.f32.vlgmr.msrb.gmra.mxu0 %v2893_v3  ;;  %v3066_v25 = vand.u32 4294901760, %v3065_v41  ;;  %3015 = vmatpush.msra.mxu3 %v2890_v39  ;;  %v3188_v3 = vand.u32 4294901760, %v3169_v38 }
 0x6c5   :  { %2995 = vmatmul.f32.vlgmr.msra.gmra.mxu2 %v2892_v40 }
 0x6c6   :  { %3115 = vmatpush.msrb.mxu3 %v3038_v17  ;;  %v3067_v31 = vsub.f32 %v3065_v41, %v3066_v25  ;;  %3092 = vmatpush.msrb.mxu2 %v3065_v41  ;;  %v3189_v39 = vsub.f32 %v3169_v38, %v3188_v3  ;;  %v2273_v41 = vpop.f32.mrf.mxu1 }
 0x6c7   :  { %3141 = vmatpush.msrb.mxu0 %v3066_v25 }
 0x6c8   :  { %v3068_v51 = vand.u32 4294901760, %v3067_v31  ;;  %v3190_v56 = vand.u32 4294901760, %v3189_v39 }
 0x6ca   :  { %3069 = vmatpush.msra.mxu1 %v3068_v51  ;;  %v3191_v59 = vsub.f32 %v3189_v39, %v3190_v56  ;;  %v10596_v51 = vld [vmem:[#allocation5 + $0x8] sm:$0xff] }
 0x6cb   :  { %2971 = vmatmul.f32.vlgmr.msrb.gmra.mxu1 %v2894_v46  ;;  %3017 = vmatmul.f32.vlgmr.msra.gmra.mxu3 %v2892_v40 }
 0x6cc   :  { %3045 = vmatmul.f32.vlgmr.msra.gmra.mxu0 %v3044_v53  ;;  %3163 = vmatpush.msrb.mxu1 %v3038_v17  ;;  %v3192_v52 = vand.u32 4294901760, %v3191_v59  ;;  %v2249_v17 = vpop.f32.mrf.mxu0 }
 0x6cd   :  { %3095 = vmatmul.f32.vlgmr.msrb.gmra.mxu2 %v3041_v33  ;;  %v2199_v33 = vpop.f32.mrf.mxu2 }
 0x6d3   :  { %3071 = vmatmul.f32.vlgmr.msra.gmra.mxu1 %v3040_v24  ;;  %3119 = vmatmul.f32.vlgmr.msrb.gmra.mxu3 %v3042_v1  ;;  %v2225_v1 = vpop.f32.mrf.mxu3 }
 0x6d4   :  { %3143 = vmatmul.f32.vlgmr.msrb.gmra.mxu0 %v3040_v24 }
 0x6d5   :  { %v2297_v25 = vpop.f32.mrf.mxu2 }
 0x6db   :  { %3165 = vmatmul.f32.vlgmr.msrb.gmra.mxu1 %v3040_v24  ;;  %v2319_v31 = vpop.f32.mrf.mxu3 }
 0x702   :  { %v2709_v54 = vpop.trf.xlu0 }
 0x703   :  { %v3186_v57 = vand.u32 4294901760, %v2709_v54 }
 0x705   :  { %v3213_v28 = vsub.f32 %v2709_v54, %v3186_v57  ;;  %3187 = vmatpush.msra.mxu2 %v3186_v57  ;;  %3263 = vmatpush.msra.mxu1 %v3186_v57 }
 0x706   :  { %3193 = vmatmul.f32.vlgmr.msra.gmra.mxu2 %v3192_v52  ;;  %3267 = vmatmul.f32.vlgmr.msra.gmra.mxu1 %v3190_v56 }
 0x707   :  { %v3214_v40 = vand.u32 4294901760, %v3213_v28  ;;  %3240 = vmatpush.msra.mxu0 %v3213_v28 }
 0x708   :  { %3243 = vmatmul.f32.vlgmr.msra.gmra.mxu0 %v3189_v39 }
 0x709   :  { %v3215_v46 = vsub.f32 %v3213_v28, %v3214_v40  ;;  %3289 = vmatpush.msrb.mxu2 %v3214_v40 }
 0x70a   :  { %v10604_v9 = vpop.trf.xlu0 }
 0x70b   :  { %v3216_v24 = vand.u32 4294901760, %v3215_v46 }
 0x70d   :  { %3217 = vmatpush.msra.mxu3 %v3216_v24 }
 0x70e   :  { %3219 = vmatmul.f32.vlgmr.msra.gmra.mxu3 %v3188_v3  ;;  %3291 = vmatmul.f32.vlgmr.msrb.gmra.mxu2 %v3188_v3 }
 0x70f   :  { %3311 = vmatpush.msrb.mxu3 %v3186_v57 }
 0x716   :  { %3313 = vmatmul.f32.vlgmr.msrb.gmra.mxu3 %v3188_v3 }
 0x730   :  { %v2750_v30 = vpop.f32.mrf.mxu0 }
 0x731   :  { %v2751_v53 = vadd.f32 %v2750_v30, %v10596_v51 }
 0x736   :  { %v2824_v52 = vpop.f32.mrf.mxu3 }
 0x738   :  { %v2776_v38 = vpop.f32.mrf.mxu1  ;;  %v2800_v39 = vpop.f32.mrf.mxu2 }
 0x739   :  { %v2777_v56 = vadd.f32 %v2776_v38, %v2751_v53  ;;  %v2848_v59 = vpop.f32.mrf.mxu0 }
 0x73b   :  { %v2801_v54 = vadd.f32 %v2800_v39, %v2777_v56 }
 0x73d   :  { %v2825_v28 = vadd.f32 %v2824_v52, %v2801_v54 }
 0x73f   :  { %v2849_v57 = vadd.f32 %v2848_v59, %v2825_v28 }
 0x740   :  { %v2870_v3 = vpop.f32.mrf.mxu1  ;;  %v2898_v40 = vpop.f32.mrf.mxu2 }
 0x741   :  { %v2871_v46 = vadd.f32 %v2870_v3, %v2849_v57  ;;  %v2948_v24 = vpop.f32.mrf.mxu0 }
 0x743   :  { %v3317_v63 = vsel %vm937_vm14, %v2871_v46, -inf }
 0x744   :  { %3318 = vmax.xlane.f32.xlu0 %v3317_v63 }
 0x746   :  { %v2924_v20 = vpop.f32.mrf.mxu3 }
 0x748   :  { %v2972_v14 = vpop.f32.mrf.mxu1  ;;  %v2996_v61 = vpop.f32.mrf.mxu2 }
 0x749   :  { %v3046_v43 = vpop.f32.mrf.mxu0 }
 0x74a   :  { %v3047_v11 = vadd.f32 %v3046_v43, %v10596_v51 }
 0x74e   :  { %v3018_v30 = vpop.f32.mrf.mxu3 }
 0x750   :  { %v3072_v53 = vpop.f32.mrf.mxu1  ;;  %v3096_v39 = vpop.f32.mrf.mxu2 }
 0x751   :  { %v3073_v38 = vadd.f32 %v3072_v53, %v3047_v11  ;;  %v3144_v52 = vpop.f32.mrf.mxu0  ;;  %v10606_v11 = vpop.trf.xlu2 }
 0x753   :  { %v3097_v56 = vadd.f32 %v3096_v39, %v3073_v38 }
 0x756   :  { %v3120_v54 = vpop.f32.mrf.mxu3 }
 0x757   :  { %v3121_v59 = vadd.f32 %v3120_v54, %v3097_v56 }
 0x758   :  { %3367 = vrot.lane.b32.xlu0 %v10558_v22, %s10190_s11  ;;  %v3166_v57 = vpop.f32.mrf.mxu1 }
 0x759   :  { %v3145_v28 = vadd.f32 %v3144_v52, %v3121_v59  ;;  %v10609_v39 = vpop.trf.xlu2 }
 0x75b   :  { %v3167_v63 = vadd.f32 %v3166_v57, %v3145_v28 }
 0x75d   :  { %v3323_v3 = vsel %vm937_vm14, %v3167_v63, -inf }
 0x75e   :  { %3324 = vmax.xlane.f32.xlu2 %v3323_v3 }
 0x785   :  { %v3244_v23 = vpop.f32.mrf.mxu0 }
 0x7b7   :  { %v3319_v8 = vpop.xlane.xlu0 %3318 }
 0x7b8   :  { %v3329_v43 = vsub.f32 %v2871_v46, %v3319_v8 }
 0x7ba   :  { %v3333_v6 = vmul.f32 1.442695, %v3329_v43  ;;  %v2899_v43 = vadd.f32 %v2898_v40, %v10596_v51 }
 0x7bc   :  { %9984 = vpow2.f32 %v3333_v6  ;;  %v2226_v6 = vadd.f32 %v2225_v1, %v2199_v33 }
 0x7be   :  { %v2250_v46 = vadd.f32 %v2249_v17, %v2226_v6 }
 0x7c0   :  { %v2274_v28 = vadd.f32 %v2273_v41, %v2250_v46 }
 0x7c2   :  { %v9985_v53 = vpop.eup %9984  ;;  %v2298_v57 = vadd.f32 %v2297_v25, %v2274_v28 }
 0x7c3   :  { %v3341_v38 = vsel %vm937_vm14, %v9985_v53, 0.0 }
 0x7c4   :  { %3342 = vadd.xlane.f32.xlu2 %v3341_v38  ;;  %v2320_v3 = vadd.f32 %v2319_v31, %v2298_v57  ;;  %v2925_v38 = vadd.f32 %v2924_v20, %v2899_v43 }
 0x7c6   :  { %v2949_v21 = vadd.f32 %v2948_v24, %v2925_v38  ;;  %v10040_v38 = vld [vmem:[#allocation8 + $0x40] sm:$0xff] }
 0x7ca   :  { %v3368_v22 = vpop.permute.xlu0 %3367 }
 0x7cb   :  { %3469 = vxpose.xlu1.b32.start.end [1/1] (short) (narrow) %v3368_v22, 8  ;;  %v3194_v22 = vpop.f32.mrf.mxu2 }
 0x7d1   :  { %v3325_v56 = vpop.xlane.xlu2 %3324 }
 0x7d2   :  { %v3331_v54 = vsub.f32 %v3167_v63, %v3325_v56  ;;  %v3220_v63 = vpop.f32.mrf.mxu3  ;;  %v3195_v56 = vadd.f32 %v3194_v22, %v10596_v51 }
 0x7d3   :  { %v3292_v1 = vpop.f32.mrf.mxu2 }
 0x7d4   :  { %v3337_v59 = vmul.f32 1.442695, %v3331_v54  ;;  %v2973_v54 = vadd.f32 %v2972_v14, %v2949_v21  ;;  %v3389_v21 = vpop.trf.xlu1 }
 0x7d6   :  { %9986 = vpow2.f32 %v3337_v59  ;;  %v3221_v59 = vadd.f32 %v3220_v63, %v3195_v56  ;;  %v2997_v4 = vadd.f32 %v2996_v61, %v2973_v54  ;;  %v3502_v61 = vsel %vm937_vm14, %v3389_v21, 0 }
 0x7d8   :  { %v3245_v7 = vadd.f32 %v3244_v23, %v3221_v59  ;;  %v3019_v33 = vadd.f32 %v3018_v30, %v2997_v4  ;;  %v3524_v23 = vand.u32 4294901760, %v3502_v61 }
 0x7da   :  { %v3320_v25 = vsel %vm937_vm14, %v3019_v33, -inf  ;;  %v3314_v31 = vpop.f32.mrf.mxu3  ;;  %v3525_v30 = vsub.f32 %v3502_v61, %v3524_v23 }
 0x7dc   :  { %v10611_v52 = vpop.eup %9986  ;;  %v3526_v46 = vand.u32 4294901760, %v3525_v30 }
 0x7dd   :  { %v3347_v8 = vsel %vm937_vm14, %v10611_v52, 0.0 }
 0x7de   :  { %3348 = vadd.xlane.f32.xlu2 %v3347_v8  ;;  %v3268_v8 = vpop.f32.mrf.mxu1  ;;  %v3527_v57 = vsub.f32 %v3525_v30, %v3526_v46 }
 0x7df   :  { %v3269_v17 = vadd.f32 %v3268_v8, %v3245_v7 }
 0x7e0   :  { %v3528_v43 = vand.u32 4294901760, %v3527_v57 }
 0x7e1   :  { %v3293_v41 = vadd.f32 %v3292_v1, %v3269_v17 }
 0x7e3   :  { %v3315_v20 = vadd.f32 %v3314_v31, %v3293_v41 }
 0x7e5   :  { %v3326_v40 = vsel %vm937_vm14, %v3315_v20, -inf }
 0x807   :  { %2418 = vxpose.xlu2.b32.start.end [1/1] (short) (narrow) %v2320_v3, 8 }
 0x82b   :  { %3321 = vmax.xlane.f32.xlu1 %v3320_v25 }
 0x833   :  { %3327 = vmax.xlane.f32.xlu1 %v3326_v40  ;;  %v1922_v40 = vadd.f32 %v10576_v62, %v10580_v18 }
 0x837   :  { %v3343_v24 = vpop.xlane.xlu2 %3342 }
 0x838   :  { %9988 = vrcp.f32 %v3343_v24  ;;  %v1946_v24 = vadd.f32 %v10578_v50, %v1922_v40 }
 0x83e   :  { %v9989_v14 = vpop.eup %9988 }
 0x83f   :  { %v3357_v51 = vmul.f32 %v9989_v14, %v9985_v53 }
 0x841   :  { %v3505_v4 = vsel %vm937_vm14, %v3357_v51, 0 }
 0x842   :  { %v3522_v7 = vand.u32 4294901760, %v3505_v4 }
 0x844   :  { %3523 = vmatpush.xpose.msrb.mxu0 %v3522_v7  ;;  %3599 = vmatpush.xpose.msra.mxu3 %v3522_v7  ;;  %v3549_v6 = vsub.f32 %v3505_v4, %v3522_v7 }
 0x846   :  { %3576 = vmatpush.xpose.msra.mxu2 %v3549_v6  ;;  %v3550_v28 = vand.u32 4294901760, %v3549_v6 }
 0x847   :  { %3603 = vmatmul.f32.vlgmr.msra.gmra.mxu3 %v3526_v46  ;;  %3529 = vmatmul.f32.vlgmr.msrb.gmra.mxu0 %v3528_v43 }
 0x848   :  { %3625 = vmatpush.xpose.msra.mxu0 %v3550_v28  ;;  %v3551_v3 = vsub.f32 %v3549_v6, %v3550_v28 }
 0x849   :  { %3579 = vmatmul.f32.vlgmr.msra.gmra.mxu2 %v3525_v30 }
 0x84a   :  { %v3552_v53 = vand.u32 4294901760, %v3551_v3 }
 0x84c   :  { %3553 = vmatpush.xpose.msrb.mxu1 %v3552_v53 }
 0x84f   :  { %3555 = vmatmul.f32.vlgmr.msrb.gmra.mxu1 %v3524_v23  ;;  %3627 = vmatmul.f32.vlgmr.msra.gmra.mxu0 %v3524_v23 }
 0x850   :  { %3647 = vmatpush.xpose.msra.mxu1 %v3522_v7 }
 0x851   :  { %v3349_v50 = vpop.xlane.xlu2 %3348 }
 0x857   :  { %3649 = vmatmul.f32.vlgmr.msra.gmra.mxu1 %v3524_v23 }
 0x86f   :  { %v10622_v22 = vpop.trf.xlu1 }
 0x870   :  { %4372 = vrot.lane.b32.xlu2 %v10040_v38, %s10186_s3 }
 0x89e   :  { %v3322_v63 = vpop.xlane.xlu1 %3321 }
 0x89f   :  { %v3330_v56 = vsub.f32 %v3019_v33, %v3322_v63  ;;  %v1970_v33 = vadd.f32 %v10582_v32, %v1946_v24 }
 0x8a1   :  { %v3335_v54 = vmul.f32 1.442695, %v3330_v56  ;;  %v1994_v14 = vadd.f32 %v10586_v29, %v1970_v33 }
 0x8a3   :  { %9990 = vpow2.f32 %v3335_v54  ;;  %v2016_v51 = vadd.f32 %v10584_v35, %v1994_v14 }
 0x8a6   :  { %v3328_v59 = vpop.xlane.xlu1 %3327 }
 0x8a7   :  { %v3332_v8 = vsub.f32 %v3315_v20, %v3328_v59  ;;  %v1770_v20 = vadd.f32 %v10566_v36, %v10564_v34  ;;  %v3654_v36 = vsel %vm937_vm14, %v10606_v11, 0 }
 0x8a8   :  { %v3676_v35 = vand.u32 4294901760, %v3654_v36 }
 0x8a9   :  { %v9991_v17 = vpop.eup %9990  ;;  %v3339_v1 = vmul.f32 1.442695, %v3332_v8  ;;  %v1794_v21 = vadd.f32 %v10572_v49, %v1770_v20 }
 0x8aa   :  { %v3344_v41 = vsel %vm937_vm14, %v9991_v17, 0.0  ;;  %v3677_v4 = vsub.f32 %v3654_v36, %v3676_v35 }
 0x8ab   :  { %9992 = vpow2.f32 %v3339_v1  ;;  %3345 = vadd.xlane.f32.xlu1 %v3344_v41  ;;  %v1818_v61 = vadd.f32 %v10568_v37, %v1794_v21  ;;  %v3958_v1 = vsel %vm937_vm14, %v10622_v22, 0 }
 0x8ac   :  { %9994 = vrcp.f32 %v3349_v50  ;;  %v3678_v7 = vand.u32 4294901760, %v3677_v4  ;;  %v3980_v24 = vand.u32 4294901760, %v3958_v1  ;;  %v10191_v50 = vmov 1983009808  }
 0x8ad   :  { %v1842_v23 = vadd.f32 %v10570_v19, %v1818_v61 }
 0x8ae   :  { %v3679_v57 = vsub.f32 %v3677_v4, %v3678_v7  ;;  %v3981_v14 = vsub.f32 %v3958_v1, %v3980_v24 }
 0x8af   :  { %v1864_v62 = vadd.f32 %v10574_v15, %v1842_v23  ;;  %v3806_v15 = vsel %vm937_vm14, %v10604_v9, 0 }
 0x8b0   :  { %v3828_v28 = vand.u32 4294901760, %v3806_v15  ;;  %v3680_v63 = vand.u32 4294901760, %v3679_v57  ;;  %v3982_v21 = vand.u32 4294901760, %v3981_v14 }
 0x8b1   :  { %v9993_v25 = vpop.eup %9992 }
 0x8b2   :  { %v3350_v31 = vsel %vm937_vm14, %v9993_v25, 0.0  ;;  %v9995_v18 = vpop.eup %9994  ;;  %v3829_v53 = vsub.f32 %v3806_v15, %v3828_v28  ;;  %v3983_v61 = vsub.f32 %v3981_v14, %v3982_v21 }
 0x8b3   :  { %3351 = vadd.xlane.f32.xlu0 %v3350_v31  ;;  %v3359_v32 = vmul.f32 %v9995_v18, %v10611_v52  ;;  %v2456_v18 = vunpack.c.l.s4 %v10191_v50 }
 0x8b4   :  { %v3830_v59 = vand.u32 4294901760, %v3829_v53  ;;  %v3984_v23 = vand.u32 4294901760, %v3983_v61 }
 0x8b5   :  { %v3809_v34 = vsel %vm937_vm14, %v3359_v32, 0  ;;  %v10648_v36 = vunpack.c.0.s8 %v2456_v18 }
 0x8b6   :  { %v3826_v49 = vand.u32 4294901760, %v3809_v34  ;;  %v3831_v40 = vsub.f32 %v3829_v53, %v3830_v59 }
 0x8b8   :  { %v3853_v29 = vsub.f32 %v3809_v34, %v3826_v49  ;;  %v3832_v20 = vand.u32 4294901760, %v3831_v40 }
 0x8ba   :  { %v3854_v19 = vand.u32 4294901760, %v3853_v29 }
 0x8bc   :  { %v3855_v52 = vsub.f32 %v3853_v29, %v3854_v19 }
 0x8be   :  { %v3856_v43 = vand.u32 4294901760, %v3855_v52 }
 0x8dc   :  { %2354 = vxpose.xlu0.b32.start.end [1/1] (short) (narrow) %v2016_v51, 8 }
 0x8e5   :  { %2322 = vxpose.xlu1.b32.start.end [1/1] (short) (narrow) %v1864_v62, 8  ;;  %v2434_v62 = vpop.trf.xlu2 }
 0x8e6   :  { %v2463_v32 = vrot.slane %v2434_v62, 4 }
 0x91e   :  { %v3346_v37 = vpop.xlane.xlu1 %3345 }
 0x91f   :  { %9996 = vrcp.f32 %v3346_v37 }
 0x925   :  { %v9997_v30 = vpop.eup %9996 }
 0x926   :  { %v3358_v6 = vmul.f32 %v9997_v30, %v9991_v17  ;;  %v3352_v46 = vpop.xlane.xlu0 %3351 }
 0x927   :  { %9998 = vrcp.f32 %v3352_v46 }
 0x928   :  { %v3657_v11 = vsel %vm937_vm14, %v3358_v6, 0 }
 0x929   :  { %v3674_v3 = vand.u32 4294901760, %v3657_v11 }
 0x92b   :  { %3675 = vmatpush.xpose.msrb.mxu2 %v3674_v3  ;;  %3751 = vmatpush.xpose.msrb.mxu1 %v3674_v3  ;;  %v3701_v38 = vsub.f32 %v3657_v11, %v3674_v3 }
 0x92d   :  { %v9999_v56 = vpop.eup %9998  ;;  %3728 = vmatpush.xpose.msrb.mxu0 %v3701_v38  ;;  %v3702_v9 = vand.u32 4294901760, %v3701_v38 }
 0x92e   :  { %v3360_v54 = vmul.f32 %v9999_v56, %v9993_v25  ;;  %3681 = vmatmul.f32.vlgmr.msrb.gmra.mxu2 %v3680_v63  ;;  %3755 = vmatmul.f32.vlgmr.msrb.gmra.mxu1 %v3678_v7  ;;  %v2450_v7 = vrot.slane %v10609_v39, 4 }
 0x92f   :  { %3857 = vmatpush.xpose.msra.mxu1 %v3856_v43  ;;  %3777 = vmatpush.xpose.msra.mxu2 %v3702_v9  ;;  %v3703_v8 = vsub.f32 %v3701_v38, %v3702_v9 }
 0x930   :  { %3731 = vmatmul.f32.vlgmr.msrb.gmra.mxu0 %v3677_v4  ;;  %v3961_v17 = vsel %vm937_vm14, %v3360_v54, 0  ;;  %v10192_v4 = vmov 1934713408  }
 0x931   :  { %3827 = vmatpush.xpose.msra.mxu0 %v3826_v49  ;;  %v3704_v41 = vand.u32 4294901760, %v3703_v8  ;;  %v3978_v31 = vand.u32 4294901760, %v3961_v17 }
 0x933   :  { %3951 = vmatpush.xpose.msrb.mxu1 %v3826_v49  ;;  %3880 = vmatpush.xpose.msrb.mxu2 %v3853_v29  ;;  %v4005_v25 = vsub.f32 %v3961_v17, %v3978_v31 }
 0x934   :  { %3705 = vmatpush.xpose.msrb.mxu3 %v3704_v41 }
 0x935   :  { %3929 = vmatpush.xpose.msrb.mxu0 %v3854_v19  ;;  %v4006_v33 = vand.u32 4294901760, %v4005_v25  ;;  %v2480_v19 = vunpack.c.l.s4 %v10192_v4 }
 0x936   :  { %3779 = vmatmul.f32.vlgmr.msra.gmra.mxu2 %v3676_v35  ;;  %3859 = vmatmul.f32.vlgmr.msra.gmra.mxu1 %v3828_v28 }
 0x937   :  { %3707 = vmatmul.f32.vlgmr.msrb.gmra.mxu3 %v3676_v35  ;;  %3979 = vmatpush.xpose.msra.mxu2 %v3978_v31  ;;  %v4007_v22 = vsub.f32 %v4005_v25, %v4006_v33  ;;  %v10655_v46 = vunpack.c.0.s8 %v2480_v19 }
 0x938   :  { %3799 = vmatpush.xpose.msra.mxu3 %v3674_v3  ;;  %4055 = vmatpush.xpose.msra.mxu1 %v3978_v31 }
 0x939   :  { %3833 = vmatmul.f32.vlgmr.msra.gmra.mxu0 %v3832_v20  ;;  %v4008_v51 = vand.u32 4294901760, %v4007_v22 }
 0x93a   :  { %4032 = vmatpush.xpose.msra.mxu0 %v4005_v25 }
 0x93c   :  { %3903 = vmatpush.xpose.msrb.mxu3 %v3826_v49 }
 0x93e   :  { %3883 = vmatmul.f32.vlgmr.msrb.gmra.mxu2 %v3829_v53  ;;  %3953 = vmatmul.f32.vlgmr.msrb.gmra.mxu1 %v3828_v28 }
 0x93f   :  { %3801 = vmatmul.f32.vlgmr.msra.gmra.mxu3 %v3676_v35  ;;  %4081 = vmatpush.xpose.msrb.mxu2 %v4006_v33 }
 0x940   :  { %4009 = vmatpush.xpose.msra.mxu3 %v4008_v51 }
 0x941   :  { %3931 = vmatmul.f32.vlgmr.msrb.gmra.mxu0 %v3828_v28 }
 0x946   :  { %3985 = vmatmul.f32.vlgmr.msra.gmra.mxu2 %v3984_v23  ;;  %4059 = vmatmul.f32.vlgmr.msra.gmra.mxu1 %v3982_v21 }
 0x947   :  { %3907 = vmatmul.f32.vlgmr.msrb.gmra.mxu3 %v3830_v59 }
 0x948   :  { %4103 = vmatpush.xpose.msrb.mxu3 %v3978_v31 }
 0x949   :  { %4035 = vmatmul.f32.vlgmr.msra.gmra.mxu0 %v3981_v14 }
 0x94e   :  { %4083 = vmatmul.f32.vlgmr.msrb.gmra.mxu2 %v3980_v24 }
 0x94f   :  { %4011 = vmatmul.f32.vlgmr.msra.gmra.mxu3 %v3980_v24 }
 0x957   :  { %4105 = vmatmul.f32.vlgmr.msrb.gmra.mxu3 %v3980_v24 }
 0x980   :  { %v2370_v34 = vpop.trf.xlu0 }
 0x981   :  { %v2465_v49 = vrot.slane %v2370_v34, 4  ;;  %v2464_v35 = vsel %vm2451_vm15, %v2463_v32, %v2370_v34 }
 0x982   :  { %v2470_v37 = vperm.slane %v2464_v35, %v10648_v36 }
 0x983   :  { %v2466_v29 = vsel %vm2451_vm15, %v2434_v62, %v2465_v49 }
 0x984   :  { %v2474_v15 = vperm.slane %v2466_v29, %v10648_v36  ;;  %v2475_v30 = vrot.slane %v2470_v37, 4 }
 0x986   :  { %v2487_v57 = vrot.slane %v2474_v15, 4 }
 0x989   :  { %v2338_v6 = vpop.trf.xlu1 }
 0x98a   :  { %v2452_v52 = vsel %vm2451_vm15, %v2450_v7, %v2338_v6  ;;  %v2453_v28 = vrot.slane %v2338_v6, 4 }
 0x98b   :  { %v2458_v11 = vperm.slane %v2452_v52, %v10648_v36 }
 0x98c   :  { %v2454_v3 = vsel %vm2451_vm15, %v10609_v39, %v2453_v28 }
 0x98d   :  { %v2462_v43 = vperm.slane %v2454_v3, %v10648_v36  ;;  %v2476_v53 = vsel %vm2451_vm15, %v2475_v30, %v2458_v11  ;;  %v2477_v38 = vrot.slane %v2458_v11, 4 }
 0x98e   :  { %v2482_v63 = vperm.slane %v2476_v53, %v10655_v46 }
 0x98f   :  { %v2478_v56 = vsel %vm2451_vm15, %v2470_v37, %v2477_v38  ;;  %v2488_v9 = vsel %vm2451_vm15, %v2487_v57, %v2462_v43  ;;  %v2489_v54 = vrot.slane %v2462_v43, 4 }
 0x990   :  { %v2486_v59 = vperm.slane %v2478_v56, %v10655_v46  ;;  %v2494_v8 = vperm.slane %v2488_v9, %v10655_v46  ;;  %v2499_v1 = vrot.slane %v2482_v63, 4  ;;  %v3556_v9 = vpop.f32.mrf.mxu1 }
 0x991   :  { %v2490_v17 = vsel %vm2451_vm15, %v2474_v15, %v2489_v54  ;;  %v10041_v54 = vld [vmem:[#allocation8 + $0x28] sm:$0xff] }
 0x992   :  { %v2498_v39 = vperm.slane %v2490_v17, %v10655_v46  ;;  %v2501_v41 = vrot.slane %v2486_v59, 4  ;;  %v2503_v40 = vrot.slane %v2494_v8, 4  ;;  %v2500_v14 = vsel %vm2451_vm15, 0.0, %v2499_v1  ;;  %v3580_v59 = vpop.f32.mrf.mxu2  ;;  %v3604_v1 = vpop.f32.mrf.mxu3 }
 0x994   :  { %v2502_v31 = vsel %vm2451_vm15, 0.0, %v2501_v41  ;;  %v2505_v25 = vrot.slane %v2498_v39, 4  ;;  %v2507_v24 = vsel %vm2451_vm15, %v2501_v41, %v2482_v63  ;;  %v2504_v50 = vsel %vm2451_vm15, 0.0, %v2503_v40  ;;  %v3530_v63 = vpop.f32.mrf.mxu0 }
 0x995   :  { %v2511_v33 = vperm.slane %v2507_v24, %v10648_v36  ;;  %v2512_v20 = vrot.slane %v2502_v31, 4  ;;  %v10043_v31 = vld [vmem:[#allocation8 + $0x30] sm:$0xff] }
 0x996   :  { %v2506_v22 = vsel %vm2451_vm15, 0.0, %v2505_v25  ;;  %v2518_v21 = vsel %vm2451_vm15, %v2505_v25, %v2494_v8  ;;  %v10042_v8 = vld [vmem:[#allocation8 + $0x38] sm:$0xff] }
 0x997   :  { %v2513_v51 = vsel %vm2451_vm15, %v2512_v20, %v2500_v14  ;;  %v2522_v61 = vperm.slane %v2518_v21, %v10648_v36  ;;  %v2523_v23 = vrot.slane %v2506_v22, 4  ;;  %v2531_v62 = vrot.slane %v2511_v33, 4 }
 0x998   :  { %v2517_v18 = vperm.slane %v2513_v51, %v10648_v36  ;;  %v3650_v39 = vpop.f32.mrf.mxu1  ;;  %v3557_v20 = vadd.f32 %v3556_v9, %v3530_v63 }
 0x999   :  { %v2524_v32 = vsel %vm2451_vm15, %v2523_v23, %v2504_v50  ;;  %v2543_v34 = vrot.slane %v2522_v61, 4 }
 0x99a   :  { %v2528_v49 = vperm.slane %v2524_v32, %v10648_v36  ;;  %v2532_v35 = vsel %vm2451_vm15, %v2517_v18, %v2531_v62  ;;  %v2529_v29 = vrot.slane %v2517_v18, 4  ;;  %v3581_v22 = vadd.f32 %v3580_v59, %v3557_v20 }
 0x99b   :  { %v2540_v37 = vperm.slane %v2532_v35, %v10655_v46  ;;  %v4373_v35 = vpop.permute.xlu2 %4372 }
 0x99c   :  { %v2544_v4 = vsel %vm2451_vm15, %v2528_v49, %v2543_v34  ;;  %v2530_v19 = vsel %vm2451_vm15, %v2529_v29, %v2511_v33  ;;  %v2541_v15 = vrot.slane %v2528_v49, 4  ;;  %v3628_v17 = vpop.f32.mrf.mxu0  ;;  %v3605_v23 = vadd.f32 %v3604_v1, %v3581_v22 }
 0x99d   :  { %v2552_v7 = vperm.slane %v2544_v4, %v10655_v46  ;;  %v2559_v30 = vrot.slane %v2540_v37, 4  ;;  %v2536_v6 = vperm.slane %v2530_v19, %v10655_v46  ;;  %v10702_v29 = vand.u32 4294901760, %v4373_v35 }
 0x99e   :  { %v2542_v52 = vsel %vm2451_vm15, %v2541_v15, %v2522_v61  ;;  %v3629_v62 = vadd.f32 %v3628_v17, %v3605_v23 }
 0x99f   :  { %v2560_v28 = vsel %vm2451_vm15, %v2552_v7, %v2559_v30  ;;  %v2557_v57 = vrot.slane %v2552_v7, 4  ;;  %v2548_v11 = vperm.slane %v2542_v52, %v10655_v46  ;;  %v2555_v3 = vrot.slane %v2536_v6, 4  ;;  %4401 = vmatpush.msrb.mxu0 %v10702_v29  ;;  %4518 = vmatpush.msra.mxu3 %v10702_v29 }
 0x9a0   :  { %2570 = vrot.lane.b32.xlu2 %v2560_v28, %s10193_s12  ;;  %v3651_v34 = vadd.f32 %v3650_v39, %v3629_v62  ;;  %v10705_v19 = vsub.f32 %v4373_v35, %v10702_v29 }
 0x9a1   :  { %v2558_v43 = vsel %vm2451_vm15, %v2557_v57, %v2540_v37  ;;  %v2553_v53 = vrot.slane %v2548_v11, 4  ;;  %v2556_v38 = vsel %vm2451_vm15, %v2548_v11, %v2555_v3 }
 0x9a2   :  { %2566 = vrot.lane.b32.xlu1 %v2558_v43, %s10194_s13  ;;  %2562 = vrot.lane.b32.xlu0 %v2556_v38, %s10181_s24  ;;  %v4439_v30 = vand.u32 4294901760, %v10705_v19 }
 0x9a3   :  { %v10697_v56 = vsel %vm2451_vm15, %v2553_v53, %v2536_v6  ;;  %4484 = vmatpush.msra.mxu2 %v10705_v19 }
 0x9a4   :  { %v4440_v57 = vsub.f32 %v10705_v19, %v4439_v30 }
 0x9a6   :  { %v4441_v43 = vand.u32 4294901760, %v4440_v57 }
 0x9a8   :  { %4366 = vrot.lane.b32.xlu2 %v10041_v54, %s10186_s3  ;;  %4442 = vmatpush.msrb.mxu1 %v4441_v43 }
 0x9aa   :  { %4370 = vrot.lane.b32.xlu1 %v10042_v8, %s10186_s3 }
 0x9ab   :  { %v3756_v25 = vpop.f32.mrf.mxu1 }
 0x9ad   :  { %v3732_v40 = vpop.f32.mrf.mxu0 }
 0x9b1   :  { %v3682_v41 = vpop.f32.mrf.mxu2 }
 0x9b2   :  { %4368 = vrot.lane.b32.xlu1 %v10043_v31, %s10186_s3 }
 0x9b3   :  { %v3860_v21 = vpop.f32.mrf.mxu1 }
 0x9b6   :  { %v3834_v14 = vpop.f32.mrf.mxu0 }
 0x9b7   :  { %v3861_v54 = vadd.f32 %v3860_v21, %v3834_v14 }
 0x9b9   :  { %v3780_v33 = vpop.f32.mrf.mxu2 }
 0x9ba   :  { %v3708_v24 = vpop.f32.mrf.mxu3 }
 0x9bb   :  { %v3954_v32 = vpop.f32.mrf.mxu1  ;;  %v3709_v6 = vadd.f32 %v3708_v24, %v3682_v41 }
 0x9bd   :  { %v3733_v53 = vadd.f32 %v3732_v40, %v3709_v6 }
 0x9be   :  { %v3932_v50 = vpop.f32.mrf.mxu0 }
 0x9bf   :  { %v3757_v9 = vadd.f32 %v3756_v25, %v3733_v53 }
 0x9c1   :  { %v3884_v61 = vpop.f32.mrf.mxu2  ;;  %v3781_v59 = vadd.f32 %v3780_v33, %v3757_v9 }
 0x9c2   :  { %v3802_v51 = vpop.f32.mrf.mxu3  ;;  %v3885_v8 = vadd.f32 %v3884_v61, %v3861_v54 }
 0x9c3   :  { %v4060_v52 = vpop.f32.mrf.mxu1  ;;  %v3803_v17 = vadd.f32 %v3802_v51, %v3781_v59 }
 0x9c6   :  { %v4036_v15 = vpop.f32.mrf.mxu0 }
 0x9c9   :  { %v3986_v49 = vpop.f32.mrf.mxu2 }
 0x9ca   :  { %v3908_v18 = vpop.f32.mrf.mxu3 }
 0x9cb   :  { %v3909_v39 = vadd.f32 %v3908_v18, %v3885_v8 }
 0x9cd   :  { %v3933_v1 = vadd.f32 %v3932_v50, %v3909_v39 }
 0x9ce   :  { %4109 = vxpose.xlu2.b32.start.end [1/1] (short) (narrow) %v3651_v34, 8 }
 0x9cf   :  { %v3955_v41 = vadd.f32 %v3954_v32, %v3933_v1 }
 0x9d1   :  { %v4084_v11 = vpop.f32.mrf.mxu2 }
 0x9d2   :  { %v4012_v37 = vpop.f32.mrf.mxu3 }
 0x9d3   :  { %v4013_v4 = vadd.f32 %v4012_v37, %v3986_v49 }
 0x9d5   :  { %v4037_v7 = vadd.f32 %v4036_v15, %v4013_v4 }
 0x9d7   :  { %v4061_v28 = vadd.f32 %v4060_v52, %v4037_v7 }
 0x9d9   :  { %v4085_v3 = vadd.f32 %v4084_v11, %v4061_v28 }
 0x9da   :  { %v4106_v38 = vpop.f32.mrf.mxu3 }
 0x9db   :  { %v4107_v63 = vadd.f32 %v4106_v38, %v4085_v3 }
 0x9dd   :  { %4205 = vxpose.xlu0.b32.start.end [1/1] (short) (narrow) %v4107_v63, 8 }
 0x9e7   :  { %4141 = vxpose.xlu1.b32.start.end [1/1] (short) (narrow) %v3803_v17, 8 }
 0x9ef   :  { %4173 = vxpose.xlu1.b32.start.end [1/1] (short) (narrow) %v3955_v41, 8 }
 0x9fa   :  { %v2571_v31 = vpop.permute.xlu2 %2570 }
 0xa02   :  { %v4367_v21 = vpop.permute.xlu2 %4366 }
 0xa03   :  { %v4406_v62 = vand.u32 4294901760, %v4367_v21 }
 0xa14   :  { %v2567_v24 = vpop.permute.xlu1 %2566  ;;  %v2563_v20 = vpop.permute.xlu0 %2562 }
 0xa15   :  { %v2573_v40 = vsel %vm937_vm14, %v10697_v56, %v2563_v20  ;;  %v4456_v56 = vsub.f32 %v4367_v21, %v4406_v62 }
 0xa16   :  { %v2575_v22 = vsel %vm2574_vm1, %v2573_v40, %v2567_v24 }
 0xa17   :  { %v2577_v25 = vsel %vm2576_vm2, %v2575_v22, %v2571_v31  ;;  %v4457_v4 = vand.u32 4294901760, %v4456_v56 }
 0xa18   :  { %v4383_v33 = vsel %vm123_vm0, %v2577_v25, 0 }
 0xa19   :  { %v10719_v14 = vand.u32 4294901760, %v4383_v33  ;;  %v4458_v28 = vsub.f32 %v4456_v56, %v4457_v4 }
 0xa1b   :  { %v4409_v51 = vsub.f32 %v4383_v33, %v10719_v14  ;;  %v4459_v3 = vand.u32 4294901760, %v4458_v28 }
 0xa1c   :  { %v4371_v61 = vpop.permute.xlu1 %4370 }
 0xa1d   :  { %v4402_v23 = vand.u32 4294901760, %v4371_v61  ;;  %v4410_v18 = vand.u32 4294901760, %v4409_v51 }
 0xa1f   :  { %v4444_v50 = vsub.f32 %v4371_v61, %v4402_v23  ;;  %4403 = vmatpush.msrb.mxu0 %v4402_v23  ;;  %4520 = vmatpush.msra.mxu3 %v4402_v23  ;;  %v4411_v35 = vsub.f32 %v4409_v51, %v4410_v18 }
 0xa21   :  { %v4445_v32 = vand.u32 4294901760, %v4444_v50  ;;  %4487 = vmatpush.msra.mxu2 %v4444_v50  ;;  %v4412_v6 = vand.u32 4294901760, %v4411_v35 }
 0xa23   :  { %v4446_v34 = vsub.f32 %v4444_v50, %v4445_v32 }
 0xa24   :  { %v4369_v49 = vpop.permute.xlu1 %4368 }
 0xa25   :  { %v4404_v37 = vand.u32 4294901760, %v4369_v49  ;;  %v4447_v15 = vand.u32 4294901760, %v4446_v34 }
 0xa27   :  { %v4450_v7 = vsub.f32 %v4369_v49, %v4404_v37  ;;  %4405 = vmatpush.msrb.mxu0 %v4404_v37  ;;  %4448 = vmatpush.msrb.mxu1 %v4447_v15 }
 0xa28   :  { %4522 = vmatpush.msra.mxu3 %v4404_v37 }
 0xa29   :  { %4407 = vmatpush.msrb.mxu0 %v4406_v62  ;;  %4490 = vmatpush.msra.mxu2 %v4450_v7  ;;  %v4451_v52 = vand.u32 4294901760, %v4450_v7 }
 0xa2a   :  { %4524 = vmatpush.msra.mxu3 %v4406_v62  ;;  %4413 = vmatmul.f32.vlgmr.msrb.gmra.mxu0 %v4412_v6 }
 0xa2b   :  { %4528 = vmatmul.f32.vlgmr.msra.gmra.mxu3 %v4410_v18  ;;  %4553 = vmatpush.msra.mxu0 %v4439_v30  ;;  %v4452_v57 = vsub.f32 %v4450_v7, %v4451_v52 }
 0xa2c   :  { %4493 = vmatpush.msra.mxu2 %v4456_v56  ;;  %v280_v56 = vadd.f32 %v10412_v45, %v10414_v47 }
 0xa2d   :  { %4496 = vmatmul.f32.vlgmr.msra.gmra.mxu2 %v4409_v51  ;;  %4557 = vmatpush.msra.mxu0 %v4445_v32  ;;  %v4453_v11 = vand.u32 4294901760, %v4452_v57 }
 0xa2f   :  { %4561 = vmatpush.msra.mxu0 %v4451_v52  ;;  %4454 = vmatpush.msrb.mxu1 %v4453_v11 }
 0xa31   :  { %4460 = vmatpush.msrb.mxu1 %v4459_v3  ;;  %4565 = vmatpush.msra.mxu0 %v4457_v4  ;;  %v341_v3 = vadd.f32 %v10408_v42, %v280_v56 }
 0xa32   :  { %4462 = vmatmul.f32.vlgmr.msrb.gmra.mxu1 %v10719_v14 }
 0xa33   :  { %4588 = vmatpush.msra.mxu1 %v10702_v29 }
 0xa35   :  { %4590 = vmatpush.msra.mxu1 %v4402_v23 }
 0xa37   :  { %4592 = vmatpush.msra.mxu1 %v4404_v37 }
 0xa39   :  { %4594 = vmatpush.msra.mxu1 %v4406_v62 }
 0xa67   :  { %v4125_v38 = vpop.trf.xlu2 }
 0xa68   :  { %v4239_v54 = vrot.slane %v4125_v38, 4 }
 0xa81   :  { %v4221_v43 = vpop.trf.xlu0 }
 0xa82   :  { %v4249_v30 = vrot.slane %v4221_v43, 4 }
 0xa8b   :  { %v4157_v19 = vpop.trf.xlu1 }
 0xa8c   :  { %v4251_v53 = vrot.slane %v4157_v19, 4  ;;  %v4250_v9 = vsel %vm2451_vm15, %v4249_v30, %v4157_v19 }
 0xa8d   :  { %v4256_v8 = vperm.slane %v4250_v9, %v10648_v36 }
 0xa8e   :  { %v4252_v63 = vsel %vm2451_vm15, %v4221_v43, %v4251_v53 }
 0xa8f   :  { %v4260_v59 = vperm.slane %v4252_v63, %v10648_v36  ;;  %v4261_v24 = vrot.slane %v4256_v8, 4 }
 0xa91   :  { %v4273_v1 = vrot.slane %v4260_v59, 4 }
 0xa93   :  { %v4189_v17 = vpop.trf.xlu1 }
 0xa94   :  { %v4237_v39 = vrot.slane %v4189_v17, 4  ;;  %v4240_v29 = vsel %vm2451_vm15, %v4189_v17, %v4239_v54 }
 0xa95   :  { %v4248_v41 = vperm.slane %v4240_v29, %v10648_v36 }
 0xa96   :  { %v4238_v31 = vsel %vm2451_vm15, %v4237_v39, %v4125_v38  ;;  %v384_v38 = vadd.f32 %v10425_v60, %v341_v3 }
 0xa97   :  { %v4244_v20 = vperm.slane %v4238_v31, %v10648_v36  ;;  %v4274_v40 = vsel %vm2451_vm15, %v4273_v1, %v4248_v41  ;;  %v4275_v22 = vrot.slane %v4248_v41, 4 }
 0xa98   :  { %v4280_v25 = vperm.slane %v4274_v40, %v10655_v46  ;;  %v427_v41 = vadd.f32 %v10419_v55, %v384_v38  ;;  %v98_v38 = vld [vmem:[#allocation8 + $0x48] sm:$0xff] }
 0xa99   :  { %v4262_v33 = vsel %vm2451_vm15, %v4261_v24, %v4244_v20  ;;  %v4263_v21 = vrot.slane %v4244_v20, 4  ;;  %v4276_v51 = vsel %vm2451_vm15, %v4260_v59, %v4275_v22 }
 0xa9a   :  { %v4268_v61 = vperm.slane %v4262_v33, %v10655_v46  ;;  %v4284_v23 = vperm.slane %v4276_v51, %v10655_v46  ;;  %v4289_v18 = vrot.slane %v4280_v25, 4 }
 0xa9b   :  { %v4264_v62 = vsel %vm2451_vm15, %v4256_v8, %v4263_v21  ;;  %v476_v21 = vadd.f32 %v10431_v0, %v427_v41 }
 0xa9c   :  { %v4272_v50 = vperm.slane %v4264_v62, %v10655_v46  ;;  %v4291_v32 = vrot.slane %v4284_v23, 4  ;;  %v4285_v34 = vrot.slane %v4268_v61, 4  ;;  %v4290_v6 = vsel %vm2451_vm15, 0.0, %v4289_v18 }
 0xa9d   :  { %v513_v51 = vadd.f32 %v10421_v58, %v476_v21 }
 0xa9e   :  { %v4287_v49 = vrot.slane %v4272_v50, 4  ;;  %v4292_v35 = vsel %vm2451_vm15, 0.0, %v4291_v32  ;;  %v4304_v37 = vsel %vm2451_vm15, %v4291_v32, %v4280_v25  ;;  %v4286_v43 = vsel %vm2451_vm15, 0.0, %v4285_v34 }
 0xa9f   :  { %v4308_v4 = vperm.slane %v4304_v37, %v10648_v36  ;;  %v4309_v15 = vrot.slane %v4292_v35, 4 }
 0xaa0   :  { %v4288_v7 = vsel %vm2451_vm15, 0.0, %v4287_v49  ;;  %v4293_v52 = vsel %vm2451_vm15, %v4287_v49, %v4268_v61  ;;  %v10777_v61 = vld [vmem:[#allocation8 + $0x108] sm:$0xff] }
 0xaa1   :  { %v4310_v28 = vsel %vm2451_vm15, %v4309_v15, %v4290_v6  ;;  %v4297_v57 = vperm.slane %v4293_v52, %v10648_v36  ;;  %v4298_v45 = vrot.slane %v4288_v7, 4  ;;  %v4329_v11 = vrot.slane %v4308_v4, 4  ;;  %v101_v52 = vld [vmem:[#allocation8 + $0x60] sm:$0xff] }
 0xaa2   :  { %v4314_v19 = vperm.slane %v4310_v28, %v10648_v36  ;;  %v10780_v23 = vperm.slane %v10777_v61, 1  ;;  %v4623_v28 = vand.u32 4294901760, %v101_v52 }
 0xaa3   :  { %v4299_v30 = vsel %vm2451_vm15, %v4298_v45, %v4286_v43  ;;  %v4317_v53 = vrot.slane %v4297_v57, 4 }
 0xaa4   :  { %v4303_v63 = vperm.slane %v4299_v30, %v10648_v36  ;;  %v4330_v9 = vsel %vm2451_vm15, %v4314_v19, %v4329_v11  ;;  %v4327_v54 = vrot.slane %v4314_v19, 4  ;;  %v558_v6 = vadd.f32 %v10449_v13, %v10780_v23  ;;  %4741 = vmatpush.msrb.mxu1 %v4623_v28  ;;  %4624 = vmatpush.msrb.mxu2 %v4623_v28  ;;  %v99_v19 = vld [vmem:[#allocation8 + $0x50] sm:$0xff] }
 0xaa5   :  { %v4338_v59 = vperm.slane %v4330_v9, %v10655_v46  ;;  %v4661_v45 = vsub.f32 %v101_v52, %v4623_v28 }
 0xaa6   :  { %v4318_v8 = vsel %vm2451_vm15, %v4303_v63, %v4317_v53  ;;  %v4315_v17 = vrot.slane %v4303_v63, 4  ;;  %v4328_v42 = vsel %vm2451_vm15, %v4327_v54, %v4308_v4  ;;  %v617_v3 = vadd.f32 %v10445_v10, %v558_v6 }
 0xaa7   :  { %v4326_v39 = vperm.slane %v4318_v8, %v10655_v46  ;;  %v4343_v29 = vrot.slane %v4338_v59, 4  ;;  %v4334_v1 = vperm.slane %v4328_v42, %v10655_v46  ;;  %4707 = vmatpush.msrb.mxu0 %v4661_v45  ;;  %v4627_v53 = vand.u32 4294901760, %v99_v19 }
 0xaa8   :  { %v4316_v60 = vsel %vm2451_vm15, %v4315_v17, %v4297_v57  ;;  %v100_v57 = vld [vmem:[#allocation8 + $0x58] sm:$0xff]  ;;  %v4629_v54 = vand.u32 4294901760, %v98_v38 }
 0xaa9   :  { %v4344_v31 = vsel %vm2451_vm15, %v4343_v29, %v4326_v39  ;;  %v4345_v24 = vrot.slane %v4326_v39, 4  ;;  %v4322_v20 = vperm.slane %v4316_v60, %v10655_v46  ;;  %v4339_v40 = vrot.slane %v4334_v1, 4 }
 0xaaa   :  { %4352 = vrot.lane.b32.xlu0 %v4344_v31, %s10194_s13  ;;  %v4625_v11 = vand.u32 4294901760, %v100_v57  ;;  %v4673_v9 = vsub.f32 %v99_v19, %v4627_v53  ;;  %v4679_v42 = vsub.f32 %v98_v38, %v4629_v54 }
 0xaab   :  { %v4346_v22 = vsel %vm2451_vm15, %v4338_v59, %v4345_v24  ;;  %v4341_v25 = vrot.slane %v4322_v20, 4  ;;  %v4340_v33 = vsel %vm2451_vm15, %v4339_v40, %v4322_v20  ;;  %v658_v59 = vadd.f32 %v10451_v16, %v617_v3 }
 0xaac   :  { %4356 = vrot.lane.b32.xlu2 %v4346_v22, %s10193_s12  ;;  %v4667_v30 = vsub.f32 %v100_v57, %v4625_v11  ;;  %4743 = vmatpush.msrb.mxu1 %v4625_v11  ;;  %v4674_v17 = vand.u32 4294901760, %v4673_v9  ;;  %v4680_v41 = vand.u32 4294901760, %v4679_v42 }
 0xaad   :  { %v4342_v55 = vsel %vm2451_vm15, %v4334_v1, %v4341_v25  ;;  %4626 = vmatpush.msrb.mxu2 %v4625_v11  ;;  %v699_v16 = vadd.f32 %v10447_v12, %v658_v59  ;;  %v4414_v25 = vpop.f32.mrf.mxu0 }
 0xaae   :  { %4348 = vrot.lane.b32.xlu1 %v4342_v55, %s10181_s24  ;;  %v4668_v13 = vand.u32 4294901760, %v4667_v30  ;;  %4710 = vmatpush.msrb.mxu0 %v4667_v30  ;;  %v4675_v1 = vsub.f32 %v4673_v9, %v4674_v17  ;;  %v4681_v24 = vsub.f32 %v4679_v42, %v4680_v41 }
 0xaaf   :  { %4745 = vmatpush.msrb.mxu1 %v4627_v53  ;;  %4628 = vmatpush.msrb.mxu2 %v4627_v53  ;;  %v746_v20 = vadd.f32 %v10459_v27, %v699_v16  ;;  %v4463_v12 = vpop.f32.mrf.mxu1 }
 0xab0   :  { %v4669_v10 = vsub.f32 %v4667_v30, %v4668_v13  ;;  %4713 = vmatpush.msrb.mxu0 %v4673_v9  ;;  %v4676_v31 = vand.u32 4294901760, %v4675_v1  ;;  %v4682_v40 = vand.u32 4294901760, %v4681_v24  ;;  %v4497_v27 = vpop.f32.mrf.mxu2 }
 0xab1   :  { %4747 = vmatpush.msrb.mxu1 %v4629_v54  ;;  %4630 = vmatpush.msrb.mxu2 %v4629_v54  ;;  %v781_v22 = vadd.f32 %v10457_v26, %v746_v20 }
 0xab2   :  { %4828 = vrot.lane.b32.xlu0 %v513_v51, %s10190_s11  ;;  %v4670_v29 = vand.u32 4294901760, %v4669_v10  ;;  %4716 = vmatpush.msrb.mxu0 %v4679_v42 }
 0xab6   :  { %4379 = vrot.lane.b32.xlu1 %v10780_v23, %s10186_s3 }
 0xb06   :  { %v4357_v18 = vpop.permute.xlu2 %4356 }
 0xb1c   :  { %v4353_v62 = vpop.permute.xlu0 %4352 }
 0xb20   :  { %v4349_v0 = vpop.permute.xlu1 %4348 }
 0xb21   :  { %v4359_v50 = vsel %vm937_vm14, %v4340_v33, %v4349_v0 }
 0xb22   :  { %v4360_v32 = vsel %vm2574_vm1, %v4359_v50, %v4353_v62  ;;  %v4529_v50 = vpop.f32.mrf.mxu3 }
 0xb23   :  { %v4361_v56 = vsel %vm2576_vm2, %v4360_v32, %v4357_v18 }
 0xb24   :  { %v4386_v58 = vsel %vm123_vm0, %v4361_v56, 0  ;;  %v4829_v34 = vpop.permute.xlu0 %4828 }
 0xb25   :  { %4903 = vrot.lane.b32.xlu0 %v4829_v34, %s10187_s8  ;;  %4901 = vrot.lane.b32.xlu2 %v4829_v34, %s10188_s9  ;;  %v4416_v49 = vand.u32 4294901760, %v4386_v58 }
 0xb26   :  { %4899 = vrot.lane.b32.xlu1 %v4829_v34, %s10189_s10 }
 0xb27   :  { %4466 = vmatmul.f32.gmra.mxu1 %v4416_v49  ;;  %v4417_v35 = vsub.f32 %v4386_v58, %v4416_v49 }
 0xb28   :  { %v4380_v43 = vpop.permute.xlu1 %4379 }
 0xb29   :  { %4501 = vmatmul.f32.gmra.mxu2 %v4417_v35  ;;  %v4418_v37 = vand.u32 4294901760, %v4417_v35  ;;  %v4415_v33 = vadd.f32 %v4414_v25, %v4380_v43 }
 0xb2b   :  { %4534 = vmatmul.f32.gmra.mxu3 %v4418_v37  ;;  %v4419_v4 = vsub.f32 %v4417_v35, %v4418_v37  ;;  %v4464_v55 = vadd.f32 %v4463_v12, %v4415_v33 }
 0xb2d   :  { %v4420_v15 = vand.u32 4294901760, %v4419_v4  ;;  %v4498_v0 = vadd.f32 %v4497_v27, %v4464_v55 }
 0xb2e   :  { %4967 = vrot.lane.b32.xlu1 %v4829_v34, %s10186_s3 }
 0xb2f   :  { %4421 = vmatmul.f32.gmra.mxu0 %v4420_v15  ;;  %4596 = vmatmul.f32.vlgmr.msra.gmra.mxu1 %v10719_v14  ;;  %v4530_v32 = vadd.f32 %v4529_v50, %v4498_v0 }
 0xb37   :  { %4567 = vmatmul.f32.vlgmr.msra.gmra.mxu0 %v10719_v14  ;;  %4600 = vmatmul.f32.gmra.mxu1 %v4416_v49  ;;  %v4662_v14 = vand.u32 4294901760, %v4661_v45 }
 0xb39   :  { %v4663_v63 = vsub.f32 %v4661_v45, %v4662_v14  ;;  %4776 = vmatpush.msra.mxu2 %v4662_v14 }
 0xb3b   :  { %v4664_v8 = vand.u32 4294901760, %v4663_v63  ;;  %4780 = vmatpush.msra.mxu2 %v4668_v13  ;;  %v296_v13 = vadd.f32 %v10416_v48, %v10414_v47  ;;  %v10828_v48 = vperm.slane %v10777_v61, 2 }
 0xb3d   :  { %4665 = vmatpush.msrb.mxu3 %v4664_v8  ;;  %4784 = vmatpush.msra.mxu2 %v4674_v17  ;;  %v11741_v17 = vld [vmem:[#allocation21_spill] sm:$0xff] }
 0xb3f   :  { %4571 = vmatmul.f32.gmra.mxu0 %v4416_v49  ;;  %4671 = vmatpush.msrb.mxu3 %v4670_v29 }
 0xb40   :  { %4788 = vmatpush.msra.mxu2 %v4680_v41 }
 0xb41   :  { %4677 = vmatpush.msrb.mxu3 %v4676_v31 }
 0xb43   :  { %4683 = vmatpush.msrb.mxu3 %v4682_v40 }
 0xb45   :  { %4811 = vmatpush.msra.mxu3 %v4623_v28 }
 0xb47   :  { %4813 = vmatpush.msra.mxu3 %v4625_v11 }
 0xb49   :  { %4815 = vmatpush.msra.mxu3 %v4627_v53 }
 0xb4b   :  { %4817 = vmatpush.msra.mxu3 %v4629_v54  ;;  %v349_v54 = vadd.f32 %v10410_v44, %v296_v13 }
 0xb4d   :  { %v394_v59 = vadd.f32 %v10441_v5, %v349_v54 }
 0xb4f   :  { %v439_v8 = vadd.f32 %v10435_v2, %v394_v59 }
 0xb51   :  { %v484_v42 = vadd.f32 %v11741_v17, %v439_v8 }
 0xb7f   :  { %v4902_v7 = vpop.permute.xlu2 %4901 }
 0xb80   :  { %4975 = vrot.lane.b32.xlu0 %v4902_v7, %s10186_s3 }
 0xb97   :  { %v4904_v39 = vpop.permute.xlu0 %4903 }
 0xb98   :  { %v4900_v60 = vpop.permute.xlu1 %4899  ;;  %4979 = vrot.lane.b32.xlu1 %v4904_v39, %s10186_s3  ;;  %v11742_v39 = vld [vmem:[#allocation20_spill] sm:$0xff] }
 0xb99   :  { %4971 = vrot.lane.b32.xlu2 %v4900_v60, %s10186_s3  ;;  %v521_v29 = vadd.f32 %v11742_v39, %v484_v42 }
 0xba1   :  { %4831 = vrot.lane.b32.xlu2 %v781_v22, %s10190_s11  ;;  %v10833_v22 = vpop.permute.xlu1 %4967 }
 0xba4   :  { %v4467_v21 = vpop.f32.mrf.mxu1 }
 0xbac   :  { %v4422_v51 = vpop.f32.mrf.mxu0  ;;  %v4597_v56 = vpop.f32.mrf.mxu1 }
 0xbad   :  { %v4423_v62 = vadd.f32 %v4422_v51, %v4380_v43  ;;  %v4502_v34 = vpop.f32.mrf.mxu2 }
 0xbae   :  { %v4535_v4 = vpop.f32.mrf.mxu3 }
 0xbaf   :  { %v4468_v18 = vadd.f32 %v4467_v21, %v4423_v62 }
 0xbb1   :  { %v4503_v49 = vadd.f32 %v4502_v34, %v4468_v18 }
 0xbb3   :  { %v4536_v7 = vadd.f32 %v4535_v4, %v4503_v49 }
 0xbb4   :  { %v4568_v58 = vpop.f32.mrf.mxu0  ;;  %v4601_v45 = vpop.f32.mrf.mxu1 }
 0xbb5   :  { %v4569_v26 = vadd.f32 %v4568_v58, %v4530_v32 }
 0xbb7   :  { %v10805_v35 = vadd.f32 %v4597_v56, %v4569_v26 }
 0xbb9   :  { %v4606_v37 = vsel %vm123_vm0, %v10805_v35, 0 }
 0xbba   :  { %v4631_v15 = vand.u32 4294901760, %v4606_v37 }
 0xbbc   :  { %v4632_v6 = vsub.f32 %v4606_v37, %v4631_v15  ;;  %v4572_v52 = vpop.f32.mrf.mxu0  ;;  %4685 = vmatmul.f32.vlgmr.msrb.gmra.mxu3 %v4631_v15 }
 0xbbd   :  { %v4573_v28 = vadd.f32 %v4572_v52, %v4536_v7 }
 0xbbe   :  { %v4633_v57 = vand.u32 4294901760, %v4632_v6  ;;  %4719 = vmatmul.f32.vlgmr.msrb.gmra.mxu0 %v4632_v6 }
 0xbbf   :  { %v10809_v11 = vadd.f32 %v4601_v45, %v4573_v28 }
 0xbc0   :  { %v4634_v3 = vsub.f32 %v4632_v6, %v4633_v57  ;;  %4751 = vmatmul.f32.vlgmr.msrb.gmra.mxu1 %v4633_v57 }
 0xbc1   :  { %v4609_v43 = vsel %vm123_vm0, %v10809_v11, 0 }
 0xbc2   :  { %v4635_v19 = vand.u32 4294901760, %v4634_v3  ;;  %v4639_v14 = vand.u32 4294901760, %v4609_v43 }
 0xbc4   :  { %4636 = vmatmul.f32.vlgmr.msrb.gmra.mxu2 %v4635_v19  ;;  %4689 = vmatmul.f32.gmra.mxu3 %v4639_v14  ;;  %v4640_v30 = vsub.f32 %v4609_v43, %v4639_v14 }
 0xbc6   :  { %4724 = vmatmul.f32.gmra.mxu0 %v4640_v30  ;;  %v4641_v53 = vand.u32 4294901760, %v4640_v30 }
 0xbc8   :  { %4757 = vmatmul.f32.gmra.mxu1 %v4641_v53  ;;  %v4642_v38 = vsub.f32 %v4640_v30, %v4641_v53 }
 0xbca   :  { %v4643_v63 = vand.u32 4294901760, %v4642_v38 }
 0xbcc   :  { %4644 = vmatmul.f32.gmra.mxu2 %v4643_v63  ;;  %4819 = vmatmul.f32.vlgmr.msra.gmra.mxu3 %v4631_v15 }
 0xbd4   :  { %4790 = vmatmul.f32.vlgmr.msra.gmra.mxu2 %v4631_v15  ;;  %4823 = vmatmul.f32.gmra.mxu3 %v4639_v14 }
 0xbdc   :  { %4794 = vmatmul.f32.gmra.mxu2 %v4639_v14 }
 0xbf2   :  { %v10866_v7 = vpop.permute.xlu0 %4975 }
 0xbf3   :  { %v10815_v9 = vpop.permute.xlu2 %4971 }
 0xbfb   :  { %v4832_v10 = vpop.permute.xlu2 %4831 }
 0xbfc   :  { %4907 = vrot.lane.b32.xlu1 %v4832_v10, %s10188_s9  ;;  %4905 = vrot.lane.b32.xlu2 %v4832_v10, %s10189_s10 }
 0xc04   :  { %6771 = vrot.lane.b32.xlu2 %v521_v29, %s10190_s11 }
 0xc0a   :  { %v10837_v27 = vpop.permute.xlu1 %4979 }
 0xc0c   :  { %4909 = vrot.lane.b32.xlu2 %v4832_v10, %s10187_s8 }
 0xc14   :  { %5759 = vrot.lane.b32.xlu2 %v4832_v10, %s10190_s11 }
 0xc3b   :  { %v4720_v60 = vpop.f32.mrf.mxu0 }
 0xc3d   :  { %v4752_v31 = vpop.f32.mrf.mxu1 }
 0xc3f   :  { %v4686_v47 = vpop.f32.mrf.mxu3 }
 0xc43   :  { %v4725_v21 = vpop.f32.mrf.mxu0 }
 0xc45   :  { %v4758_v62 = vpop.f32.mrf.mxu1 }
 0xc47   :  { %v4637_v44 = vpop.f32.mrf.mxu2  ;;  %v4690_v16 = vpop.f32.mrf.mxu3 }
 0xc48   :  { %v4638_v5 = vadd.f32 %v4637_v44, %v10828_v48 }
 0xc4a   :  { %v4687_v41 = vadd.f32 %v4686_v47, %v4638_v5 }
 0xc4c   :  { %v4721_v20 = vadd.f32 %v4720_v60, %v4687_v41 }
 0xc4e   :  { %v4753_v61 = vadd.f32 %v4752_v31, %v4721_v20 }
 0xc4f   :  { %v4645_v2 = vpop.f32.mrf.mxu2  ;;  %v4820_v55 = vpop.f32.mrf.mxu3 }
 0xc50   :  { %v4646_v24 = vadd.f32 %v4645_v2, %v10828_v48 }
 0xc52   :  { %v4691_v25 = vadd.f32 %v4690_v16, %v4646_v24 }
 0xc54   :  { %v4726_v51 = vadd.f32 %v4725_v21, %v4691_v25 }
 0xc56   :  { %v4906_v1 = vpop.permute.xlu2 %4905  ;;  %v4759_v32 = vadd.f32 %v4758_v62, %v4726_v51 }
 0xc57   :  { %5763 = vrot.lane.b32.xlu2 %v4906_v1, %s10190_s11  ;;  %v4791_v40 = vpop.f32.mrf.mxu2  ;;  %v4824_v58 = vpop.f32.mrf.mxu3 }
 0xc58   :  { %v4792_v33 = vadd.f32 %v4791_v40, %v4753_v61 }
 0xc5a   :  { %v4821_v0 = vadd.f32 %v4820_v55, %v4792_v33 }
 0xc5c   :  { %v4845_v54 = vrot.slane %v4821_v0, 4 }
 0xc5e   :  { %v6772_v12 = vpop.permute.xlu2 %6771 }
 0xc5f   :  { %6910 = vrot.lane.b32.xlu1 %v6772_v12, %s10186_s3  ;;  %6842 = vrot.lane.b32.xlu2 %v6772_v12, %s10189_s10  ;;  %v4795_v50 = vpop.f32.mrf.mxu2 }
 0xc60   :  { %v4796_v56 = vadd.f32 %v4795_v50, %v4759_v32 }
 0xc62   :  { %v10841_v26 = vadd.f32 %v4824_v58, %v4796_v56 }
 0xc64   :  { %v6788_v51 = vrot.slane %v10841_v26, 4 }
 0xc66   :  { %v4910_v18 = vpop.permute.xlu2 %4909 }
 0xc67   :  { %4840 = vrot.lane.b32.xlu1 %v4821_v0, %s10187_s8  ;;  %5771 = vrot.lane.b32.xlu0 %v4910_v18, %s10190_s11 }
 0xc6e   :  { %v4908_v34 = vpop.permute.xlu1 %4907  ;;  %v10858_v49 = vpop.permute.xlu2 %5759 }
 0xc6f   :  { %6783 = vrot.lane.b32.xlu1 %v10841_v26, %s10187_s8  ;;  %6846 = vrot.lane.b32.xlu0 %v6772_v12, %s10187_s8 }
 0xc70   :  { %5767 = vrot.lane.b32.xlu2 %v4908_v34, %s10190_s11 }
 0xc77   :  { %6908 = vrot.lane.b32.xlu1 %v10841_v26, %s10186_s3  ;;  %4837 = vrot.lane.b32.xlu0 %v4821_v0, %s10188_s9 }
 0xc78   :  { %6844 = vrot.lane.b32.xlu2 %v6772_v12, %s10188_s9 }
 0xc7f   :  { %5757 = vrot.lane.b32.xlu0 %v4821_v0, %s10190_s11 }
 0xc80   :  { %4834 = vrot.lane.b32.xlu2 %v4821_v0, %s10189_s10 }
 0xc88   :  { %4965 = vrot.lane.b32.xlu2 %v4821_v0, %s10186_s3 }
 0xc90   :  { %6777 = vrot.lane.b32.xlu2 %v10841_v26, %s10189_s10 }
 0xc98   :  { %6780 = vrot.lane.b32.xlu2 %v10841_v26, %s10188_s9 }
 0xcb1   :  { %v10860_v37 = vpop.permute.xlu2 %5763 }
 0xcb9   :  { %v10862_v4 = vpop.permute.xlu2 %6842 }
 0xcca   :  { %v10864_v15 = vpop.permute.xlu2 %5767 }
 0xcd1   :  { %v10868_v6 = vpop.permute.xlu1 %6910 }
 0xcd2   :  { %v10870_v52 = vpop.permute.xlu2 %6844 }
 0xcd9   :  { %v10872_v28 = vpop.permute.xlu0 %5771  ;;  %v4841_v57 = vpop.permute.xlu1 %4840 }
 0xcda   :  { %v4855_v45 = vrot.slane %v4841_v57, 4  ;;  %v4835_v3 = vpop.permute.xlu2 %4834  ;;  %4977 = vrot.lane.b32.xlu2 %v4841_v57, %s10186_s3 }
 0xcdb   :  { %v4857_v43 = vrot.slane %v4835_v3, 4  ;;  %4969 = vrot.lane.b32.xlu0 %v4835_v3, %s10186_s3 }
 0xcdc   :  { %v4856_v19 = vsel %vm2451_vm15, %v4855_v45, %v4835_v3 }
 0xcdd   :  { %v4858_v14 = vsel %vm2451_vm15, %v4841_v57, %v4857_v43  ;;  %v4862_v13 = vperm.slane %v4856_v19, %v10648_v36 }
 0xcde   :  { %v4866_v63 = vperm.slane %v4858_v14, %v10648_v36 }
 0xcdf   :  { %v4867_v2 = vrot.slane %v4862_v13, 4 }
 0xce0   :  { %v4879_v39 = vrot.slane %v4866_v63, 4 }
 0xce1   :  { %v10878_v30 = vpop.permute.xlu0 %6846  ;;  %v10883_v38 = vpop.permute.xlu1 %6783 }
 0xce2   :  { %v10880_v53 = vpop.permute.xlu2 %4965  ;;  %5761 = vrot.lane.b32.xlu2 %v4835_v3, %s10190_s11  ;;  %v6798_v59 = vrot.slane %v10883_v38, 4 }
 0xce9   :  { %v4838_v8 = vpop.permute.xlu0 %4837 }
 0xcea   :  { %v4843_v10 = vrot.slane %v4838_v8, 4  ;;  %v4846_v17 = vsel %vm2451_vm15, %v4838_v8, %v4845_v54  ;;  %v10889_v42 = vpop.permute.xlu2 %6777  ;;  %4973 = vrot.lane.b32.xlu1 %v4838_v8, %s10186_s3  ;;  %5765 = vrot.lane.b32.xlu2 %v4838_v8, %s10190_s11 }
 0xceb   :  { %v4854_v29 = vperm.slane %v4846_v17, %v10648_v36  ;;  %v6799_v44 = vsel %vm2451_vm15, %v6798_v59, %v10889_v42  ;;  %v6800_v47 = vrot.slane %v10889_v42, 4 }
 0xcec   :  { %v4844_v5 = vsel %vm2451_vm15, %v4843_v10, %v4821_v0  ;;  %v6805_v24 = vperm.slane %v6799_v44, %v10648_v36 }
 0xced   :  { %v4850_v1 = vperm.slane %v4844_v5, %v10648_v36  ;;  %v4880_v41 = vsel %vm2451_vm15, %v4879_v39, %v4854_v29  ;;  %v4881_v60 = vrot.slane %v4854_v29, 4  ;;  %v6801_v16 = vsel %vm2451_vm15, %v10883_v38, %v6800_v47 }
 0xcee   :  { %v4886_v31 = vperm.slane %v4880_v41, %v10655_v46  ;;  %v6809_v25 = vperm.slane %v6801_v16, %v10648_v36  ;;  %v6810_v32 = vrot.slane %v6805_v24, 4 }
 0xcef   :  { %v4868_v20 = vsel %vm2451_vm15, %v4867_v2, %v4850_v1  ;;  %v4869_v40 = vrot.slane %v4850_v1, 4  ;;  %v4882_v12 = vsel %vm2451_vm15, %v4866_v63, %v4881_v60 }
 0xcf0   :  { %v4874_v61 = vperm.slane %v4868_v20, %v10655_v46  ;;  %v4890_v33 = vperm.slane %v4882_v12, %v10655_v46  ;;  %v4895_v21 = vrot.slane %v4886_v31, 4  ;;  %v6822_v56 = vrot.slane %v6809_v25, 4 }
 0xcf1   :  { %v4870_v55 = vsel %vm2451_vm15, %v4862_v13, %v4869_v40 }
 0xcf2   :  { %v4878_v62 = vperm.slane %v4870_v55, %v10655_v46  ;;  %v4891_v0 = vrot.slane %v4874_v61, 4  ;;  %v4897_v50 = vrot.slane %v4890_v33, 4  ;;  %v10912_v18 = vpop.permute.xlu2 %6780  ;;  %5769 = vrot.lane.b32.xlu2 %v4841_v57, %s10190_s11  ;;  %v4896_v3 = vsel %vm2451_vm15, 0.0, %v4895_v21 }
 0xcf3   :  { %v6786_v58 = vrot.slane %v10912_v18, 4  ;;  %v6789_v34 = vsel %vm2451_vm15, %v10912_v18, %v6788_v51 }
 0xcf4   :  { %v4893_v45 = vrot.slane %v4878_v62, 4  ;;  %v4898_v43 = vsel %vm2451_vm15, 0.0, %v4897_v50  ;;  %v4922_v19 = vsel %vm2451_vm15, %v4897_v50, %v4886_v31  ;;  %v6797_v13 = vperm.slane %v6789_v34, %v10648_v36 }
 0xcf5   :  { %v4926_v14 = vperm.slane %v4922_v19, %v10648_v36  ;;  %v4927_v63 = vrot.slane %v4898_v43, 4  ;;  %v6787_v57 = vsel %vm2451_vm15, %v6786_v58, %v10841_v26  ;;  %v4892_v54 = vsel %vm2451_vm15, 0.0, %v4891_v0 }
 0xcf6   :  { %v4894_v59 = vsel %vm2451_vm15, 0.0, %v4893_v45  ;;  %v4911_v8 = vsel %vm2451_vm15, %v4893_v45, %v4874_v61  ;;  %v6793_v10 = vperm.slane %v6787_v57, %v10648_v36  ;;  %v6823_v1 = vsel %vm2451_vm15, %v6822_v56, %v6797_v13 }
 0xcf7   :  { %v4915_v17 = vperm.slane %v4911_v8, %v10648_v36  ;;  %v4916_v39 = vrot.slane %v4894_v59, 4  ;;  %v4928_v29 = vsel %vm2451_vm15, %v4927_v63, %v4896_v3  ;;  %v4947_v44 = vrot.slane %v4926_v14, 4 }
 0xcf8   :  { %v4932_v47 = vperm.slane %v4928_v29, %v10648_v36  ;;  %v6811_v2 = vsel %vm2451_vm15, %v6810_v32, %v6793_v10  ;;  %v6812_v5 = vrot.slane %v6793_v10, 4  ;;  %v6824_v31 = vrot.slane %v6797_v13, 4 }
 0xcf9   :  { %v4917_v41 = vsel %vm2451_vm15, %v4916_v39, %v4892_v54  ;;  %v4935_v60 = vrot.slane %v4915_v17, 4  ;;  %v6817_v16 = vperm.slane %v6811_v2, %v10655_v46  ;;  %v6829_v55 = vperm.slane %v6823_v1, %v10655_v46 }
 0xcfa   :  { %v4921_v20 = vperm.slane %v4917_v41, %v10648_v36  ;;  %v4945_v40 = vrot.slane %v4932_v47, 4  ;;  %v4948_v12 = vsel %vm2451_vm15, %v4932_v47, %v4947_v44  ;;  %v6813_v61 = vsel %vm2451_vm15, %v6805_v24, %v6812_v5 }
 0xcfb   :  { %v6821_v33 = vperm.slane %v6813_v61, %v10655_v46  ;;  %v6825_v21 = vsel %vm2451_vm15, %v6809_v25, %v6824_v31  ;;  %v6834_v50 = vrot.slane %v6817_v16, 4  ;;  %v6838_v58 = vrot.slane %v6829_v55, 4 }
 0xcfc   :  { %v4933_v51 = vrot.slane %v4921_v20, 4  ;;  %v4946_v62 = vsel %vm2451_vm15, %v4945_v40, %v4926_v14  ;;  %v6833_v0 = vperm.slane %v6825_v21, %v10655_v46  ;;  %v4936_v24 = vsel %vm2451_vm15, %v4921_v20, %v4935_v60 }
 0xcfd   :  { %v4952_v32 = vperm.slane %v4946_v62, %v10655_v46  ;;  %v6836_v56 = vrot.slane %v6821_v33, 4  ;;  %4989 = vxpose.xlu0.b32.start [1/2] (short) (narrow) %v10880_v53, 8  ;;  %v4956_v34 = vperm.slane %v4948_v12, %v10655_v46  ;;  %v4944_v3 = vperm.slane %v4936_v24, %v10655_v46 }
 0xcfe   :  { %v6840_v45 = vrot.slane %v6833_v0, 4  ;;  %v4934_v25 = vsel %vm2451_vm15, %v4933_v51, %v4915_v17  ;;  %v6835_v43 = vsel %vm2451_vm15, 0.0, %v6834_v50  ;;  %v6839_v57 = vsel %vm2451_vm15, 0.0, %v6838_v58 }
 0xcff   :  { %v6837_v19 = vsel %vm2451_vm15, 0.0, %v6836_v56  ;;  %v6854_v14 = vsel %vm2451_vm15, %v6836_v56, %v6817_v16  ;;  %v4940_v63 = vperm.slane %v4934_v25, %v10655_v46  ;;  %v4957_v10 = vrot.slane %v4952_v32, 4 }
 0xd00   :  { %v6841_v53 = vsel %vm2451_vm15, 0.0, %v6840_v45  ;;  %v6859_v13 = vrot.slane %v6837_v19, 4  ;;  %v6865_v54 = vsel %vm2451_vm15, %v6840_v45, %v6829_v55  ;;  %v6858_v39 = vperm.slane %v6854_v14, %v10648_v36 }
 0xd01   :  { %v6869_v59 = vperm.slane %v6865_v54, %v10648_v36  ;;  %v6870_v8 = vrot.slane %v6841_v53, 4  ;;  %v4959_v17 = vrot.slane %v4940_v63, 4  ;;  %v4961_v44 = vrot.slane %v4956_v34, 4 }
 0xd02   :  { %v6860_v29 = vsel %vm2451_vm15, %v6859_v13, %v6835_v43  ;;  %v4963_v47 = vrot.slane %v4944_v3, 4  ;;  %v4958_v41 = vsel %vm2451_vm15, %v4957_v10, %v4940_v63  ;;  %v6878_v40 = vrot.slane %v6858_v39, 4  ;;  %v5758_v43 = vpop.permute.xlu0 %5757  ;;  %v11001_v63 = vpop.permute.xlu1 %6908 }
 0xd03   :  { %v6864_v2 = vperm.slane %v6860_v29, %v10648_v36  ;;  %v6871_v5 = vsel %vm2451_vm15, %v6870_v8, %v6839_v57  ;;  %v6890_v1 = vrot.slane %v6869_v59, 4  ;;  %v10965_v16 = vsel %vm2451_vm15, %v4952_v32, %v4959_v17 }
 0xd04   :  { %v6875_v60 = vperm.slane %v6871_v5, %v10648_v36  ;;  %v10968_v31 = vsel %vm2451_vm15, %v4961_v44, %v4944_v3  ;;  %v10974_v21 = vsel %vm2451_vm15, %v4956_v34, %v4963_v47  ;;  %v5267_v29 = vsel %vm937_vm14, %v10965_v16, 0 }
 0xd05   :  { %v6876_v20 = vrot.slane %v6864_v2, 4  ;;  %4990 = vxpose.xlu0.b32.end [2/2] (short) (narrow) %v10833_v22, 8  ;;  %v6879_v0 = vsel %vm2451_vm15, %v6864_v2, %v6878_v40  ;;  %v5286_v44 = vand.u32 4294901760, %v5267_v29 }
 0xd06   :  { %v6888_v12 = vrot.slane %v6875_v60, 4  ;;  %v6891_v61 = vsel %vm2451_vm15, %v6875_v60, %v6890_v1  ;;  %v6887_v56 = vperm.slane %v6879_v0, %v10655_v46 }
 0xd07   :  { %v6899_v33 = vperm.slane %v6891_v61, %v10655_v46  ;;  %v6877_v55 = vsel %vm2451_vm15, %v6876_v20, %v6858_v39  ;;  %v5287_v47 = vsub.f32 %v5267_v29, %v5286_v44 }
 0xd08   :  { %v6889_v51 = vsel %vm2451_vm15, %v6888_v12, %v6869_v59  ;;  %v10979_v62 = vperm.slane %v6877_v55, %v10655_v46  ;;  %v6906_v34 = vrot.slane %v6887_v56, 4 }
 0xd09   :  { %v10983_v22 = vperm.slane %v6889_v51, %v10655_v46  ;;  %v6904_v32 = vrot.slane %v6899_v33, 4  ;;  %v5288_v2 = vand.u32 4294901760, %v5287_v47 }
 0xd0a   :  { %v6902_v50 = vrot.slane %v10979_v62, 4  ;;  %v10995_v45 = vsel %vm2451_vm15, %v6899_v33, %v6906_v34  ;;  %v5416_v33 = vsel %vm937_vm14, %v10968_v31, 0 }
 0xd0b   :  { %v10992_v24 = vsel %vm2451_vm15, %v6904_v32, %v6887_v56  ;;  %v5289_v5 = vsub.f32 %v5287_v47, %v5288_v2  ;;  %v5435_v51 = vand.u32 4294901760, %v5416_v33 }
 0xd0c   :  { %v10989_v58 = vsel %vm2451_vm15, %v10983_v22, %v6902_v50 }
 0xd0d   :  { %v5290_v60 = vand.u32 4294901760, %v5289_v5  ;;  %v5436_v50 = vsub.f32 %v5416_v33, %v5435_v51 }
 0xd0f   :  { %v5437_v56 = vand.u32 4294901760, %v5436_v50 }
 0xd34   :  { %v4978_v25 = vpop.permute.xlu2 %4977 }
 0xd35   :  { %5085 = vxpose.xlu0.b32.start [1/2] (short) (narrow) %v4978_v25, 8  ;;  %v5438_v25 = vsub.f32 %v5436_v50, %v5437_v56 }
 0xd3c   :  { %v5762_v3 = vpop.permute.xlu2 %5761 }
 0xd3d   :  { %5086 = vxpose.xlu0.b32.end [2/2] (short) (narrow) %v10837_v27, 8  ;;  %v5118_v27 = vsel %vm937_vm14, %v4958_v41, 0 }
 0xd3e   :  { %v5137_v13 = vand.u32 4294901760, %v5118_v27 }
 0xd40   :  { %v5138_v54 = vsub.f32 %v5118_v27, %v5137_v13 }
 0xd42   :  { %v5139_v59 = vand.u32 4294901760, %v5138_v54 }
 0xd44   :  { %v10998_v19 = vpop.permute.xlu2 %5765  ;;  %v5140_v8 = vsub.f32 %v5138_v54, %v5139_v59 }
 0xd45   :  { %5813 = vxpose.xlu0.b32.start [1/2] (short) (narrow) %v5762_v3, 8 }
 0xd46   :  { %v5141_v17 = vand.u32 4294901760, %v5140_v8  ;;  %v87_v8 = vld [vmem:[#allocation7] sm:$0xff] }
 0xd4c   :  { %v5770_v57 = vpop.permute.xlu2 %5769 }
 0xd4d   :  { %v4970_v14 = vpop.permute.xlu0 %4969  ;;  %5814 = vxpose.xlu0.b32.end [2/2] (short) (narrow) %v10860_v37, 8 }
 0xd4e   :  { %5021 = vxpose.xlu2.b32.start [1/2] (short) (narrow) %v4970_v14, 8 }
 0xd55   :  { %5877 = vxpose.xlu0.b32.start [1/2] (short) (narrow) %v5770_v57, 8 }
 0xd56   :  { %5022 = vxpose.xlu2.b32.end [2/2] (short) (narrow) %v10815_v9, 8 }
 0xd5c   :  { %v4974_v53 = vpop.permute.xlu1 %4973 }
 0xd5d   :  { %5053 = vxpose.xlu1.b32.start [1/2] (short) (narrow) %v4974_v53, 8  ;;  %5878 = vxpose.xlu0.b32.end [2/2] (short) (narrow) %v10872_v28, 8  ;;  %v5439_v53 = vand.u32 4294901760, %v5438_v25 }
 0xd65   :  { %5054 = vxpose.xlu1.b32.end [2/2] (short) (narrow) %v10866_v7, 8 }
 0xda1   :  { %v5005_v37 = vpop.trf.xlu0 }
 0xda2   :  { %v5135_v10 = vand.u32 4294901760, %v5005_v37 }
 0xda4   :  { %v5162_v39 = vsub.f32 %v5005_v37, %v5135_v10  ;;  %5136 = vmatpush.msra.mxu0 %v5135_v10  ;;  %5212 = vmatpush.msrb.mxu3 %v5135_v10 }
 0xda5   :  { %5142 = vmatmul.f32.vlgmr.msra.gmra.mxu0 %v5141_v17  ;;  %5216 = vmatmul.f32.vlgmr.msrb.gmra.mxu3 %v5139_v59 }
 0xda6   :  { %v5163_v9 = vand.u32 4294901760, %v5162_v39  ;;  %5189 = vmatpush.msrb.mxu2 %v5162_v39 }
 0xda7   :  { %5192 = vmatmul.f32.vlgmr.msrb.gmra.mxu2 %v5138_v54 }
 0xda8   :  { %v5164_v28 = vsub.f32 %v5162_v39, %v5163_v9  ;;  %5238 = vmatpush.msrb.mxu0 %v5163_v9 }
 0xdaa   :  { %v5165_v7 = vand.u32 4294901760, %v5164_v28 }
 0xdac   :  { %5166 = vmatpush.msra.mxu1 %v5165_v7 }
 0xdad   :  { %5168 = vmatmul.f32.vlgmr.msra.gmra.mxu1 %v5137_v13  ;;  %5240 = vmatmul.f32.vlgmr.msrb.gmra.mxu0 %v5137_v13 }
 0xdae   :  { %5260 = vmatpush.msrb.mxu1 %v5135_v10 }
 0xdb5   :  { %5262 = vmatmul.f32.vlgmr.msrb.gmra.mxu1 %v5137_v13 }
 0xdbf   :  { %6920 = vrot.lane.b32.xlu2 %v10883_v38, %s10186_s3 }
 0xdd9   :  { %v5101_v16 = vpop.trf.xlu0 }
 0xdda   :  { %v5582_v55 = vand.u32 4294901760, %v5101_v16 }
 0xddc   :  { %v5609_v0 = vsub.f32 %v5101_v16, %v5582_v55 }
 0xdde   :  { %v5610_v32 = vand.u32 4294901760, %v5609_v0 }
 0xde0   :  { %v5611_v31 = vsub.f32 %v5609_v0, %v5610_v32 }
 0xde2   :  { %v5612_v57 = vand.u32 4294901760, %v5611_v31 }
 0xde5   :  { %5781 = vxpose.xlu2.b32.start [1/2] (short) (narrow) %v5758_v43, 8 }
 0xde7   :  { %v5037_v1 = vpop.trf.xlu2 }
 0xde8   :  { %v5284_v41 = vand.u32 4294901760, %v5037_v1 }
 0xdea   :  { %v5311_v20 = vsub.f32 %v5037_v1, %v5284_v41  ;;  %5285 = vmatpush.msra.mxu2 %v5284_v41  ;;  %5361 = vmatpush.msra.mxu1 %v5284_v41 }
 0xdeb   :  { %5291 = vmatmul.f32.vlgmr.msra.gmra.mxu2 %v5290_v60  ;;  %5365 = vmatmul.f32.vlgmr.msra.gmra.mxu1 %v5288_v2 }
 0xdec   :  { %v5312_v40 = vand.u32 4294901760, %v5311_v20  ;;  %5338 = vmatpush.msra.mxu0 %v5311_v20 }
 0xded   :  { %5782 = vxpose.xlu2.b32.end [2/2] (short) (narrow) %v10858_v49, 8  ;;  %5341 = vmatmul.f32.vlgmr.msra.gmra.mxu0 %v5287_v47  ;;  %v5565_v49 = vsel %vm937_vm14, %v10974_v21, 0 }
 0xdee   :  { %v5313_v12 = vsub.f32 %v5311_v20, %v5312_v40  ;;  %5387 = vmatpush.msrb.mxu2 %v5312_v40  ;;  %v5584_v34 = vand.u32 4294901760, %v5565_v49  ;;  %v11744_v20 = vld [vmem:[#allocation22_spill] sm:$0xff] }
 0xdf0   :  { %v5314_v61 = vand.u32 4294901760, %v5313_v12  ;;  %v5585_v43 = vsub.f32 %v5565_v49, %v5584_v34  ;;  %v11745_v12 = vld [vmem:[#allocation24_spill] sm:$0xff] }
 0xdf2   :  { %5315 = vmatpush.msra.mxu3 %v5314_v61  ;;  %v11746_v61 = vld [vmem:[#allocation25_spill] sm:$0xff] }
 0xdf3   :  { %5317 = vmatmul.f32.vlgmr.msra.gmra.mxu3 %v5286_v44  ;;  %5389 = vmatmul.f32.vlgmr.msrb.gmra.mxu2 %v5286_v44 }
 0xdf4   :  { %5409 = vmatpush.msrb.mxu3 %v5284_v41  ;;  %v11743_v41 = vld [vmem:[#allocation23_spill] sm:$0xff] }
 0xdf5   :  { %5845 = vxpose.xlu2.b32.start [1/2] (short) (narrow) %v10998_v19, 8  ;;  %v5586_v19 = vand.u32 4294901760, %v5585_v43  ;;  %v573_v60 = vadd.f32 %v11743_v41, %v10780_v23 }
 0xdf7   :  { %v5587_v21 = vsub.f32 %v5585_v43, %v5586_v19  ;;  %v624_v40 = vadd.f32 %v11744_v20, %v573_v60 }
 0xdf9   :  { %v5588_v59 = vand.u32 4294901760, %v5587_v21  ;;  %v667_v16 = vadd.f32 %v11745_v12, %v624_v40 }
 0xdfb   :  { %5411 = vmatmul.f32.vlgmr.msrb.gmra.mxu3 %v5286_v44  ;;  %v710_v33 = vadd.f32 %v11746_v61, %v667_v16 }
 0xdfd   :  { %5846 = vxpose.xlu2.b32.end [2/2] (short) (narrow) %v10864_v15, 8 }
 0xe01   :  { %v5069_v3 = vpop.trf.xlu1 }
 0xe02   :  { %v5433_v14 = vand.u32 4294901760, %v5069_v3 }
 0xe04   :  { %v5460_v27 = vsub.f32 %v5069_v3, %v5433_v14  ;;  %5434 = vmatpush.msrb.mxu0 %v5433_v14  ;;  %5510 = vmatpush.msra.mxu3 %v5433_v14 }
 0xe05   :  { %5440 = vmatmul.f32.vlgmr.msrb.gmra.mxu0 %v5439_v53  ;;  %5514 = vmatmul.f32.vlgmr.msra.gmra.mxu3 %v5437_v56 }
 0xe06   :  { %v5461_v13 = vand.u32 4294901760, %v5460_v27  ;;  %5487 = vmatpush.msra.mxu2 %v5460_v27  ;;  %5613 = vmatpush.msrb.mxu3 %v5612_v57 }
 0xe07   :  { %5490 = vmatmul.f32.vlgmr.msra.gmra.mxu2 %v5436_v50 }
 0xe08   :  { %5707 = vmatpush.msra.mxu3 %v5582_v55  ;;  %v5462_v15 = vsub.f32 %v5460_v27, %v5461_v13  ;;  %5536 = vmatpush.msra.mxu0 %v5461_v13 }
 0xe09   :  { %5583 = vmatpush.msrb.mxu2 %v5582_v55 }
 0xe0a   :  { %5636 = vmatpush.msrb.mxu0 %v5609_v0  ;;  %v5463_v54 = vand.u32 4294901760, %v5462_v15  ;;  %v11748_v0 = vld [vmem:[#allocation27_spill] sm:$0xff] }
 0xe0b   :  { %5685 = vmatpush.msra.mxu2 %v5610_v32 }
 0xe0c   :  { %5464 = vmatpush.msrb.mxu1 %v5463_v54 }
 0xe0d   :  { %5466 = vmatmul.f32.vlgmr.msrb.gmra.mxu1 %v5435_v51  ;;  %5538 = vmatmul.f32.vlgmr.msra.gmra.mxu0 %v5435_v51 }
 0xe0e   :  { %5615 = vmatmul.f32.vlgmr.msrb.gmra.mxu3 %v5584_v34  ;;  %5558 = vmatpush.msra.mxu1 %v5433_v14 }
 0xe0f   :  { %5589 = vmatmul.f32.vlgmr.msrb.gmra.mxu2 %v5588_v59 }
 0xe10   :  { %5659 = vmatpush.msrb.mxu1 %v5582_v55  ;;  %v11747_v55 = vld [vmem:[#allocation26_spill] sm:$0xff] }
 0xe15   :  { %5560 = vmatmul.f32.vlgmr.msra.gmra.mxu1 %v5435_v51  ;;  %5639 = vmatmul.f32.vlgmr.msrb.gmra.mxu0 %v5585_v43  ;;  %v753_v51 = vadd.f32 %v11747_v55, %v710_v33 }
 0xe16   :  { %5709 = vmatmul.f32.vlgmr.msra.gmra.mxu3 %v5584_v34 }
 0xe17   :  { %5687 = vmatmul.f32.vlgmr.msra.gmra.mxu2 %v5584_v34  ;;  %v788_v50 = vadd.f32 %v11748_v0, %v753_v51 }
 0xe19   :  { %v11036_v40 = vpop.permute.xlu2 %6920 }
 0xe1d   :  { %5663 = vmatmul.f32.vlgmr.msrb.gmra.mxu1 %v5586_v19 }
 0xe22   :  { %v5143_v37 = vpop.f32.mrf.mxu0 }
 0xe23   :  { %v5144_v10 = vadd.f32 %v5143_v37, %v87_v8 }
 0xe28   :  { %v5217_v7 = vpop.f32.mrf.mxu3 }
 0xe2a   :  { %v5169_v17 = vpop.f32.mrf.mxu1  ;;  %v5193_v9 = vpop.f32.mrf.mxu2 }
 0xe2b   :  { %v5170_v39 = vadd.f32 %v5169_v17, %v5144_v10  ;;  %v5241_v44 = vpop.f32.mrf.mxu0 }
 0xe2d   :  { %v5194_v28 = vadd.f32 %v5193_v9, %v5170_v39  ;;  %v11028_v9 = vpop.trf.xlu0 }
 0xe2f   :  { %v5218_v29 = vadd.f32 %v5217_v7, %v5194_v28 }
 0xe31   :  { %v5242_v47 = vadd.f32 %v5241_v44, %v5218_v29 }
 0xe32   :  { %v5263_v2 = vpop.f32.mrf.mxu1 }
 0xe33   :  { %v5264_v5 = vadd.f32 %v5263_v2, %v5242_v47 }
 0xe35   :  { %v5713_v1 = vsel %vm2574_vm1, %v5264_v5, -inf  ;;  %v11032_v60 = vpop.trf.xlu0 }
 0xe36   :  { %5714 = vmax.xlane.f32.xlu0 %v5713_v1 }
 0xe66   :  { %6774 = vrot.lane.b32.xlu2 %v788_v50, %s10190_s11 }
 0xe68   :  { %v5366_v3 = vpop.f32.mrf.mxu1 }
 0xe6a   :  { %v5342_v31 = vpop.f32.mrf.mxu0 }
 0xe6e   :  { %v5292_v32 = vpop.f32.mrf.mxu2 }
 0xe6f   :  { %v5293_v49 = vadd.f32 %v5292_v32, %v87_v8 }
 0xe76   :  { %v5318_v56 = vpop.f32.mrf.mxu3  ;;  %v5390_v43 = vpop.f32.mrf.mxu2 }
 0xe77   :  { %v5319_v34 = vadd.f32 %v5318_v56, %v5293_v49 }
 0xe79   :  { %v5343_v25 = vadd.f32 %v5342_v31, %v5319_v34 }
 0xe7b   :  { %v5367_v23 = vadd.f32 %v5366_v3, %v5343_v25 }
 0xe7d   :  { %v5391_v14 = vadd.f32 %v5390_v43, %v5367_v23 }
 0xe7e   :  { %v5412_v57 = vpop.f32.mrf.mxu3  ;;  %v5797_v51 = vpop.trf.xlu2 }
 0xe7f   :  { %v5413_v53 = vadd.f32 %v5412_v57, %v5391_v14  ;;  %v5910_v14 = vsel %vm2574_vm1, %v5797_v51, 0 }
 0xe80   :  { %v5932_v57 = vand.u32 4294901760, %v5910_v14 }
 0xe81   :  { %v5716_v27 = vsel %vm2574_vm1, %v5413_v53, -inf }
 0xe82   :  { %5717 = vmax.xlane.f32.xlu1 %v5716_v27  ;;  %v5441_v19 = vpop.f32.mrf.mxu0 }
 0xe83   :  { %v5442_v12 = vadd.f32 %v5441_v19, %v87_v8 }
 0xe88   :  { %v5515_v13 = vpop.f32.mrf.mxu3 }
 0xe8a   :  { %v5467_v15 = vpop.f32.mrf.mxu1  ;;  %v5491_v21 = vpop.f32.mrf.mxu2 }
 0xe8b   :  { %v5539_v54 = vpop.f32.mrf.mxu0  ;;  %v5468_v16 = vadd.f32 %v5467_v15, %v5442_v12 }
 0xe8d   :  { %v5492_v0 = vadd.f32 %v5491_v21, %v5468_v16 }
 0xe8e   :  { %v11041_v34 = vpop.trf.xlu2 }
 0xe8f   :  { %v5516_v50 = vadd.f32 %v5515_v13, %v5492_v0 }
 0xe91   :  { %v5616_v17 = vpop.f32.mrf.mxu3  ;;  %v5540_v49 = vadd.f32 %v5539_v54, %v5516_v50 }
 0xe92   :  { %v5561_v59 = vpop.f32.mrf.mxu1  ;;  %v5590_v37 = vpop.f32.mrf.mxu2 }
 0xe93   :  { %v5591_v10 = vadd.f32 %v5590_v37, %v87_v8  ;;  %v5640_v28 = vpop.f32.mrf.mxu0  ;;  %v11043_v31 = vadd.f32 %v5561_v59, %v5540_v49 }
 0xe95   :  { %v5617_v39 = vadd.f32 %v5616_v17, %v5591_v10  ;;  %v5719_v8 = vsel %vm2574_vm1, %v11043_v31, -inf }
 0xe97   :  { %v5641_v7 = vadd.f32 %v5640_v28, %v5617_v39  ;;  %v6062_v28 = vsel %vm2574_vm1, %v11028_v9, 0 }
 0xe99   :  { %v5710_v1 = vpop.f32.mrf.mxu3 }
 0xe9a   :  { %v5664_v29 = vpop.f32.mrf.mxu1  ;;  %v5688_v47 = vpop.f32.mrf.mxu2 }
 0xe9b   :  { %v5665_v44 = vadd.f32 %v5664_v29, %v5641_v7  ;;  %v6084_v7 = vand.u32 4294901760, %v6062_v28 }
 0xe9d   :  { %v5689_v2 = vadd.f32 %v5688_v47, %v5665_v44  ;;  %v6085_v44 = vsub.f32 %v6062_v28, %v6084_v7 }
 0xe9f   :  { %v11030_v41 = vadd.f32 %v5710_v1, %v5689_v2  ;;  %v6086_v47 = vand.u32 4294901760, %v6085_v44 }
 0xea1   :  { %v5722_v20 = vsel %vm2574_vm1, %v11030_v41, -inf }
 0xea2   :  { %5723 = vmax.xlane.f32.xlu0 %v5722_v20  ;;  %v6087_v20 = vsub.f32 %v6085_v44, %v6086_v47 }
 0xea9   :  { %v5715_v61 = vpop.xlane.xlu0 %5714 }
 0xeaa   :  { %v5725_v33 = vsub.f32 %v5264_v5, %v5715_v61  ;;  %v6088_v61 = vand.u32 4294901760, %v6087_v20 }
 0xeac   :  { %v5729_v55 = vmul.f32 1.442695, %v5725_v33 }
 0xeae   :  { %10000 = vpow2.f32 %v5729_v55 }
 0xeb4   :  { %v10001_v32 = vpop.eup %10000 }
 0xeb5   :  { %v5737_v56 = vsel %vm2574_vm1, %v10001_v32, 0.0 }
 0xeb6   :  { %5738 = vadd.xlane.f32.xlu1 %v5737_v56  ;;  %6922 = vrot.lane.b32.xlu0 %v10878_v30, %s10186_s3 }
 0xebe   :  { %5720 = vmax.xlane.f32.xlu1 %v5719_v8 }
 0xec0   :  { %v6775_v5 = vpop.permute.xlu2 %6774 }
 0xec1   :  { %6850 = vrot.lane.b32.xlu2 %v6775_v5, %s10188_s9 }
 0xec9   :  { %7702 = vrot.lane.b32.xlu2 %v6775_v5, %s10190_s11 }
 0xef5   :  { %v5718_v25 = vpop.xlane.xlu1 %5717 }
 0xef6   :  { %v5726_v3 = vsub.f32 %v5413_v53, %v5718_v25  ;;  %v5933_v53 = vsub.f32 %v5910_v14, %v5932_v57 }
 0xef8   :  { %v5731_v23 = vmul.f32 1.442695, %v5726_v3  ;;  %6932 = vxpose.xlu1.b32.start [1/2] (short) (narrow) %v11001_v63, 8  ;;  %v5934_v63 = vand.u32 4294901760, %v5933_v53 }
 0xefa   :  { %10002 = vpow2.f32 %v5731_v23  ;;  %v5935_v13 = vsub.f32 %v5933_v53, %v5934_v63 }
 0xefc   :  { %v5936_v54 = vand.u32 4294901760, %v5935_v13 }
 0xf00   :  { %v10003_v30 = vpop.eup %10002  ;;  %6933 = vxpose.xlu1.b32.end [2/2] (short) (narrow) %v10868_v6, 8 }
 0xf01   :  { %v5740_v43 = vsel %vm2574_vm1, %v10003_v30, 0.0 }
 0xf02   :  { %5741 = vadd.xlane.f32.xlu0 %v5740_v43 }
 0xf15   :  { %v5724_v17 = vpop.xlane.xlu0 %5723 }
 0xf16   :  { %6848 = vrot.lane.b32.xlu0 %v6775_v5, %s10189_s10  ;;  %v5728_v49 = vsub.f32 %v11030_v41, %v5724_v17 }
 0xf18   :  { %v5735_v56 = vmul.f32 1.442695, %v5728_v49 }
 0xf1b   :  { %v11071_v8 = vpop.permute.xlu2 %6850 }
 0xf1e   :  { %6852 = vrot.lane.b32.xlu0 %v6775_v5, %s10187_s8 }
 0xf23   :  { %v7703_v23 = vpop.permute.xlu2 %7702 }
 0xf26   :  { %7700 = vrot.lane.b32.xlu0 %v10841_v26, %s10190_s11 }
 0xf28   :  { %v6923_v39 = vpop.permute.xlu0 %6922 }
 0xf29   :  { %v5739_v27 = vpop.xlane.xlu1 %5738 }
 0xf2a   :  { %10004 = vrcp.f32 %v5739_v27  ;;  %v6214_v27 = vsel %vm2574_vm1, %v11041_v34, 0 }
 0xf30   :  { %v10005_v19 = vpop.eup %10004 }
 0xf31   :  { %v5753_v6 = vmul.f32 %v10005_v19, %v10001_v32  ;;  %v5721_v33 = vpop.xlane.xlu1 %5720 }
 0xf32   :  { %v5727_v0 = vsub.f32 %v11043_v31, %v5721_v33 }
 0xf33   :  { %v5913_v15 = vsel %vm2574_vm1, %v5753_v6, 0 }
 0xf34   :  { %v5930_v21 = vand.u32 4294901760, %v5913_v15  ;;  %v5733_v50 = vmul.f32 1.442695, %v5727_v0 }
 0xf36   :  { %5931 = vmatpush.xpose.msra.mxu0 %v5930_v21  ;;  %6007 = vmatpush.xpose.msrb.mxu3 %v5930_v21  ;;  %v5957_v59 = vsub.f32 %v5913_v15, %v5930_v21  ;;  %v6366_v15 = vsel %vm2574_vm1, %v11032_v60, 0 }
 0xf37   :  { %v6388_v34 = vand.u32 4294901760, %v6366_v15 }
 0xf38   :  { %5984 = vmatpush.xpose.msrb.mxu2 %v5957_v59  ;;  %v5958_v37 = vand.u32 4294901760, %v5957_v59 }
 0xf39   :  { %5937 = vmatmul.f32.vlgmr.msra.gmra.mxu0 %v5936_v54  ;;  %6011 = vmatmul.f32.vlgmr.msrb.gmra.mxu3 %v5934_v63  ;;  %v11078_v63 = vand.u32 4294901760, %v6214_v27  ;;  %v6389_v17 = vsub.f32 %v6366_v15, %v6388_v34 }
 0xf3a   :  { %6033 = vmatpush.xpose.msrb.mxu0 %v5958_v37  ;;  %v5959_v26 = vsub.f32 %v5957_v59, %v5958_v37 }
 0xf3b   :  { %5987 = vmatmul.f32.vlgmr.msrb.gmra.mxu2 %v5933_v53  ;;  %v6237_v19 = vsub.f32 %v6214_v27, %v11078_v63 }
 0xf3c   :  { %v5960_v10 = vand.u32 4294901760, %v5959_v26 }
 0xf3d   :  { %v6238_v6 = vand.u32 4294901760, %v6237_v19 }
 0xf3e   :  { %5961 = vmatpush.xpose.msra.mxu1 %v5960_v10 }
 0xf3f   :  { %v6239_v54 = vsub.f32 %v6237_v19, %v6238_v6 }
 0xf41   :  { %5963 = vmatmul.f32.vlgmr.msra.gmra.mxu1 %v5932_v57  ;;  %6035 = vmatmul.f32.vlgmr.msrb.gmra.mxu0 %v5932_v57  ;;  %v6240_v10 = vand.u32 4294901760, %v6239_v54 }
 0xf42   :  { %6055 = vmatpush.xpose.msrb.mxu1 %v5930_v21 }
 0xf49   :  { %6057 = vmatmul.f32.vlgmr.msrb.gmra.mxu1 %v5932_v57 }
 0xf5a   :  { %6912 = vrot.lane.b32.xlu1 %v10889_v42, %s10186_s3 }
 0xf62   :  { %6914 = vrot.lane.b32.xlu1 %v10862_v4, %s10186_s3 }
 0xf6a   :  { %6916 = vrot.lane.b32.xlu1 %v10912_v18, %s10186_s3 }
 0xf72   :  { %6918 = vrot.lane.b32.xlu1 %v10870_v52, %s10186_s3 }
 0xf75   :  { %v5742_v29 = vpop.xlane.xlu0 %5741 }
 0xf76   :  { %10006 = vrcp.f32 %v5742_v29 }
 0xf77   :  { %10008 = vpow2.f32 %v5733_v50 }
 0xf78   :  { %10010 = vpow2.f32 %v5735_v56 }
 0xf7c   :  { %v10007_v2 = vpop.eup %10006 }
 0xf7d   :  { %v5754_v1 = vmul.f32 %v10007_v2, %v10003_v30  ;;  %v10009_v5 = vpop.eup %10008 }
 0xf7e   :  { %v5743_v3 = vsel %vm2574_vm1, %v10009_v5, 0.0  ;;  %v10011_v31 = vpop.eup %10010 }
 0xf7f   :  { %v6065_v4 = vsel %vm2574_vm1, %v5754_v1, 0  ;;  %v5746_v30 = vsel %vm2574_vm1, %v10011_v31, 0.0 }
 0xf80   :  { %v6082_v12 = vand.u32 4294901760, %v6065_v4 }
 0xf82   :  { %6083 = vmatpush.xpose.msra.mxu2 %v6082_v12  ;;  %6159 = vmatpush.xpose.msra.mxu1 %v6082_v12  ;;  %v6109_v16 = vsub.f32 %v6065_v4, %v6082_v12 }
 0xf84   :  { %6136 = vmatpush.xpose.msra.mxu0 %v6109_v16  ;;  %v6110_v9 = vand.u32 4294901760, %v6109_v16 }
 0xf85   :  { %6089 = vmatmul.f32.vlgmr.msra.gmra.mxu2 %v6088_v61  ;;  %6163 = vmatmul.f32.vlgmr.msra.gmra.mxu1 %v6086_v47 }
 0xf86   :  { %6185 = vmatpush.xpose.msrb.mxu2 %v6110_v9  ;;  %v6111_v52 = vsub.f32 %v6109_v16, %v6110_v9 }
 0xf87   :  { %6139 = vmatmul.f32.vlgmr.msra.gmra.mxu0 %v6085_v44  ;;  %v6390_v44 = vand.u32 4294901760, %v6389_v17 }
 0xf88   :  { %v6849_v55 = vpop.permute.xlu0 %6848  ;;  %v6112_v51 = vand.u32 4294901760, %v6111_v52 }
 0xf89   :  { %v6391_v16 = vsub.f32 %v6389_v17, %v6390_v44 }
 0xf8a   :  { %6113 = vmatpush.xpose.msra.mxu3 %v6112_v51 }
 0xf8d   :  { %6115 = vmatmul.f32.vlgmr.msra.gmra.mxu3 %v6084_v7  ;;  %6187 = vmatmul.f32.vlgmr.msrb.gmra.mxu2 %v6084_v7 }
 0xf8e   :  { %6207 = vmatpush.xpose.msrb.mxu3 %v6082_v12 }
 0xf90   :  { %v6853_v32 = vpop.permute.xlu0 %6852 }
 0xf95   :  { %6209 = vmatmul.f32.vlgmr.msrb.gmra.mxu3 %v6084_v7 }
 0xf98   :  { %v7701_v25 = vpop.permute.xlu0 %7700 }
 0xf99   :  { %7724 = vxpose.xlu0.b32.start [1/2] (short) (narrow) %v7701_v25, 8  ;;  %v7210_v25 = vsel %vm937_vm14, %v10989_v58, 0 }
 0xf9c   :  { %5744 = vadd.xlane.f32.xlu1 %v5743_v3  ;;  %v6948_v43 = vpop.trf.xlu1  ;;  %v7229_v3 = vand.u32 4294901760, %v7210_v25 }
 0xf9d   :  { %v7078_v60 = vand.u32 4294901760, %v6948_v43 }
 0xf9f   :  { %v7105_v20 = vsub.f32 %v6948_v43, %v7078_v60 }
 0xfa1   :  { %7725 = vxpose.xlu0.b32.end [2/2] (short) (narrow) %v7703_v23, 8  ;;  %v7106_v9 = vand.u32 4294901760, %v7105_v20 }
 0xfa3   :  { %v7107_v51 = vsub.f32 %v7105_v20, %v7106_v9 }
 0xfa4   :  { %5747 = vadd.xlane.f32.xlu1 %v5746_v30 }
 0xfb6   :  { %v11102_v30 = vpop.f32.mrf.mxu0 }
 0xfbe   :  { %v11108_v58 = vpop.f32.mrf.mxu1 }
 0xfcc   :  { %v6913_v41 = vpop.permute.xlu1 %6912 }
 0xfd4   :  { %v6915_v14 = vpop.permute.xlu1 %6914 }
 0xfdc   :  { %v6917_v57 = vpop.permute.xlu1 %6916 }
 0xfde   :  { %6964 = vxpose.xlu1.b32.start [1/2] (short) (narrow) %v6913_v41, 8  ;;  %v7359_v41 = vsel %vm937_vm14, %v10992_v24, 0 }
 0xfdf   :  { %v11106_v27 = vand.u32 4294901760, %v7359_v41 }
 0xfe4   :  { %v6919_v53 = vpop.permute.xlu1 %6918 }
 0xfe6   :  { %6965 = vxpose.xlu1.b32.end [2/2] (short) (narrow) %v6915_v14, 8 }
 0xfee   :  { %6996 = vxpose.xlu1.b32.start [1/2] (short) (narrow) %v6917_v57, 8 }
 0xff6   :  { %6997 = vxpose.xlu1.b32.end [2/2] (short) (narrow) %v6919_v53, 8 }
 0xffe   :  { %7028 = vxpose.xlu1.b32.start [1/2] (short) (narrow) %v11036_v40, 8 }
0x1006   :  { %7029 = vxpose.xlu1.b32.end [2/2] (short) (narrow) %v6923_v39, 8  ;;  %v6900_v39 = vrot.slane %v10983_v22, 4 }
0x1008   :  { %v6901_v2 = vsel %vm2451_vm15, %v6900_v39, %v10979_v62  ;;  %v6392_v62 = vand.u32 4294901760, %v6391_v16 }
0x1009   :  { %v7061_v12 = vsel %vm937_vm14, %v6901_v2, 0 }
0x100a   :  { %v7080_v33 = vand.u32 4294901760, %v7061_v12 }
0x100c   :  { %v7081_v50 = vsub.f32 %v7061_v12, %v7080_v33 }
0x100e   :  { %v7082_v49 = vand.u32 4294901760, %v7081_v50 }
0x100f   :  { %v5745_v13 = vpop.xlane.xlu1 %5744  ;;  %7704 = vrot.lane.b32.xlu0 %v10889_v42, %s10190_s11 }
0x1010   :  { %10012 = vrcp.f32 %v5745_v13  ;;  %v7083_v56 = vsub.f32 %v7081_v50, %v7082_v49  ;;  %v11113_v13 = vpop.f32.mrf.mxu0 }
0x1016   :  { %v10013_v21 = vpop.eup %10012 }
0x1017   :  { %v5755_v40 = vmul.f32 %v10013_v21, %v10009_v5  ;;  %v5748_v59 = vpop.xlane.xlu1 %5747  ;;  %7706 = vrot.lane.b32.xlu0 %v6849_v55, %s10190_s11  ;;  %v7084_v5 = vand.u32 4294901760, %v7083_v56  ;;  %v11115_v21 = vpop.f32.mrf.mxu3 }
0x1018   :  { %10014 = vrcp.f32 %v5748_v59  ;;  %v7508_v59 = vsel %vm937_vm14, %v10995_v45, 0 }
0x1019   :  { %v6217_v37 = vsel %vm2574_vm1, %v5755_v40, 0  ;;  %v11117_v40 = vpop.f32.mrf.mxu1 }
0x101a   :  { %v6234_v26 = vand.u32 4294901760, %v6217_v37 }
0x101c   :  { %6235 = vmatpush.xpose.msrb.mxu0 %v6234_v26  ;;  %6311 = vmatpush.xpose.msra.mxu3 %v6234_v26  ;;  %v6261_v42 = vsub.f32 %v6217_v37, %v6234_v26 }
0x101e   :  { %v10015_v28 = vpop.eup %10014  ;;  %6288 = vmatpush.xpose.msra.mxu2 %v6261_v42  ;;  %v6262_v7 = vand.u32 4294901760, %v6261_v42 }
0x101f   :  { %v5756_v29 = vmul.f32 %v10015_v28, %v10011_v31  ;;  %6241 = vmatmul.f32.vlgmr.msrb.gmra.mxu0 %v6240_v10  ;;  %7714 = vrot.lane.b32.xlu0 %v6853_v32, %s10190_s11  ;;  %v7108_v32 = vand.u32 4294901760, %v7107_v51  ;;  %v7230_v31 = vsub.f32 %v7210_v25, %v7229_v3  ;;  %v11123_v10 = vpop.f32.mrf.mxu0 }
0x1020   :  { %6337 = vmatpush.xpose.msra.mxu0 %v6262_v7  ;;  %v6263_v47 = vsub.f32 %v6261_v42, %v6262_v7  ;;  %6315 = vmatmul.f32.vlgmr.msra.gmra.mxu3 %v6238_v6  ;;  %v7527_v42 = vand.u32 4294901760, %v7508_v59 }
0x1021   :  { %6291 = vmatmul.f32.vlgmr.msra.gmra.mxu2 %v6237_v19  ;;  %v6369_v1 = vsel %vm2574_vm1, %v5756_v29, 0  ;;  %v7231_v23 = vand.u32 4294901760, %v7230_v31  ;;  %v7379_v19 = vsub.f32 %v7359_v41, %v11106_v27  ;;  %v11127_v29 = vpop.f32.mrf.mxu1 }
0x1022   :  { %v6264_v22 = vand.u32 4294901760, %v6263_v47  ;;  %v6386_v4 = vand.u32 4294901760, %v6369_v1  ;;  %v7528_v7 = vsub.f32 %v7508_v59, %v7527_v42 }
0x1023   :  { %v7232_v43 = vsub.f32 %v7230_v31, %v7231_v23  ;;  %v7380_v15 = vand.u32 4294901760, %v7379_v19 }
0x1024   :  { %6265 = vmatpush.xpose.msrb.mxu1 %v6264_v22  ;;  %6387 = vmatpush.xpose.msrb.mxu2 %v6386_v4  ;;  %v6413_v61 = vsub.f32 %v6369_v1, %v6386_v4  ;;  %v7529_v1 = vand.u32 4294901760, %v7528_v7 }
0x1025   :  { %v7233_v53 = vand.u32 4294901760, %v7232_v43  ;;  %v7381_v54 = vsub.f32 %v7379_v19, %v7380_v15 }
0x1026   :  { %6440 = vmatpush.xpose.msrb.mxu0 %v6413_v61  ;;  %v6414_v52 = vand.u32 4294901760, %v6413_v61 }
0x1027   :  { %6267 = vmatmul.f32.vlgmr.msrb.gmra.mxu1 %v11078_v63  ;;  %6339 = vmatmul.f32.vlgmr.msra.gmra.mxu0 %v11078_v63 }
0x1028   :  { %6359 = vmatpush.xpose.msra.mxu1 %v6234_v26  ;;  %v6415_v55 = vsub.f32 %v6413_v61, %v6414_v52  ;;  %6489 = vmatpush.xpose.msra.mxu2 %v6414_v52 }
0x1029   :  { %6393 = vmatmul.f32.vlgmr.msrb.gmra.mxu2 %v6392_v62 }
0x102a   :  { %7079 = vmatpush.msra.mxu0 %v7078_v60  ;;  %v6416_v0 = vand.u32 4294901760, %v6415_v55 }
0x102c   :  { %6463 = vmatpush.xpose.msrb.mxu1 %v6386_v4  ;;  %7132 = vmatpush.msrb.mxu2 %v7105_v20  ;;  %v7530_v20 = vsub.f32 %v7528_v7, %v7529_v1 }
0x102d   :  { %6417 = vmatpush.xpose.msrb.mxu3 %v6416_v0 }
0x102f   :  { %6361 = vmatmul.f32.vlgmr.msra.gmra.mxu1 %v11078_v63  ;;  %6443 = vmatmul.f32.vlgmr.msrb.gmra.mxu0 %v6389_v17  ;;  %v11110_v63 = vpop.f32.mrf.mxu2  ;;  %v7382_v17 = vand.u32 4294901760, %v7381_v54 }
0x1030   :  { %6419 = vmatmul.f32.vlgmr.msrb.gmra.mxu3 %v6388_v34  ;;  %7109 = vmatpush.msra.mxu1 %v7108_v32 }
0x1031   :  { %6511 = vmatpush.xpose.msra.mxu3 %v6386_v4  ;;  %7181 = vmatpush.msrb.mxu0 %v7106_v9  ;;  %v7531_v9 = vand.u32 4294901760, %v7530_v20 }
0x1032   :  { %6491 = vmatmul.f32.vlgmr.msra.gmra.mxu2 %v6388_v34 }
0x1035   :  { %7155 = vmatpush.msrb.mxu3 %v7078_v60 }
0x1037   :  { %6467 = vmatmul.f32.vlgmr.msrb.gmra.mxu1 %v6390_v44  ;;  %7085 = vmatmul.f32.vlgmr.msra.gmra.mxu0 %v7084_v5 }
0x1038   :  { %6513 = vmatmul.f32.vlgmr.msra.gmra.mxu3 %v6388_v34  ;;  %7203 = vmatpush.msrb.mxu1 %v7078_v60  ;;  %v11121_v34 = vpop.f32.mrf.mxu2  ;;  %v11125_v60 = vpop.f32.mrf.mxu3 }
0x103a   :  { %7135 = vmatmul.f32.vlgmr.msrb.gmra.mxu2 %v7081_v50 }
0x103f   :  { %7111 = vmatmul.f32.vlgmr.msra.gmra.mxu1 %v7080_v33  ;;  %7183 = vmatmul.f32.vlgmr.msrb.gmra.mxu0 %v7080_v33 }
0x1040   :  { %7159 = vmatmul.f32.vlgmr.msrb.gmra.mxu3 %v7082_v49  ;;  %v11129_v47 = vpop.f32.mrf.mxu2  ;;  %v11135_v22 = vpop.f32.mrf.mxu3 }
0x1047   :  { %7205 = vmatmul.f32.vlgmr.msrb.gmra.mxu1 %v7080_v33 }
0x1060   :  { %7708 = vrot.lane.b32.xlu1 %v10912_v18, %s10190_s11 }
0x1068   :  { %7710 = vrot.lane.b32.xlu1 %v11071_v8, %s10190_s11 }
0x1082   :  { %v6980_v14 = vpop.trf.xlu1 }
0x1083   :  { %v7227_v57 = vand.u32 4294901760, %v6980_v14 }
0x1085   :  { %v7254_v18 = vsub.f32 %v6980_v14, %v7227_v57  ;;  %7228 = vmatpush.msra.mxu2 %v7227_v57  ;;  %7304 = vmatpush.msra.mxu1 %v7227_v57 }
0x1086   :  { %7234 = vmatmul.f32.vlgmr.msra.gmra.mxu2 %v7233_v53  ;;  %7308 = vmatmul.f32.vlgmr.msra.gmra.mxu1 %v7231_v23 }
0x1087   :  { %v7255_v8 = vand.u32 4294901760, %v7254_v18  ;;  %7281 = vmatpush.msra.mxu0 %v7254_v18 }
0x1088   :  { %7284 = vmatmul.f32.vlgmr.msra.gmra.mxu0 %v7230_v31 }
0x1089   :  { %v7256_v24 = vsub.f32 %v7254_v18, %v7255_v8  ;;  %7330 = vmatpush.msrb.mxu2 %v7255_v8 }
0x108b   :  { %v7257_v6 = vand.u32 4294901760, %v7256_v24 }
0x108d   :  { %7258 = vmatpush.msra.mxu3 %v7257_v6 }
0x108e   :  { %7260 = vmatmul.f32.vlgmr.msra.gmra.mxu3 %v7229_v3  ;;  %7332 = vmatmul.f32.vlgmr.msrb.gmra.mxu2 %v7229_v3 }
0x108f   :  { %7352 = vmatpush.msrb.mxu3 %v7227_v57 }
0x1092   :  { %v7012_v37 = vpop.trf.xlu1 }
0x1093   :  { %v7376_v26 = vand.u32 4294901760, %v7012_v37 }
0x1095   :  { %v7403_v39 = vsub.f32 %v7012_v37, %v7376_v26  ;;  %7377 = vmatpush.msrb.mxu0 %v7376_v26  ;;  %7453 = vmatpush.msra.mxu3 %v7376_v26 }
0x1096   :  { %7354 = vmatmul.f32.vlgmr.msrb.gmra.mxu3 %v7229_v3  ;;  %7383 = vmatmul.f32.vlgmr.msrb.gmra.mxu0 %v7382_v17  ;;  %v88_v3 = vld [vmem:[#allocation7 + $0x8] sm:$0xff] }
0x1097   :  { %v7404_v28 = vand.u32 4294901760, %v7403_v39  ;;  %7430 = vmatpush.msra.mxu2 %v7403_v39 }
0x1098   :  { %7433 = vmatmul.f32.vlgmr.msra.gmra.mxu2 %v7379_v19 }
0x1099   :  { %v7405_v45 = vsub.f32 %v7403_v39, %v7404_v28  ;;  %7479 = vmatpush.msra.mxu0 %v7404_v28 }
0x109b   :  { %v7406_v44 = vand.u32 4294901760, %v7405_v45 }
0x109c   :  { %v11131_v2 = vpop.f32.mrf.mxu0 }
0x109d   :  { %7407 = vmatpush.msrb.mxu1 %v7406_v44 }
0x109e   :  { %7409 = vmatmul.f32.vlgmr.msrb.gmra.mxu1 %v11106_v27  ;;  %7457 = vmatmul.f32.vlgmr.msra.gmra.mxu3 %v7380_v15 }
0x109f   :  { %7481 = vmatmul.f32.vlgmr.msra.gmra.mxu0 %v11106_v27  ;;  %7501 = vmatpush.msra.mxu1 %v7376_v26 }
0x10a2   :  { %v7044_v4 = vpop.trf.xlu1 }
0x10a3   :  { %v7525_v12 = vand.u32 4294901760, %v7044_v4  ;;  %v11144_v51 = vpop.f32.mrf.mxu3 }
0x10a4   :  { %v11137_v16 = vpop.f32.mrf.mxu1  ;;  %v11139_v61 = vpop.f32.mrf.mxu2 }
0x10a5   :  { %v7552_v52 = vsub.f32 %v7044_v4, %v7525_v12  ;;  %v11141_v33 = vpop.f32.mrf.mxu0  ;;  %7526 = vmatpush.msrb.mxu2 %v7525_v12  ;;  %7602 = vmatpush.msrb.mxu1 %v7525_v12 }
0x10a6   :  { %7503 = vmatmul.f32.vlgmr.msra.gmra.mxu1 %v11106_v27  ;;  %7532 = vmatmul.f32.vlgmr.msrb.gmra.mxu2 %v7531_v9 }
0x10a7   :  { %v7553_v62 = vand.u32 4294901760, %v7552_v52  ;;  %7579 = vmatpush.msrb.mxu0 %v7552_v52 }
0x10a8   :  { %7582 = vmatmul.f32.vlgmr.msrb.gmra.mxu0 %v7528_v7 }
0x10a9   :  { %v7554_v55 = vsub.f32 %v7552_v52, %v7553_v62  ;;  %7628 = vmatpush.msra.mxu2 %v7553_v62 }
0x10ab   :  { %v7555_v0 = vand.u32 4294901760, %v7554_v55 }
0x10ac   :  { %v11146_v50 = vpop.f32.mrf.mxu1  ;;  %v11148_v32 = vpop.f32.mrf.mxu2 }
0x10ad   :  { %7556 = vmatpush.msrb.mxu3 %v7555_v0  ;;  %v11150_v49 = vpop.f32.mrf.mxu0 }
0x10ae   :  { %7558 = vmatmul.f32.vlgmr.msrb.gmra.mxu3 %v7527_v42  ;;  %7606 = vmatmul.f32.vlgmr.msrb.gmra.mxu1 %v7529_v1 }
0x10af   :  { %7630 = vmatmul.f32.vlgmr.msra.gmra.mxu2 %v7527_v42  ;;  %7650 = vmatpush.msra.mxu3 %v7525_v12 }
0x10b3   :  { %v11152_v56 = vpop.f32.mrf.mxu3 }
0x10b4   :  { %v11154_v5 = vpop.f32.mrf.mxu1 }
0x10b5   :  { %v11156_v25 = vpop.f32.mrf.mxu2  ;;  %v7086_v31 = vpop.f32.mrf.mxu0 }
0x10b6   :  { %7652 = vmatmul.f32.vlgmr.msra.gmra.mxu3 %v7527_v42  ;;  %v7087_v43 = vadd.f32 %v7086_v31, %v88_v3 }
0x10bb   :  { %v11158_v23 = vpop.f32.mrf.mxu3 }
0x10bc   :  { %v7112_v41 = vpop.f32.mrf.mxu1 }
0x10bd   :  { %v7113_v14 = vadd.f32 %v7112_v41, %v7087_v43  ;;  %v7136_v57 = vpop.f32.mrf.mxu2  ;;  %v7184_v8 = vpop.f32.mrf.mxu0 }
0x10bf   :  { %v7137_v53 = vadd.f32 %v7136_v57, %v7113_v14 }
0x10c3   :  { %v7160_v27 = vpop.f32.mrf.mxu3 }
0x10c4   :  { %v7161_v18 = vadd.f32 %v7160_v27, %v7137_v53  ;;  %v7206_v24 = vpop.f32.mrf.mxu1 }
0x10c6   :  { %v7185_v19 = vadd.f32 %v7184_v8, %v7161_v18 }
0x10c8   :  { %v7207_v6 = vadd.f32 %v7206_v24, %v7185_v19 }
0x10ca   :  { %v7656_v15 = vsel %vm2574_vm1, %v7207_v6, -inf }
0x10cb   :  { %7657 = vmax.xlane.f32.xlu2 %v7656_v15 }
0x1103   :  { %v7309_v42 = vpop.f32.mrf.mxu1 }
0x1105   :  { %v7285_v59 = vpop.f32.mrf.mxu0 }
0x1109   :  { %v7235_v54 = vpop.f32.mrf.mxu2 }
0x110a   :  { %v7236_v37 = vadd.f32 %v7235_v54, %v88_v3 }
0x1111   :  { %v7261_v26 = vpop.f32.mrf.mxu3  ;;  %v7333_v7 = vpop.f32.mrf.mxu2 }
0x1112   :  { %v7262_v17 = vadd.f32 %v7261_v26, %v7236_v37 }
0x1113   :  { %v7384_v45 = vpop.f32.mrf.mxu0 }
0x1114   :  { %v7286_v39 = vadd.f32 %v7285_v59, %v7262_v17  ;;  %v7385_v20 = vadd.f32 %v7384_v45, %v88_v3 }
0x1116   :  { %v7310_v28 = vadd.f32 %v7309_v42, %v7286_v39 }
0x1118   :  { %v7334_v44 = vadd.f32 %v7333_v7, %v7310_v28 }
0x1119   :  { %v7355_v1 = vpop.f32.mrf.mxu3 }
0x111a   :  { %v7356_v4 = vadd.f32 %v7355_v1, %v7334_v44  ;;  %v7709_v1 = vpop.permute.xlu1 %7708 }
0x111b   :  { %v7410_v12 = vpop.f32.mrf.mxu1  ;;  %v7434_v62 = vpop.f32.mrf.mxu2 }
0x111c   :  { %v7411_v9 = vadd.f32 %v7410_v12, %v7385_v20  ;;  %v7659_v52 = vsel %vm2574_vm1, %v7356_v4, -inf  ;;  %v7482_v43 = vpop.f32.mrf.mxu0  ;;  %v7740_v20 = vpop.trf.xlu0 }
0x111d   :  { %7660 = vmax.xlane.f32.xlu1 %v7659_v52 }
0x111e   :  { %v7435_v55 = vadd.f32 %v7434_v62, %v7411_v9 }
0x1121   :  { %v7458_v0 = vpop.f32.mrf.mxu3 }
0x1122   :  { %v7459_v31 = vadd.f32 %v7458_v0, %v7435_v55  ;;  %v7711_v12 = vpop.permute.xlu1 %7710 }
0x1123   :  { %v7504_v14 = vpop.f32.mrf.mxu1 }
0x1124   :  { %v7483_v41 = vadd.f32 %v7482_v43, %v7459_v31  ;;  %v7705_v9 = vpop.permute.xlu0 %7704 }
0x1125   :  { %v7583_v24 = vpop.f32.mrf.mxu0 }
0x1126   :  { %v7505_v57 = vadd.f32 %v7504_v14, %v7483_v41 }
0x1128   :  { %v7662_v53 = vsel %vm2574_vm1, %v7505_v57, -inf }
0x1129   :  { %7663 = vmax.xlane.f32.xlu0 %v7662_v53  ;;  %v7533_v27 = vpop.f32.mrf.mxu2 }
0x112a   :  { %v7534_v18 = vadd.f32 %v7533_v27, %v88_v3 }
0x112b   :  { %v7607_v54 = vpop.f32.mrf.mxu1 }
0x112c   :  { %v7707_v52 = vpop.permute.xlu0 %7706 }
0x1131   :  { %v7559_v8 = vpop.f32.mrf.mxu3 }
0x1132   :  { %v7560_v19 = vadd.f32 %v7559_v8, %v7534_v18  ;;  %v7631_v37 = vpop.f32.mrf.mxu2 }
0x1134   :  { %v7584_v15 = vadd.f32 %v7583_v24, %v7560_v19  ;;  %v11168_v31 = vpop.permute.xlu0 %7714  ;;  %v7853_v19 = vsel %vm2574_vm1, %v7740_v20, 0 }
0x1136   :  { %v7608_v59 = vadd.f32 %v7607_v54, %v7584_v15 }
0x1138   :  { %v7632_v26 = vadd.f32 %v7631_v37, %v7608_v59 }
0x1139   :  { %v7653_v17 = vpop.f32.mrf.mxu3 }
0x113a   :  { %v11163_v42 = vadd.f32 %v7653_v17, %v7632_v26 }
0x113c   :  { %v7665_v39 = vsel %vm2574_vm1, %v11163_v42, -inf }
0x113d   :  { %7666 = vmax.xlane.f32.xlu2 %v7665_v39 }
0x113e   :  { %v7658_v28 = vpop.xlane.xlu2 %7657 }
0x113f   :  { %v7668_v7 = vsub.f32 %v7207_v6, %v7658_v28 }
0x1141   :  { %v7672_v45 = vmul.f32 1.442695, %v7668_v7 }
0x1143   :  { %10016 = vpow2.f32 %v7672_v45 }
0x1149   :  { %v10017_v3 = vpop.eup %10016 }
0x114a   :  { %v7680_v44 = vsel %vm2574_vm1, %v10017_v3, 0.0 }
0x114b   :  { %7681 = vadd.xlane.f32.xlu2 %v7680_v44 }
0x1174   :  { %7788 = vxpose.xlu2.b32.start [1/2] (short) (narrow) %v7709_v1, 8 }
0x117c   :  { %7789 = vxpose.xlu2.b32.end [2/2] (short) (narrow) %v7711_v12, 8 }
0x1190   :  { %v7661_v62 = vpop.xlane.xlu1 %7660 }
0x1191   :  { %v7669_v55 = vsub.f32 %v7356_v4, %v7661_v62  ;;  %v7875_v4 = vand.u32 4294901760, %v7853_v19 }
0x1193   :  { %v7674_v0 = vmul.f32 1.442695, %v7669_v55  ;;  %v7876_v15 = vsub.f32 %v7853_v19, %v7875_v4 }
0x1195   :  { %10018 = vpow2.f32 %v7674_v0  ;;  %v7877_v54 = vand.u32 4294901760, %v7876_v15 }
0x1197   :  { %v7878_v26 = vsub.f32 %v7876_v15, %v7877_v54 }
0x1199   :  { %v7879_v28 = vand.u32 4294901760, %v7878_v26 }
0x119b   :  { %v10019_v6 = vpop.eup %10018 }
0x119c   :  { %v7664_v43 = vpop.xlane.xlu0 %7663  ;;  %v7683_v41 = vsel %vm2574_vm1, %v10019_v6, 0.0 }
0x119d   :  { %v7670_v14 = vsub.f32 %v7505_v57, %v7664_v43  ;;  %7684 = vadd.xlane.f32.xlu0 %v7683_v41 }
0x119f   :  { %v7676_v53 = vmul.f32 1.442695, %v7670_v14 }
0x11a1   :  { %10020 = vpow2.f32 %v7676_v53 }
0x11a7   :  { %v10021_v27 = vpop.eup %10020 }
0x11a8   :  { %v7686_v18 = vsel %vm2574_vm1, %v10021_v27, 0.0 }
0x11a9   :  { %7687 = vadd.xlane.f32.xlu1 %v7686_v18  ;;  %v6117_v18 = vadd.f32 %v11125_v60, %v11121_v34 }
0x11b0   :  { %v7667_v8 = vpop.xlane.xlu2 %7666 }
0x11be   :  { %v7682_v24 = vpop.xlane.xlu2 %7681 }
0x11bf   :  { %10022 = vrcp.f32 %v7682_v24 }
0x11c5   :  { %v10023_v59 = vpop.eup %10022 }
0x11c6   :  { %v7696_v37 = vmul.f32 %v10023_v59, %v10017_v3  ;;  %v7671_v3 = vsub.f32 %v11163_v42, %v7667_v8 }
0x11c8   :  { %v7856_v57 = vsel %vm2574_vm1, %v7696_v37, 0  ;;  %v7678_v1 = vmul.f32 1.442695, %v7671_v3 }
0x11c9   :  { %v7873_v17 = vand.u32 4294901760, %v7856_v57 }
0x11ca   :  { %10024 = vpow2.f32 %v7678_v1 }
0x11cb   :  { %7874 = vmatpush.xpose.msra.mxu0 %v7873_v17  ;;  %7950 = vmatpush.xpose.msrb.mxu3 %v7873_v17  ;;  %v7900_v39 = vsub.f32 %v7856_v57, %v7873_v17 }
0x11cd   :  { %7927 = vmatpush.xpose.msrb.mxu2 %v7900_v39  ;;  %v7901_v7 = vand.u32 4294901760, %v7900_v39 }
0x11ce   :  { %7880 = vmatmul.f32.vlgmr.msra.gmra.mxu0 %v7879_v28  ;;  %7954 = vmatmul.f32.vlgmr.msrb.gmra.mxu3 %v7877_v54 }
0x11cf   :  { %7976 = vmatpush.xpose.msrb.mxu0 %v7901_v7  ;;  %v7902_v45 = vsub.f32 %v7900_v39, %v7901_v7 }
0x11d0   :  { %7930 = vmatmul.f32.vlgmr.msrb.gmra.mxu2 %v7876_v15  ;;  %v11177_v20 = vpop.eup %10024 }
0x11d1   :  { %v7903_v44 = vand.u32 4294901760, %v7902_v45  ;;  %v7689_v12 = vsel %vm2574_vm1, %v11177_v20, 0.0 }
0x11d3   :  { %7904 = vmatpush.xpose.msra.mxu1 %v7903_v44 }
0x11d6   :  { %7906 = vmatmul.f32.vlgmr.msra.gmra.mxu1 %v7875_v4  ;;  %7978 = vmatmul.f32.vlgmr.msrb.gmra.mxu0 %v7875_v4 }
0x11d7   :  { %7998 = vmatpush.xpose.msrb.mxu1 %v7873_v17  ;;  %v5965_v17 = vadd.f32 %v11108_v58, %v11102_v30 }
0x11de   :  { %8000 = vmatmul.f32.vlgmr.msrb.gmra.mxu1 %v7875_v4  ;;  %v6141_v4 = vadd.f32 %v11123_v10, %v6117_v18 }
0x11e0   :  { %v6165_v54 = vadd.f32 %v11127_v29, %v6141_v4 }
0x11e2   :  { %v6189_v26 = vadd.f32 %v11129_v47, %v6165_v54  ;;  %v5989_v47 = vadd.f32 %v11110_v63, %v5965_v17 }
0x11e3   :  { %7756 = vxpose.xlu1.b32.start [1/2] (short) (narrow) %v7705_v9, 8 }
0x11e4   :  { %v6211_v34 = vadd.f32 %v11135_v22, %v6189_v26  ;;  %v6013_v39 = vadd.f32 %v11115_v21, %v5989_v47 }
0x11e5   :  { %7712 = vrot.lane.b32.xlu2 %v10883_v38, %s10190_s11 }
0x11eb   :  { %7757 = vxpose.xlu1.b32.end [2/2] (short) (narrow) %v7707_v52, 8 }
0x120d   :  { %v7804_v60 = vpop.trf.xlu2 }
0x120e   :  { %7690 = vadd.xlane.f32.xlu2 %v7689_v12  ;;  %v8157_v21 = vsel %vm2574_vm1, %v7804_v60, 0 }
0x1210   :  { %v7685_v62 = vpop.xlane.xlu0 %7684 }
0x1211   :  { %10026 = vrcp.f32 %v7685_v62 }
0x1217   :  { %v10027_v55 = vpop.eup %10026 }
0x1218   :  { %v7697_v0 = vmul.f32 %v10027_v55, %v10019_v6 }
0x121a   :  { %v8008_v9 = vsel %vm2574_vm1, %v7697_v0, 0 }
0x121b   :  { %v8025_v43 = vand.u32 4294901760, %v8008_v9 }
0x121c   :  { %v7688_v41 = vpop.xlane.xlu1 %7687 }
0x121d   :  { %10028 = vrcp.f32 %v7688_v41  ;;  %8026 = vmatpush.xpose.msra.mxu2 %v8025_v43  ;;  %8102 = vmatpush.xpose.msra.mxu1 %v8025_v43  ;;  %v8052_v38 = vsub.f32 %v8008_v9, %v8025_v43  ;;  %v10045_v9 = vld [vmem:[#allocation8 + $0x60] sm:$0xff] }
0x121f   :  { %8079 = vmatpush.xpose.msra.mxu0 %v8052_v38  ;;  %v8053_v42 = vand.u32 4294901760, %v8052_v38 }
0x1221   :  { %8128 = vmatpush.xpose.msrb.mxu2 %v8053_v42  ;;  %v8054_v52 = vsub.f32 %v8052_v38, %v8053_v42 }
0x1223   :  { %v10029_v14 = vpop.eup %10028  ;;  %v8055_v53 = vand.u32 4294901760, %v8054_v52 }
0x1224   :  { %v7698_v8 = vmul.f32 %v10029_v14, %v10021_v27  ;;  %v6269_v27 = vadd.f32 %v11137_v16, %v11131_v2  ;;  %v6421_v2 = vadd.f32 %v11152_v56, %v11148_v32  ;;  %v6037_v16 = vadd.f32 %v11113_v13, %v6013_v39 }
0x1225   :  { %8056 = vmatpush.xpose.msra.mxu3 %v8055_v53 }
0x1226   :  { %v8160_v6 = vsel %vm2574_vm1, %v7698_v8, 0  ;;  %v6293_v10 = vadd.f32 %v11139_v61, %v6269_v27  ;;  %v6445_v30 = vadd.f32 %v11150_v49, %v6421_v2  ;;  %v6059_v61 = vadd.f32 %v11117_v40, %v6037_v16 }
0x1227   :  { %v8177_v19 = vand.u32 4294901760, %v8160_v6 }
0x1228   :  { %v6317_v29 = vadd.f32 %v11144_v51, %v6293_v10  ;;  %v6469_v58 = vadd.f32 %v11154_v5, %v6445_v30 }
0x1229   :  { %8150 = vmatpush.xpose.msrb.mxu3 %v8025_v43  ;;  %8178 = vmatpush.xpose.msrb.mxu0 %v8177_v19  ;;  %v8204_v24 = vsub.f32 %v8160_v6, %v8177_v19  ;;  %v10046_v43 = vld [vmem:[#allocation8 + $0x48] sm:$0xff] }
0x122a   :  { %v6341_v22 = vadd.f32 %v11141_v33, %v6317_v29  ;;  %v6493_v63 = vadd.f32 %v11156_v25, %v6469_v58 }
0x122b   :  { %v8205_v15 = vand.u32 4294901760, %v8204_v24 }
0x122c   :  { %v6363_v28 = vadd.f32 %v11146_v50, %v6341_v22  ;;  %v6515_v33 = vadd.f32 %v11158_v23, %v6493_v63  ;;  %v8179_v50 = vand.u32 4294901760, %v8157_v21 }
0x122d   :  { %v8206_v59 = vsub.f32 %v8204_v24, %v8205_v15 }
0x122e   :  { %v8180_v56 = vsub.f32 %v8157_v21, %v8179_v50 }
0x122f   :  { %v8207_v37 = vand.u32 4294901760, %v8206_v59 }
0x1230   :  { %v8181_v7 = vand.u32 4294901760, %v8180_v56 }
0x1231   :  { %8208 = vmatpush.xpose.msrb.mxu1 %v8207_v37 }
0x1232   :  { %v8182_v3 = vsub.f32 %v8180_v56, %v8181_v7 }
0x1234   :  { %v8183_v55 = vand.u32 4294901760, %v8182_v3 }
0x1237   :  { %6549 = vxpose.xlu2.b32.start.end [1/1] (short) (narrow) %v6211_v34, 8 }
0x123f   :  { %v7713_v57 = vpop.permute.xlu2 %7712 }
0x1240   :  { %7820 = vxpose.xlu0.b32.start [1/2] (short) (narrow) %v7713_v57, 8 }
0x1248   :  { %7821 = vxpose.xlu0.b32.end [2/2] (short) (narrow) %v11168_v31, 8 }
0x124b   :  { %v7881_v42 = vpop.f32.mrf.mxu0 }
0x1250   :  { %6581 = vxpose.xlu0.b32.start.end [1/1] (short) (narrow) %v6363_v28, 8 }
0x1253   :  { %v7907_v41 = vpop.f32.mrf.mxu1  ;;  %v7931_v8 = vpop.f32.mrf.mxu2 }
0x1254   :  { %v7908_v14 = vadd.f32 %v7907_v41, %v7881_v42  ;;  %v7979_v59 = vpop.f32.mrf.mxu0 }
0x1256   :  { %v7932_v6 = vadd.f32 %v7931_v8, %v7908_v14 }
0x1258   :  { %6517 = vxpose.xlu0.b32.start.end [1/1] (short) (narrow) %v6059_v61, 8 }
0x125b   :  { %v8001_v26 = vpop.f32.mrf.mxu1 }
0x1260   :  { %6613 = vxpose.xlu0.b32.start.end [1/1] (short) (narrow) %v6515_v33, 8 }
0x1281   :  { %v7691_v51 = vpop.xlane.xlu2 %7690 }
0x1282   :  { %10030 = vrcp.f32 %v7691_v51 }
0x1287   :  { %v7772_v13 = vpop.trf.xlu1 }
0x1288   :  { %v10031_v32 = vpop.eup %10030  ;;  %v8005_v5 = vsel %vm2574_vm1, %v7772_v13, 0 }
0x1289   :  { %v7699_v49 = vmul.f32 %v10031_v32, %v11177_v20  ;;  %v8027_v31 = vand.u32 4294901760, %v8005_v5 }
0x128b   :  { %v8312_v40 = vsel %vm2574_vm1, %v7699_v49, 0  ;;  %v8028_v45 = vsub.f32 %v8005_v5, %v8027_v31  ;;  %8058 = vmatmul.f32.vlgmr.msra.gmra.mxu3 %v8027_v31 }
0x128c   :  { %v8329_v25 = vand.u32 4294901760, %v8312_v40  ;;  %8254 = vmatpush.xpose.msra.mxu3 %v8177_v19 }
0x128d   :  { %v8029_v44 = vand.u32 4294901760, %v8028_v45  ;;  %8082 = vmatmul.f32.vlgmr.msra.gmra.mxu0 %v8028_v45 }
0x128e   :  { %v8356_v23 = vsub.f32 %v8312_v40, %v8329_v25  ;;  %8280 = vmatpush.xpose.msra.mxu0 %v8205_v15 }
0x128f   :  { %v8030_v1 = vsub.f32 %v8028_v45, %v8029_v44  ;;  %8106 = vmatmul.f32.vlgmr.msra.gmra.mxu1 %v8029_v44 }
0x1290   :  { %v8357_v12 = vand.u32 4294901760, %v8356_v23  ;;  %8302 = vmatpush.xpose.msra.mxu1 %v8177_v19 }
0x1291   :  { %v8031_v20 = vand.u32 4294901760, %v8030_v1 }
0x1292   :  { %v8358_v62 = vsub.f32 %v8356_v23, %v8357_v12 }
0x1293   :  { %8032 = vmatmul.f32.vlgmr.msra.gmra.mxu2 %v8031_v20  ;;  %8152 = vmatmul.f32.vlgmr.msrb.gmra.mxu3 %v8027_v31 }
0x1294   :  { %v8359_v0 = vand.u32 4294901760, %v8358_v62  ;;  %8231 = vmatpush.xpose.msra.mxu2 %v8204_v24  ;;  %v7955_v24 = vpop.f32.mrf.mxu3 }
0x1295   :  { %8184 = vmatmul.f32.vlgmr.msrb.gmra.mxu0 %v8183_v55  ;;  %v7956_v15 = vadd.f32 %v7955_v24, %v7932_v6 }
0x1296   :  { %8360 = vmatpush.xpose.msrb.mxu3 %v8359_v0  ;;  %8383 = vmatpush.xpose.msrb.mxu0 %v8356_v23 }
0x1297   :  { %8210 = vmatmul.f32.vlgmr.msrb.gmra.mxu1 %v8179_v50  ;;  %v7980_v37 = vadd.f32 %v7979_v59, %v7956_v15 }
0x1298   :  { %8406 = vmatpush.xpose.msrb.mxu1 %v8329_v25 }
0x1299   :  { %v8002_v60 = vadd.f32 %v8001_v26, %v7980_v37 }
0x129b   :  { %8130 = vmatmul.f32.vlgmr.msrb.gmra.mxu2 %v8027_v31  ;;  %8258 = vmatmul.f32.vlgmr.msra.gmra.mxu3 %v8181_v7 }
0x129c   :  { %8330 = vmatpush.xpose.msrb.mxu2 %v8329_v25  ;;  %8454 = vmatpush.xpose.msra.mxu3 %v8329_v25 }
0x129d   :  { %8282 = vmatmul.f32.vlgmr.msra.gmra.mxu0 %v8179_v50 }
0x129f   :  { %8304 = vmatmul.f32.vlgmr.msra.gmra.mxu1 %v8179_v50 }
0x12a3   :  { %8234 = vmatmul.f32.vlgmr.msra.gmra.mxu2 %v8180_v56 }
0x12a4   :  { %8432 = vmatpush.xpose.msra.mxu2 %v8357_v12 }
0x12ce   :  { %8723 = vrot.lane.b32.xlu0 %v10045_v9, %s10195_s14 }
0x12d0   :  { %v6565_v17 = vpop.trf.xlu2 }
0x12d1   :  { %v6659_v39 = vrot.slane %v6565_v17, 4 }
0x12d6   :  { %8717 = vrot.lane.b32.xlu0 %v10046_v43, %s10195_s14 }
0x12e4   :  { %v7836_v38 = vpop.trf.xlu0 }
0x12e5   :  { %v8309_v52 = vsel %vm2574_vm1, %v7836_v38, 0 }
0x12e6   :  { %v8331_v53 = vand.u32 4294901760, %v8309_v52 }
0x12e8   :  { %v8332_v18 = vsub.f32 %v8309_v52, %v8331_v53  ;;  %8362 = vmatmul.f32.vlgmr.msrb.gmra.mxu3 %v8331_v53 }
0x12ea   :  { %v8333_v19 = vand.u32 4294901760, %v8332_v18  ;;  %8386 = vmatmul.f32.vlgmr.msrb.gmra.mxu0 %v8332_v18 }
0x12ec   :  { %v8334_v4 = vsub.f32 %v8332_v18, %v8333_v19  ;;  %8410 = vmatmul.f32.vlgmr.msrb.gmra.mxu1 %v8333_v19 }
0x12ee   :  { %v8335_v54 = vand.u32 4294901760, %v8334_v4 }
0x12f0   :  { %8336 = vmatmul.f32.vlgmr.msrb.gmra.mxu2 %v8335_v54  ;;  %8456 = vmatmul.f32.vlgmr.msra.gmra.mxu3 %v8331_v53 }
0x12f4   :  { %v6597_v34 = vpop.trf.xlu0 }
0x12f5   :  { %v6645_v27 = vrot.slane %v6597_v34, 4 }
0x12f8   :  { %8460 = vxpose.xlu0.b32.start.end [1/1] (short) (narrow) %v8002_v60, 8  ;;  %8434 = vmatmul.f32.vlgmr.msra.gmra.mxu2 %v8331_v53 }
0x12fc   :  { %v6533_v57 = vpop.trf.xlu0 }
0x12fd   :  { %v6647_v10 = vrot.slane %v6533_v57, 4  ;;  %v6646_v29 = vsel %vm2451_vm15, %v6645_v27, %v6533_v57 }
0x12fe   :  { %v6652_v28 = vperm.slane %v6646_v29, %v10648_v36  ;;  %v10047_v29 = vld [vmem:[#allocation8 + $0x58] sm:$0xff] }
0x12ff   :  { %v6648_v47 = vsel %vm2451_vm15, %v6597_v34, %v6647_v10 }
0x1300   :  { %v6656_v22 = vperm.slane %v6648_v47, %v10648_v36  ;;  %v6671_v61 = vrot.slane %v6652_v28, 4 }
0x1302   :  { %v6683_v2 = vrot.slane %v6656_v22, 4 }
0x1304   :  { %v6629_v16 = vpop.trf.xlu0 }
0x1305   :  { %v6657_v30 = vrot.slane %v6629_v16, 4  ;;  %v6660_v58 = vsel %vm2451_vm15, %v6629_v16, %v6659_v39 }
0x1306   :  { %v6668_v63 = vperm.slane %v6660_v58, %v10648_v36 }
0x1307   :  { %v6658_v33 = vsel %vm2451_vm15, %v6657_v30, %v6565_v17 }
0x1308   :  { %v6664_v21 = vperm.slane %v6658_v33, %v10648_v36  ;;  %v6681_v51 = vrot.slane %v6668_v63, 4  ;;  %v6684_v50 = vsel %vm2451_vm15, %v6668_v63, %v6683_v2 }
0x1309   :  { %v6692_v32 = vperm.slane %v6684_v50, %v10655_v46 }
0x130a   :  { %v6669_v56 = vrot.slane %v6664_v21, 4  ;;  %v6672_v13 = vsel %vm2451_vm15, %v6664_v21, %v6671_v61  ;;  %v6682_v49 = vsel %vm2451_vm15, %v6681_v51, %v6656_v22  ;;  %v10048_v22 = vld [vmem:[#allocation8 + $0x50] sm:$0xff]  ;;  %v8083_v30 = vpop.f32.mrf.mxu0 }
0x130b   :  { %v6680_v5 = vperm.slane %v6672_v13, %v10655_v46  ;;  %v6688_v31 = vperm.slane %v6682_v49, %v10655_v46  ;;  %v6699_v40 = vrot.slane %v6692_v32, 4 }
0x130c   :  { %v6670_v7 = vsel %vm2451_vm15, %v6669_v56, %v6652_v28  ;;  %v8107_v16 = vpop.f32.mrf.mxu1 }
0x130d   :  { %v6676_v25 = vperm.slane %v6670_v7, %v10655_v46  ;;  %v6695_v45 = vrot.slane %v6680_v5, 4  ;;  %v6697_v23 = vrot.slane %v6688_v31, 4  ;;  %v6700_v44 = vsel %vm2451_vm15, 0.0, %v6699_v40 }
0x130e   :  { %v6712_v3 = vsel %vm2451_vm15, %v6699_v40, %v6688_v31  ;;  %v6717_v1 = vrot.slane %v6700_v44, 4  ;;  %v8059_v2 = vpop.f32.mrf.mxu3 }
0x130f   :  { %v6693_v12 = vrot.slane %v6676_v25, 4  ;;  %v6696_v20 = vsel %vm2451_vm15, 0.0, %v6695_v45  ;;  %v6698_v62 = vsel %vm2451_vm15, 0.0, %v6697_v23  ;;  %v6716_v55 = vperm.slane %v6712_v3, %v10648_v36 }
0x1310   :  { %v6706_v0 = vrot.slane %v6696_v20, 4  ;;  %v6718_v9 = vsel %vm2451_vm15, %v6717_v1, %v6698_v62  ;;  %v6701_v43 = vsel %vm2451_vm15, %v6695_v45, %v6676_v25 }
0x1311   :  { %v6694_v41 = vsel %vm2451_vm15, 0.0, %v6693_v12  ;;  %v6705_v38 = vperm.slane %v6701_v43, %v10648_v36  ;;  %v6722_v42 = vperm.slane %v6718_v9, %v10648_v36  ;;  %v6737_v52 = vrot.slane %v6716_v55, 4 }
0x1312   :  { %v6707_v14 = vsel %vm2451_vm15, %v6706_v0, %v6694_v41  ;;  %v8185_v50 = vpop.f32.mrf.mxu0 }
0x1313   :  { %v6711_v53 = vperm.slane %v6707_v14, %v10648_v36  ;;  %v6725_v18 = vrot.slane %v6705_v38, 4  ;;  %v6738_v8 = vsel %vm2451_vm15, %v6722_v42, %v6737_v52  ;;  %v6735_v6 = vrot.slane %v6722_v42, 4 }
0x1314   :  { %v6746_v19 = vperm.slane %v6738_v8, %v10655_v46  ;;  %v8211_v21 = vpop.f32.mrf.mxu1 }
0x1315   :  { %v6726_v4 = vsel %vm2451_vm15, %v6711_v53, %v6725_v18  ;;  %v6723_v24 = vrot.slane %v6711_v53, 4  ;;  %v6736_v15 = vsel %vm2451_vm15, %v6735_v6, %v6716_v55  ;;  %v8212_v56 = vadd.f32 %v8211_v21, %v8185_v50 }
0x1316   :  { %v6734_v54 = vperm.slane %v6726_v4, %v10655_v46  ;;  %v6751_v59 = vrot.slane %v6746_v19, 4  ;;  %v6742_v37 = vperm.slane %v6736_v15, %v10655_v46  ;;  %v8033_v28 = vpop.f32.mrf.mxu2  ;;  %v8153_v33 = vpop.f32.mrf.mxu3 }
0x1317   :  { %v6724_v26 = vsel %vm2451_vm15, %v6723_v24, %v6705_v38  ;;  %v8060_v61 = vadd.f32 %v8059_v2, %v8033_v28 }
0x1318   :  { %v6752_v34 = vsel %vm2451_vm15, %v6751_v59, %v6734_v54  ;;  %v6730_v60 = vperm.slane %v6724_v26, %v10655_v46  ;;  %v6747_v27 = vrot.slane %v6742_v37, 4  ;;  %v6753_v47 = vrot.slane %v6734_v54, 4 }
0x1319   :  { %6760 = vrot.lane.b32.xlu1 %v6752_v34, %s10194_s13  ;;  %v8084_v63 = vadd.f32 %v8083_v30, %v8060_v61 }
0x131a   :  { %v6749_v57 = vrot.slane %v6730_v60, 4  ;;  %v11254_v10 = vsel %vm2451_vm15, %v6747_v27, %v6730_v60  ;;  %v6754_v39 = vsel %vm2451_vm15, %v6746_v19, %v6753_v47  ;;  %v8283_v7 = vpop.f32.mrf.mxu0 }
0x131b   :  { %v8108_v51 = vadd.f32 %v8107_v16, %v8084_v63 }
0x131c   :  { %v6750_v17 = vsel %vm2451_vm15, %v6742_v37, %v6749_v57  ;;  %v8305_v45 = vpop.f32.mrf.mxu1 }
0x131d   :  { %6756 = vrot.lane.b32.xlu2 %v6750_v17, %s10181_s24 }
0x131e   :  { %v8131_v58 = vpop.f32.mrf.mxu2  ;;  %v8259_v5 = vpop.f32.mrf.mxu3 }
0x131f   :  { %v8132_v13 = vadd.f32 %v8131_v58, %v8108_v51 }
0x1321   :  { %8721 = vrot.lane.b32.xlu1 %v10047_v29, %s10195_s14  ;;  %v8154_v31 = vadd.f32 %v8153_v33, %v8132_v13 }
0x1325   :  { %8719 = vrot.lane.b32.xlu2 %v10048_v22, %s10195_s14 }
0x1326   :  { %v8235_v32 = vpop.f32.mrf.mxu2 }
0x1327   :  { %v8236_v49 = vadd.f32 %v8235_v32, %v8212_v56 }
0x1329   :  { %6764 = vrot.lane.b32.xlu1 %v6754_v39, %s10193_s12  ;;  %v8260_v40 = vadd.f32 %v8259_v5, %v8236_v49 }
0x132b   :  { %v8284_v25 = vadd.f32 %v8283_v7, %v8260_v40 }
0x132d   :  { %v8306_v23 = vadd.f32 %v8305_v45, %v8284_v25 }
0x1340   :  { %v8724_v44 = vpop.permute.xlu0 %8723 }
0x1341   :  { %v11262_v3 = vand.u32 4294901760, %v8724_v44 }
0x1343   :  { %v8789_v1 = vsub.f32 %v8724_v44, %v11262_v3  ;;  %8869 = vmatpush.msrb.mxu3 %v11262_v3  ;;  %8752 = vmatpush.msra.mxu0 %v11262_v3 }
0x1345   :  { %v8790_v12 = vand.u32 4294901760, %v8789_v1  ;;  %8835 = vmatpush.msrb.mxu2 %v8789_v1 }
0x1347   :  { %v8791_v55 = vsub.f32 %v8789_v1, %v8790_v12 }
0x1348   :  { %v8718_v4 = vpop.permute.xlu0 %8717 }
0x1349   :  { %v8792_v43 = vand.u32 4294901760, %v8791_v55  ;;  %v8757_v15 = vand.u32 4294901760, %v8718_v4 }
0x134b   :  { %8793 = vmatpush.msra.mxu1 %v8792_v43  ;;  %v8807_v59 = vsub.f32 %v8718_v4, %v8757_v15 }
0x134d   :  { %v8808_v27 = vand.u32 4294901760, %v8807_v59 }
0x134f   :  { %v8809_v22 = vsub.f32 %v8807_v59, %v8808_v27 }
0x135e   :  { %8492 = vxpose.xlu1.b32.start.end [1/1] (short) (narrow) %v8154_v31, 8 }
0x1366   :  { %8524 = vxpose.xlu1.b32.start.end [1/1] (short) (narrow) %v8306_v23, 8 }
0x1367   :  { %v8387_v9 = vpop.f32.mrf.mxu0 }
0x1369   :  { %v8411_v38 = vpop.f32.mrf.mxu1 }
0x136b   :  { %v8363_v20 = vpop.f32.mrf.mxu3 }
0x1373   :  { %v8337_v62 = vpop.f32.mrf.mxu2  ;;  %v8457_v53 = vpop.f32.mrf.mxu3 }
0x1374   :  { %v8364_v0 = vadd.f32 %v8363_v20, %v8337_v62 }
0x1376   :  { %v8388_v41 = vadd.f32 %v8387_v9, %v8364_v0 }
0x1377   :  { %v6757_v8 = vpop.permute.xlu2 %6756 }
0x1378   :  { %v8412_v42 = vadd.f32 %v8411_v38, %v8388_v41  ;;  %v6767_v29 = vsel %vm937_vm14, %v11254_v10, %v6757_v8  ;;  %v8810_v10 = vand.u32 4294901760, %v8809_v22 }
0x137b   :  { %v8435_v52 = vpop.f32.mrf.mxu2 }
0x137c   :  { %v8436_v14 = vadd.f32 %v8435_v52, %v8412_v42 }
0x137e   :  { %v8458_v18 = vadd.f32 %v8457_v53, %v8436_v14 }
0x137f   :  { %v8720_v6 = vpop.permute.xlu2 %8719 }
0x1380   :  { %8556 = vxpose.xlu2.b32.start.end [1/1] (short) (narrow) %v8458_v18, 8  ;;  %v8755_v24 = vand.u32 4294901760, %v8720_v6 }
0x1382   :  { %v8801_v54 = vsub.f32 %v8720_v6, %v8755_v24 }
0x1384   :  { %v8802_v34 = vand.u32 4294901760, %v8801_v54 }
0x1386   :  { %v8803_v17 = vsub.f32 %v8801_v54, %v8802_v34 }
0x1388   :  { %v8804_v30 = vand.u32 4294901760, %v8803_v17 }
0x138b   :  { %v6761_v19 = vpop.permute.xlu1 %6760 }
0x138c   :  { %v6768_v39 = vsel %vm2574_vm1, %v6767_v29, %v6761_v19 }
0x1393   :  { %v8722_v37 = vpop.permute.xlu1 %8721 }
0x1394   :  { %v8753_v26 = vand.u32 4294901760, %v8722_v37 }
0x1396   :  { %v8795_v60 = vsub.f32 %v8722_v37, %v8753_v26  ;;  %8871 = vmatpush.msrb.mxu3 %v8753_v26  ;;  %8754 = vmatpush.msra.mxu0 %v8753_v26 }
0x1398   :  { %v8796_v57 = vand.u32 4294901760, %v8795_v60  ;;  %8838 = vmatpush.msrb.mxu2 %v8795_v60  ;;  %8873 = vmatpush.msrb.mxu3 %v8755_v24 }
0x1399   :  { %8756 = vmatpush.msra.mxu0 %v8755_v24 }
0x139a   :  { %v8797_v47 = vsub.f32 %v8795_v60, %v8796_v57  ;;  %8841 = vmatpush.msrb.mxu2 %v8801_v54  ;;  %8875 = vmatpush.msrb.mxu3 %v8757_v15 }
0x139b   :  { %v6765_v28 = vpop.permute.xlu1 %6764  ;;  %8758 = vmatpush.msra.mxu0 %v8757_v15 }
0x139c   :  { %v6769_v2 = vsel %vm2576_vm2, %v6768_v39, %v6765_v28  ;;  %v8798_v16 = vand.u32 4294901760, %v8797_v47  ;;  %8844 = vmatpush.msrb.mxu2 %v8807_v59  ;;  %v8476_v32 = vpop.trf.xlu0 }
0x139d   :  { %8904 = vmatpush.msrb.mxu0 %v8790_v12  ;;  %v8734_v58 = vsel %vm123_vm0, %v6769_v2, 0  ;;  %v8590_v13 = vrot.slane %v8476_v32, 4 }
0x139e   :  { %v11272_v61 = vand.u32 4294901760, %v8734_v58  ;;  %8799 = vmatpush.msra.mxu1 %v8798_v16 }
0x139f   :  { %8908 = vmatpush.msrb.mxu0 %v8796_v57 }
0x13a0   :  { %v8760_v63 = vsub.f32 %v8734_v58, %v11272_v61  ;;  %8805 = vmatpush.msra.mxu1 %v8804_v30 }
0x13a1   :  { %8912 = vmatpush.msrb.mxu0 %v8802_v34 }
0x13a2   :  { %v8761_v33 = vand.u32 4294901760, %v8760_v63  ;;  %8811 = vmatpush.msra.mxu1 %v8810_v10  ;;  %8847 = vmatmul.f32.vlgmr.msrb.gmra.mxu2 %v8760_v63 }
0x13a3   :  { %8813 = vmatmul.f32.vlgmr.msra.gmra.mxu1 %v11272_v61  ;;  %8916 = vmatpush.msrb.mxu0 %v8808_v27 }
0x13a4   :  { %v8762_v21 = vsub.f32 %v8760_v63, %v8761_v33  ;;  %8879 = vmatmul.f32.vlgmr.msrb.gmra.mxu3 %v8761_v33  ;;  %8939 = vmatpush.msrb.mxu1 %v11262_v3 }
0x13a6   :  { %v8763_v51 = vand.u32 4294901760, %v8762_v21  ;;  %8941 = vmatpush.msrb.mxu1 %v8753_v26 }
0x13a8   :  { %8764 = vmatmul.f32.vlgmr.msra.gmra.mxu0 %v8763_v51  ;;  %8943 = vmatpush.msrb.mxu1 %v8755_v24 }
0x13aa   :  { %8945 = vmatpush.msrb.mxu1 %v8757_v15 }
0x1402   :  { %v8508_v50 = vpop.trf.xlu1 }
0x1403   :  { %v8602_v25 = vrot.slane %v8508_v50, 4 }
0x140a   :  { %v8540_v56 = vpop.trf.xlu1 }
0x140b   :  { %v8588_v49 = vrot.slane %v8540_v56, 4  ;;  %v8591_v5 = vsel %vm2451_vm15, %v8540_v56, %v8590_v13 }
0x140c   :  { %v8599_v40 = vperm.slane %v8591_v5, %v10648_v36 }
0x140d   :  { %v8589_v31 = vsel %vm2451_vm15, %v8588_v49, %v8476_v32 }
0x140e   :  { %v8595_v7 = vperm.slane %v8589_v31, %v10648_v36  ;;  %v8626_v45 = vrot.slane %v8599_v40, 4 }
0x1410   :  { %v8614_v1 = vrot.slane %v8595_v7, 4 }
0x1419   :  { %v8572_v23 = vpop.trf.xlu2 }
0x141a   :  { %v8600_v44 = vrot.slane %v8572_v23, 4  ;;  %v8603_v3 = vsel %vm2451_vm15, %v8572_v23, %v8602_v25  ;;  %v11750_v25 = vld [vmem:[#allocation18_spill] sm:$0xff] }
0x141b   :  { %v8611_v12 = vperm.slane %v8603_v3, %v10648_v36 }
0x141c   :  { %v8601_v20 = vsel %vm2451_vm15, %v8600_v44, %v8508_v50 }
0x141d   :  { %v8607_v62 = vperm.slane %v8601_v20, %v10648_v36  ;;  %v8624_v55 = vrot.slane %v8611_v12, 4  ;;  %v8627_v0 = vsel %vm2451_vm15, %v8611_v12, %v8626_v45  ;;  %v8957_v45 = vadd.f32 %v10809_v11, %v11750_v25 }
0x141e   :  { %v8635_v9 = vperm.slane %v8627_v0, %v10655_v46 }
0x141f   :  { %v8612_v43 = vrot.slane %v8607_v62, 4  ;;  %v8615_v41 = vsel %vm2451_vm15, %v8607_v62, %v8614_v1  ;;  %v8625_v38 = vsel %vm2451_vm15, %v8624_v55, %v8599_v40  ;;  %v11749_v40 = vld [vmem:[#allocation16_spill] sm:$0xff]  ;;  %v8965_v23 = vsel %vm123_vm0, %v8957_v45, 0.0 }
0x1420   :  { %v8623_v42 = vperm.slane %v8615_v41, %v10655_v46  ;;  %v8631_v52 = vperm.slane %v8625_v38, %v10655_v46  ;;  %v8642_v14 = vrot.slane %v8635_v9, 4 }
0x1421   :  { %v8613_v53 = vsel %vm2451_vm15, %v8612_v43, %v8595_v7  ;;  %v8814_v43 = vpop.f32.mrf.mxu1 }
0x1422   :  { %v8619_v18 = vperm.slane %v8613_v53, %v10655_v46  ;;  %v8638_v8 = vrot.slane %v8623_v42, 4  ;;  %v8640_v6 = vrot.slane %v8631_v52, 4  ;;  %v8643_v19 = vsel %vm2451_vm15, 0.0, %v8642_v14 }
0x1423   :  { %v8655_v4 = vsel %vm2451_vm15, %v8642_v14, %v8631_v52  ;;  %v8660_v24 = vrot.slane %v8643_v19, 4 }
0x1424   :  { %v8636_v15 = vrot.slane %v8619_v18, 4  ;;  %v8639_v54 = vsel %vm2451_vm15, 0.0, %v8638_v8  ;;  %v8641_v59 = vsel %vm2451_vm15, 0.0, %v8640_v6  ;;  %v8659_v37 = vperm.slane %v8655_v4, %v10648_v36 }
0x1425   :  { %v8649_v26 = vrot.slane %v8639_v54, 4  ;;  %v8661_v34 = vsel %vm2451_vm15, %v8660_v24, %v8641_v59  ;;  %v8644_v60 = vsel %vm2451_vm15, %v8638_v8, %v8619_v18  ;;  %v8765_v41 = vpop.f32.mrf.mxu0  ;;  %v8848_v18 = vpop.f32.mrf.mxu2 }
0x1426   :  { %v8637_v27 = vsel %vm2451_vm15, 0.0, %v8636_v15  ;;  %v8648_v57 = vperm.slane %v8644_v60, %v10648_v36  ;;  %v8665_v17 = vperm.slane %v8661_v34, %v10648_v36  ;;  %v8680_v29 = vrot.slane %v8659_v37, 4 }
0x1427   :  { %v8650_v47 = vsel %vm2451_vm15, %v8649_v26, %v8637_v27  ;;  %v8880_v19 = vpop.f32.mrf.mxu3  ;;  %v11751_v26 = vld [vmem:[#allocation15_spill] sm:$0xff] }
0x1428   :  { %v8654_v22 = vperm.slane %v8650_v47, %v10648_v36  ;;  %v8668_v39 = vrot.slane %v8648_v57, 4  ;;  %v8681_v28 = vsel %vm2451_vm15, %v8665_v17, %v8680_v29  ;;  %v8678_v2 = vrot.slane %v8665_v17, 4 }
0x1429   :  { %v8689_v16 = vperm.slane %v8681_v28, %v10655_v46 }
0x142a   :  { %v8669_v30 = vsel %vm2451_vm15, %v8654_v22, %v8668_v39  ;;  %v8666_v58 = vrot.slane %v8654_v22, 4  ;;  %v8679_v10 = vsel %vm2451_vm15, %v8678_v2, %v8659_v37 }
0x142b   :  { %v8677_v63 = vperm.slane %v8669_v30, %v10655_v46  ;;  %v8694_v33 = vrot.slane %v8689_v16, 4  ;;  %v8685_v21 = vperm.slane %v8679_v10, %v10655_v46 }
0x142c   :  { %v8667_v51 = vsel %vm2451_vm15, %v8666_v58, %v8648_v57  ;;  %v11752_v57 = vld [vmem:[#allocation17_spill] sm:$0xff] }
0x142d   :  { %v8695_v36 = vsel %vm2451_vm15, %v8694_v33, %v8677_v63  ;;  %v8696_v50 = vrot.slane %v8677_v63, 4  ;;  %v8673_v32 = vperm.slane %v8667_v51, %v10655_v46  ;;  %v8690_v56 = vrot.slane %v8685_v21, 4  ;;  %v11753_v33 = vld [vmem:[#allocation19_spill] sm:$0xff] }
0x142e   :  { %8703 = vrot.lane.b32.xlu2 %v8695_v36, %s10194_s13  ;;  %v8955_v46 = vadd.f32 %v10805_v35, %v11749_v40 }
0x142f   :  { %v8697_v13 = vsel %vm2451_vm15, %v8689_v16, %v8696_v50  ;;  %v8692_v49 = vrot.slane %v8673_v32, 4  ;;  %v8691_v5 = vsel %vm2451_vm15, %v8690_v56, %v8673_v32 }
0x1430   :  { %8707 = vrot.lane.b32.xlu0 %v8697_v13, %s10193_s12  ;;  %v8959_v7 = vsel %vm123_vm0, %v8955_v46, 0.0  ;;  %v10049_v13 = vld [vmem:[#allocation8] ss:$0 sm:$0xff] }
0x1431   :  { %v8693_v31 = vsel %vm2451_vm15, %v8685_v21, %v8692_v49 }
0x1432   :  { %8699 = vrot.lane.b32.xlu1 %v8693_v31, %s10181_s24 }
0x143a   :  { %8730 = vrot.lane.b32.xlu1 %v10828_v48, %s10195_s14 }
0x1457   :  { %8960 = vadd.xlane.f32.xlu2 %v8959_v7 }
0x1464   :  { %8966 = vadd.xlane.f32.xlu1 %v8965_v23 }
0x1488   :  { %v8704_v3 = vpop.permute.xlu2 %8703 }
0x14a2   :  { %v8708_v12 = vpop.permute.xlu0 %8707 }
0x14a4   :  { %v8700_v44 = vpop.permute.xlu1 %8699 }
0x14a5   :  { %v8710_v1 = vsel %vm937_vm14, %v8691_v5, %v8700_v44 }
0x14a6   :  { %v8711_v20 = vsel %vm2574_vm1, %v8710_v1, %v8704_v3  ;;  %vm10196_vm1 = vmmov 1  }
0x14a7   :  { %v8712_v48 = vsel %vm2576_vm2, %v8711_v20, %v8708_v12 }
0x14a8   :  { %v8737_v35 = vsel %vm123_vm0, %v8712_v48, 0 }
0x14a9   :  { %v8767_v62 = vand.u32 4294901760, %v8737_v35 }
0x14ab   :  { %8817 = vmatmul.f32.gmra.mxu1 %v8767_v62  ;;  %v8768_v55 = vsub.f32 %v8737_v35, %v8767_v62 }
0x14ac   :  { %v8731_v38 = vpop.permute.xlu1 %8730 }
0x14ad   :  { %8852 = vmatmul.f32.gmra.mxu2 %v8768_v55  ;;  %v8769_v0 = vand.u32 4294901760, %v8768_v55  ;;  %v8766_v42 = vadd.f32 %v8765_v41, %v8731_v38 }
0x14af   :  { %8885 = vmatmul.f32.gmra.mxu3 %v8769_v0  ;;  %v8770_v11 = vsub.f32 %v8768_v55, %v8769_v0  ;;  %v8815_v14 = vadd.f32 %v8814_v43, %v8766_v42  ;;  %v104_v0 = vld [vmem:[#allocation8 + $0x78] sm:$0xff]  ;;  %v103_v43 = vld [vmem:[#allocation8 + $0x70] sm:$0xff] }
0x14b0   :  { %v9090_v42 = vand.u32 4294901760, %v103_v43 }
0x14b1   :  { %v8771_v9 = vand.u32 4294901760, %v8770_v11  ;;  %v8849_v6 = vadd.f32 %v8848_v18, %v8815_v14 }
0x14b3   :  { %8772 = vmatmul.f32.gmra.mxu0 %v8771_v9  ;;  %8947 = vmatmul.f32.vlgmr.msrb.gmra.mxu1 %v11272_v61  ;;  %v8881_v15 = vadd.f32 %v8880_v19, %v8849_v6  ;;  %v9088_v9 = vand.u32 4294901760, %v104_v0 }
0x14bb   :  { %8918 = vmatmul.f32.vlgmr.msrb.gmra.mxu0 %v11272_v61  ;;  %8951 = vmatmul.f32.gmra.mxu1 %v8767_v62 }
0x14c3   :  { %8922 = vmatmul.f32.gmra.mxu0 %v8767_v62  ;;  %v105_v62 = vld [vmem:[#allocation8 + $0x80] sm:$0xff] }
0x14c4   :  { %v9086_v55 = vand.u32 4294901760, %v105_v62 }
0x14c6   :  { %v9140_v11 = vsub.f32 %v105_v62, %v9086_v55  ;;  %9238 = vmatpush.msra.mxu1 %v9086_v55  ;;  %9087 = vmatpush.msra.mxu2 %v9086_v55 }
0x14c8   :  { %v9141_v41 = vand.u32 4294901760, %v9140_v11  ;;  %9194 = vmatpush.msra.mxu0 %v9140_v11  ;;  %9240 = vmatpush.msra.mxu1 %v9088_v9 }
0x14c9   :  { %9089 = vmatpush.msra.mxu2 %v9088_v9 }
0x14ca   :  { %v8961_v4 = vpop.xlane.xlu2 %8960  ;;  %9242 = vmatpush.msra.mxu1 %v9090_v42 }
0x14cb   :  { %v8971_v34 = vmul.f32 %v8961_v4, %v11751_v26  ;;  %9091 = vmatpush.msra.mxu2 %v9090_v42 }
0x14cd   :  { %v11336_v47 = vsub.f32 %v8955_v46, %v8971_v34 }
0x14cf   :  { %v8979_v63 = vmul.f32 %v11336_v47, %v11336_v47 }
0x14d1   :  { %v8983_v36 = vsel %vm123_vm0, %v8979_v63, 0.0 }
0x14d7   :  { %v8967_v28 = vpop.xlane.xlu1 %8966 }
0x14d8   :  { %v8973_v58 = vmul.f32 %v8967_v28, %v11751_v26 }
0x14da   :  { %v11343_v51 = vsub.f32 %v8957_v45, %v8973_v58 }
0x14dc   :  { %v8981_v32 = vmul.f32 %v11343_v51, %v11343_v51 }
0x14de   :  { %v8989_v56 = vsel %vm123_vm0, %v8981_v32, 0.0 }
0x1528   :  { %v8818_v52 = vpop.f32.mrf.mxu1 }
0x1530   :  { %v8773_v53 = vpop.f32.mrf.mxu0  ;;  %v8948_v54 = vpop.f32.mrf.mxu1 }
0x1531   :  { %v8774_v8 = vadd.f32 %v8773_v53, %v8731_v38  ;;  %v8853_v61 = vpop.f32.mrf.mxu2  ;;  %v9146_v38 = vsub.f32 %v104_v0, %v9088_v9  ;;  %v9142_v53 = vsub.f32 %v9140_v11, %v9141_v41 }
0x1532   :  { %v8886_v29 = vpop.f32.mrf.mxu3 }
0x1533   :  { %v8819_v24 = vadd.f32 %v8818_v52, %v8774_v8  ;;  %v102_v52 = vld [vmem:[#allocation8 + $0x68] sm:$0xff]  ;;  %v9147_v18 = vand.u32 4294901760, %v9146_v38  ;;  %v9152_v8 = vsub.f32 %v103_v43, %v9090_v42  ;;  %9197 = vmatpush.msra.mxu0 %v9146_v38  ;;  %v9143_v4 = vand.u32 4294901760, %v9142_v53 }
0x1534   :  { %v9092_v6 = vand.u32 4294901760, %v102_v52 }
0x1535   :  { %v8854_v60 = vadd.f32 %v8853_v61, %v8819_v24  ;;  %v9148_v24 = vsub.f32 %v9146_v38, %v9147_v18  ;;  %9200 = vmatpush.msra.mxu0 %v9152_v8  ;;  %9144 = vmatpush.msra.mxu3 %v9143_v4 }
0x1536   :  { %9244 = vmatpush.msra.mxu1 %v9092_v6  ;;  %9093 = vmatpush.msra.mxu2 %v9092_v6 }
0x1537   :  { %v8887_v22 = vadd.f32 %v8886_v29, %v8854_v60  ;;  %v9149_v34 = vand.u32 4294901760, %v9148_v24 }
0x1538   :  { %v8919_v59 = vpop.f32.mrf.mxu0  ;;  %v8952_v30 = vpop.f32.mrf.mxu1  ;;  %9285 = vmatpush.msrb.mxu2 %v9141_v41 }
0x1539   :  { %v8920_v37 = vadd.f32 %v8919_v59, %v8881_v15  ;;  %v9153_v15 = vand.u32 4294901760, %v9152_v8  ;;  %9150 = vmatpush.msra.mxu3 %v9149_v34 }
0x153a   :  { %9289 = vmatpush.msrb.mxu2 %v9147_v18 }
0x153b   :  { %v8949_v27 = vadd.f32 %v8948_v54, %v8920_v37  ;;  %v9158_v54 = vsub.f32 %v102_v52, %v9092_v6  ;;  %v9154_v60 = vsub.f32 %v9152_v8, %v9153_v15 }
0x153c   :  { %9293 = vmatpush.msrb.mxu2 %v9153_v15 }
0x153d   :  { %v8956_v17 = vadd.f32 %v8949_v27, %v11752_v57  ;;  %v9159_v27 = vand.u32 4294901760, %v9158_v54  ;;  %9203 = vmatpush.msra.mxu0 %v9158_v54  ;;  %v9155_v29 = vand.u32 4294901760, %v9154_v60 }
0x153f   :  { %v8962_v39 = vsel %vm123_vm0, %v8956_v17, 0.0  ;;  %9156 = vmatpush.msra.mxu3 %v9155_v29  ;;  %9297 = vmatpush.msrb.mxu2 %v9159_v27 }
0x1540   :  { %v8923_v2 = vpop.f32.mrf.mxu0  ;;  %8963 = vadd.xlane.f32.xlu0 %v8962_v39 }
0x1541   :  { %v8924_v16 = vadd.f32 %v8923_v2, %v8887_v22  ;;  %v9160_v22 = vsub.f32 %v9158_v54, %v9159_v27 }
0x1543   :  { %v8953_v10 = vadd.f32 %v8952_v30, %v8924_v16  ;;  %v9161_v28 = vand.u32 4294901760, %v9160_v22 }
0x1545   :  { %v8958_v21 = vadd.f32 %v8953_v10, %v11753_v33  ;;  %9162 = vmatpush.msra.mxu3 %v9161_v28 }
0x1547   :  { %v8968_v50 = vsel %vm123_vm0, %v8958_v21, 0.0  ;;  %9328 = vmatpush.msrb.mxu3 %v9086_v55 }
0x1548   :  { %8984 = vadd.xlane.f32.xlu0 %v8983_v36  ;;  %8969 = vadd.xlane.f32.xlu2 %v8968_v50 }
0x1549   :  { %9330 = vmatpush.msrb.mxu3 %v9088_v9 }
0x154b   :  { %9332 = vmatpush.msrb.mxu3 %v9090_v42 }
0x154d   :  { %9334 = vmatpush.msrb.mxu3 %v9092_v6 }
0x1550   :  { %8990 = vadd.xlane.f32.xlu2 %v8989_v56 }
0x1568   :  { %9054 = vrot.lane.b32.xlu2 %v10049_v13, %s10195_s14 }
0x15b3   :  { %v8964_v49 = vpop.xlane.xlu0 %8963 }
0x15b4   :  { %v8972_v5 = vmul.f32 %v8964_v49, %v11751_v26 }
0x15b6   :  { %v11352_v31 = vsub.f32 %v8956_v17, %v8972_v5 }
0x15b8   :  { %v8980_v40 = vmul.f32 %v11352_v31, %v11352_v31 }
0x15ba   :  { %v8986_v46 = vsel %vm123_vm0, %v8980_v40, 0.0 }
0x15bb   :  { %8987 = vadd.xlane.f32.xlu1 %v8986_v46  ;;  %v8970_v7 = vpop.xlane.xlu2 %8969  ;;  %v8985_v3 = vpop.xlane.xlu0 %8984 }
0x15bc   :  { %v8974_v25 = vmul.f32 %v8970_v7, %v11751_v26  ;;  %v8995_v12 = vmul.f32 %v8985_v3, %v11751_v26 }
0x15be   :  { %v11358_v45 = vsub.f32 %v8958_v21, %v8974_v25  ;;  %v11366_v48 = vadd.f32 1e-05, %v8995_v12 }
0x15c0   :  { %v8982_v23 = vmul.f32 %v11358_v45, %v11358_v45  ;;  %10032 = vrsqrt.f32 %v11366_v48  ;;  %vm9009_vm5 = vweird.f32 %v11366_v48 }
0x15c2   :  { %v8992_v44 = vsel %vm123_vm0, %v8982_v23, 0.0 }
0x15c3   :  { %8993 = vadd.xlane.f32.xlu0 %v8992_v44  ;;  %v8991_v1 = vpop.xlane.xlu2 %8990 }
0x15c4   :  { %v8997_v20 = vmul.f32 %v8991_v1, %v11751_v26 }
0x15c6   :  { %v11368_v35 = vadd.f32 1e-05, %v8997_v20  ;;  %v11372_v14 = vpop.eup %10032 }
0x15c7   :  { %v9004_v59 = vmul.f32 %v11372_v14, %v11366_v48  ;;  %vm9010_vm3 = vweird.f32 %v11372_v14 }
0x15c8   :  { %10034 = vrsqrt.f32 %v11368_v35  ;;  %vm9011_vm7 = vmor %vm9009_vm5, %vm9010_vm3  ;;  %vm9029_vm8 = vweird.f32 %v11368_v35 }
0x15c9   :  { %v9005_v39 = vmul.f32 %v11372_v14, %v9004_v59 }
0x15cb   :  { %v9006_v16 = vmul.f32 0.5, %v9005_v39  ;;  %v9055_v48 = vpop.permute.xlu2 %9054 }
0x15cd   :  { %v9007_v21 = vsub.f32 1.5, %v9006_v16 }
0x15ce   :  { %v11374_v19 = vpop.eup %10034 }
0x15cf   :  { %v9024_v57 = vmul.f32 %v11374_v19, %v11368_v35  ;;  %v9008_v56 = vmul.f32 %v11372_v14, %v9007_v21  ;;  %vm9030_vm4 = vweird.f32 %v11374_v19 }
0x15d0   :  { %vm9031_vm9 = vmor %vm9029_vm8, %vm9030_vm4 }
0x15d1   :  { %v9025_v2 = vmul.f32 %v11374_v19, %v9024_v57  ;;  %v9012_v7 = vsel %vm9011_vm7, %v11372_v14, %v9008_v56 }
0x15d2   :  { %v9043_v1 = vmul.f32 %v9012_v7, %v11336_v47 }
0x15d3   :  { %v9026_v10 = vmul.f32 0.5, %v9025_v2  ;;  %v121_v2 = vld [vmem:[#allocation8 + $0x100] sm:$0xff] }
0x15d4   :  { %9047 = vrot.lane.b32.xlu1 %v10049_v13, %s10190_s11  ;;  %v11412_v16 = vand.u32 4294901760, %v121_v2 }
0x15d5   :  { %v9027_v50 = vsub.f32 1.5, %v9026_v10 }
0x15d6   :  { %9467 = vmatpush.msrb.mxu0 %v11412_v16 }
0x162e   :  { %v8988_v37 = vpop.xlane.xlu1 %8987 }
0x162f   :  { %v8996_v61 = vmul.f32 %v8988_v37, %v11751_v26 }
0x1631   :  { %v9000_v17 = vadd.f32 1e-05, %v8996_v61 }
0x1633   :  { %10036 = vrsqrt.f32 %v9000_v17  ;;  %vm9019_vm10 = vweird.f32 %v9000_v17 }
0x1636   :  { %v8994_v30 = vpop.xlane.xlu0 %8993 }
0x1637   :  { %v8998_v58 = vmul.f32 %v8994_v30, %v11751_v26  ;;  %v9028_v26 = vmul.f32 %v11374_v19, %v9027_v50  ;;  %v120_v30 = vld [vmem:[#allocation8 + $0xf8] sm:$0xff]  ;;  %v118_v50 = vld [vmem:[#allocation8 + $0xe8] sm:$0xff] }
0x1638   :  { %v11417_v10 = vand.u32 4294901760, %v120_v30 }
0x1639   :  { %v10037_v63 = vpop.eup %10036  ;;  %v9002_v33 = vadd.f32 1e-05, %v8998_v58  ;;  %v9032_v44 = vsel %vm9031_vm9, %v11374_v19, %v9028_v26  ;;  %v11415_v58 = vsub.f32 %v121_v2, %v11412_v16  ;;  %v11438_v26 = vand.u32 4294901760, %v118_v50 }
0x163a   :  { %v9014_v36 = vmul.f32 %v10037_v63, %v9000_v17  ;;  %vm9020_vm6 = vweird.f32 %v10037_v63  ;;  %v9045_v35 = vmul.f32 %v9032_v44, %v11343_v51  ;;  %v11423_v21 = vsub.f32 %v120_v30, %v11417_v10  ;;  %9469 = vmatpush.msrb.mxu0 %v11417_v10 }
0x163b   :  { %10038 = vrsqrt.f32 %v9002_v33  ;;  %vm9021_vm11 = vmor %vm9019_vm10, %vm9020_vm6  ;;  %vm9039_vm13 = vweird.f32 %v9002_v33  ;;  %v11447_v7 = vsub.f32 %v118_v50, %v11438_v26 }
0x163c   :  { %v9015_v32 = vmul.f32 %v10037_v63, %v9014_v36  ;;  %v9539_v56 = vand.u32 4294901760, %v11423_v21 }
0x163e   :  { %v9016_v13 = vmul.f32 0.5, %v9015_v32 }
0x1640   :  { %v9017_v49 = vsub.f32 1.5, %v9016_v13 }
0x1641   :  { %v10039_v5 = vpop.eup %10038 }
0x1642   :  { %v9018_v40 = vmul.f32 %v10037_v63, %v9017_v49  ;;  %v9034_v46 = vmul.f32 %v10039_v5, %v9002_v33  ;;  %vm9040_vm12 = vweird.f32 %v10039_v5  ;;  %v9533_v33 = vand.u32 4294901760, %v11415_v58  ;;  %v117_v49 = vld [vmem:[#allocation8 + $0xe0] sm:$0xff] }
0x1643   :  { %vm9041_vm14 = vmor %vm9039_vm13, %vm9040_vm12 }
0x1644   :  { %v9035_v25 = vmul.f32 %v10039_v5, %v9034_v46  ;;  %v9022_v23 = vsel %vm9021_vm11, %v10037_v63, %v9018_v40  ;;  %v119_v63 = vld [vmem:[#allocation8 + $0xf0] sm:$0xff]  ;;  %v9534_v32 = vsub.f32 %v11415_v58, %v9533_v33  ;;  %v9540_v40 = vsub.f32 %v11423_v21, %v9539_v56 }
0x1645   :  { %v9044_v3 = vmul.f32 %v9022_v23, %v11352_v31  ;;  %v11426_v36 = vand.u32 4294901760, %v119_v63  ;;  %v116_v23 = vld [vmem:[#allocation8 + $0xd8] sm:$0xff] }
0x1646   :  { %v9036_v12 = vmul.f32 0.5, %v9035_v25  ;;  %v9048_v20 = vpop.permute.xlu1 %9047  ;;  %v11451_v25 = vand.u32 4294901760, %v117_v49  ;;  %v9541_v44 = vand.u32 4294901760, %v9540_v40 }
0x1647   :  { %v9050_v62 = vmul.f32 %v9048_v20, %v9043_v1  ;;  %v9051_v55 = vmul.f32 %v9048_v20, %v9044_v3  ;;  %v9052_v11 = vmul.f32 %v9048_v20, %v9045_v35  ;;  %v11435_v13 = vsub.f32 %v119_v63, %v11426_v36  ;;  %9471 = vmatpush.msrb.mxu0 %v11426_v36 }
0x1648   :  { %v9037_v0 = vsub.f32 1.5, %v9036_v12  ;;  %v9551_v1 = vand.u32 4294901760, %v11447_v7  ;;  %v11459_v12 = vand.u32 4294901760, %v116_v23 }
0x1649   :  { %v11395_v9 = vadd.f32 %v9055_v48, %v9050_v62  ;;  %v11397_v43 = vadd.f32 %v9055_v48, %v9051_v55  ;;  %v11404_v14 = vadd.f32 %v9055_v48, %v9052_v11  ;;  %v9545_v46 = vand.u32 4294901760, %v11435_v13  ;;  %9473 = vmatpush.msrb.mxu0 %v11438_v26 }
0x164a   :  { %v9038_v41 = vmul.f32 %v10039_v5, %v9037_v0  ;;  %v9552_v55 = vsub.f32 %v11447_v7, %v9551_v1  ;;  %v11472_v0 = vsub.f32 %v116_v23, %v11459_v12 }
0x164b   :  { %v9063_v47 = vsel %vm123_vm0, %v11395_v9, 0  ;;  %v9066_v31 = vsel %vm123_vm0, %v11397_v43, 0  ;;  %v9069_v19 = vsel %vm123_vm0, %v11404_v14, 0  ;;  %v9546_v3 = vsub.f32 %v11435_v13, %v9545_v46  ;;  %9475 = vmatpush.msrb.mxu0 %v11451_v25 }
0x164c   :  { %v9042_v38 = vsel %vm9041_vm14, %v10039_v5, %v9038_v41  ;;  %v9094_v51 = vand.u32 4294901760, %v9063_v47  ;;  %v9102_v42 = vand.u32 4294901760, %v9066_v31  ;;  %v9110_v15 = vand.u32 4294901760, %v9069_v19 }
0x164d   :  { %v9046_v52 = vmul.f32 %v9042_v38, %v11358_v45  ;;  %v9535_v5 = vand.u32 4294901760, %v9534_v32  ;;  %v9547_v62 = vand.u32 4294901760, %v9546_v3  ;;  %v9563_v38 = vand.u32 4294901760, %v11472_v0  ;;  %9477 = vmatpush.msrb.mxu0 %v11459_v12 }
0x164e   :  { %v9095_v53 = vsub.f32 %v9063_v47, %v9094_v51  ;;  %9164 = vmatmul.f32.vlgmr.msra.gmra.mxu3 %v9094_v51  ;;  %v9103_v8 = vsub.f32 %v9066_v31, %v9102_v42  ;;  %v9111_v37 = vsub.f32 %v9069_v19, %v9110_v15  ;;  %v114_v47 = vld [vmem:[#allocation8 + $0xc8] sm:$0xff]  ;;  %v9553_v31 = vand.u32 4294901760, %v9552_v55 }
0x164f   :  { %v9053_v6 = vmul.f32 %v9048_v20, %v9046_v52  ;;  %9714 = vmatpush.msra.mxu3 %v11412_v16  ;;  %9536 = vmatpush.msrb.mxu1 %v9535_v5  ;;  %v115_v20 = vld [vmem:[#allocation8 + $0xd0] sm:$0xff]  ;;  %v109_v5 = vld [vmem:[#allocation8 + $0xa0] sm:$0xff] }
0x1650   :  { %v9096_v18 = vand.u32 4294901760, %v9095_v53  ;;  %9206 = vmatmul.f32.vlgmr.msra.gmra.mxu0 %v9095_v53  ;;  %v9104_v54 = vand.u32 4294901760, %v9103_v8  ;;  %v9112_v27 = vand.u32 4294901760, %v9111_v37  ;;  %v11464_v35 = vand.u32 4294901760, %v115_v20 }
0x1651   :  { %v11408_v59 = vadd.f32 %v9055_v48, %v9053_v6  ;;  %9716 = vmatpush.msra.mxu3 %v11417_v10  ;;  %v11462_v48 = vsub.f32 %v117_v49, %v11451_v25  ;;  %9542 = vmatpush.msrb.mxu1 %v9541_v44 }
0x1652   :  { %v9097_v4 = vsub.f32 %v9095_v53, %v9096_v18  ;;  %9248 = vmatmul.f32.vlgmr.msra.gmra.mxu1 %v9096_v18  ;;  %v9105_v45 = vsub.f32 %v9103_v8, %v9104_v54  ;;  %v9113_v57 = vsub.f32 %v9111_v37, %v9112_v27  ;;  %v11477_v41 = vsub.f32 %v115_v20, %v11464_v35  ;;  %v113_v18 = vld [vmem:[#allocation8 + $0xc0] sm:$0xff] }
0x1653   :  { %v9072_v61 = vsel %vm123_vm0, %v11408_v59, 0  ;;  %9718 = vmatpush.msra.mxu3 %v11426_v36  ;;  %v9557_v11 = vand.u32 4294901760, %v11462_v48  ;;  %9548 = vmatpush.msrb.mxu1 %v9547_v62  ;;  %v11498_v19 = vand.u32 4294901760, %v113_v18  ;;  %v11555_v20 = vand.u32 4294901760, %v109_v5  ;;  %v108_v62 = vld [vmem:[#allocation8 + $0x98] sm:$0xff] }
0x1654   :  { %v9098_v24 = vand.u32 4294901760, %v9097_v4  ;;  %v9118_v34 = vand.u32 4294901760, %v9072_v61  ;;  %v9106_v60 = vand.u32 4294901760, %v9105_v45  ;;  %v9114_v29 = vand.u32 4294901760, %v9113_v57  ;;  %9479 = vmatpush.msrb.mxu0 %v11464_v35 }
0x1655   :  { %9720 = vmatpush.msra.mxu3 %v11438_v26  ;;  %v9558_v52 = vsub.f32 %v11462_v48, %v9557_v11  ;;  %v9569_v53 = vand.u32 4294901760, %v11477_v41  ;;  %9554 = vmatpush.msrb.mxu1 %v9553_v31  ;;  %v11558_v31 = vand.u32 4294901760, %v108_v62 }
0x1656   :  { %9099 = vmatmul.f32.vlgmr.msra.gmra.mxu2 %v9098_v24  ;;  %9168 = vmatmul.f32.gmra.mxu3 %v9102_v42  ;;  %v9119_v17 = vsub.f32 %v9072_v61, %v9118_v34 }
0x1657   :  { %9646 = vmatpush.msra.mxu2 %v11415_v58  ;;  %9722 = vmatpush.msra.mxu3 %v11451_v25  ;;  %v9559_v4 = vand.u32 4294901760, %v9558_v52  ;;  %v9570_v24 = vsub.f32 %v11477_v41, %v9569_v53 }
0x1658   :  { %9211 = vmatmul.f32.gmra.mxu0 %v9103_v8  ;;  %v9120_v22 = vand.u32 4294901760, %v9119_v17  ;;  %v9564_v8 = vsub.f32 %v11472_v0, %v9563_v38 }
0x1659   :  { %9649 = vmatpush.msra.mxu2 %v11423_v21  ;;  %9724 = vmatpush.msra.mxu3 %v11459_v12 }
0x165a   :  { %9254 = vmatmul.f32.gmra.mxu1 %v9104_v54  ;;  %v9121_v39 = vsub.f32 %v9119_v17, %v9120_v22  ;;  %v9565_v54 = vand.u32 4294901760, %v9564_v8  ;;  %v107_v8 = vld [vmem:[#allocation8 + $0x90] sm:$0xff] }
0x165b   :  { %9652 = vmatpush.msra.mxu2 %v11435_v13  ;;  %9726 = vmatpush.msra.mxu3 %v11464_v35 }
0x165c   :  { %v9122_v28 = vand.u32 4294901760, %v9121_v39  ;;  %9560 = vmatpush.msrb.mxu1 %v9559_v4  ;;  %v110_v39 = vld [vmem:[#allocation8 + $0xa8] sm:$0xff] }
0x165d   :  { %9655 = vmatpush.msra.mxu2 %v11447_v7  ;;  %v11533_v63 = vand.u32 4294901760, %v110_v39 }
0x165e   :  { %9107 = vmatmul.f32.gmra.mxu2 %v9106_v60  ;;  %9172 = vmatmul.f32.gmra.mxu3 %v9110_v15  ;;  %v9571_v60 = vand.u32 4294901760, %v9570_v24  ;;  %v11570_v24 = vsub.f32 %v108_v62, %v11558_v31 }
0x165f   :  { %9658 = vmatpush.msra.mxu2 %v11462_v48  ;;  %9566 = vmatpush.msrb.mxu1 %v9565_v54  ;;  %v11547_v44 = vsub.f32 %v110_v39, %v11533_v63  ;;  %v11576_v54 = vand.u32 4294901760, %v107_v8 }
0x1660   :  { %9216 = vmatmul.f32.gmra.mxu0 %v9111_v37  ;;  %v11508_v37 = vsub.f32 %v113_v18, %v11498_v19  ;;  %v11563_v18 = vsub.f32 %v109_v5, %v11555_v20 }
0x1661   :  { %9661 = vmatpush.msra.mxu2 %v11472_v0  ;;  %9572 = vmatpush.msrb.mxu1 %v9571_v60  ;;  %v11587_v5 = vsub.f32 %v107_v8, %v11576_v54 }
0x1662   :  { %9260 = vmatmul.f32.gmra.mxu1 %v9112_v27 }
0x1663   :  { %9664 = vmatpush.msra.mxu2 %v11477_v41  ;;  %v11727_v62 = vand.u32 4294901760, %v11587_v5 }
0x1665   :  { %v9618_v8 = vsub.f32 %v11587_v5, %v11727_v62 }
0x1666   :  { %9115 = vmatmul.f32.gmra.mxu2 %v9114_v29  ;;  %9176 = vmatmul.f32.gmra.mxu3 %v9118_v34 }
0x1668   :  { %9221 = vmatmul.f32.gmra.mxu0 %v9119_v17  ;;  %v9581_v17 = vand.u32 4294901760, %v11508_v37 }
0x166a   :  { %9266 = vmatmul.f32.gmra.mxu1 %v9120_v22  ;;  %v9582_v2 = vsub.f32 %v11508_v37, %v9581_v17 }
0x166c   :  { %v9583_v40 = vand.u32 4294901760, %v9582_v2 }
0x166e   :  { %9123 = vmatmul.f32.gmra.mxu2 %v9122_v28  ;;  %9336 = vmatmul.f32.vlgmr.msrb.gmra.mxu3 %v9094_v51 }
0x1676   :  { %9299 = vmatmul.f32.vlgmr.msrb.gmra.mxu2 %v9094_v51  ;;  %9340 = vmatmul.f32.gmra.mxu3 %v9102_v42  ;;  %v11481_v51 = vand.u32 4294901760, %v114_v47 }
0x1678   :  { %v11496_v6 = vsub.f32 %v114_v47, %v11481_v51  ;;  %9728 = vmatpush.msra.mxu3 %v11481_v51  ;;  %9481 = vmatpush.msrb.mxu0 %v11481_v51  ;;  %v9599_v47 = vand.u32 4294901760, %v11547_v44 }
0x167a   :  { %v9575_v45 = vand.u32 4294901760, %v11496_v6  ;;  %9667 = vmatpush.msra.mxu2 %v11496_v6  ;;  %9730 = vmatpush.msra.mxu3 %v11498_v19  ;;  %v9600_v4 = vsub.f32 %v11547_v44, %v9599_v47 }
0x167b   :  { %9483 = vmatpush.msrb.mxu0 %v11498_v19 }
0x167c   :  { %v9576_v57 = vsub.f32 %v11496_v6, %v9575_v45  ;;  %9670 = vmatpush.msra.mxu2 %v11508_v37  ;;  %v9601_v60 = vand.u32 4294901760, %v9600_v4 }
0x167e   :  { %9303 = vmatmul.f32.gmra.mxu2 %v9102_v42  ;;  %9344 = vmatmul.f32.gmra.mxu3 %v9110_v15  ;;  %v9577_v28 = vand.u32 4294901760, %v9576_v57  ;;  %v9611_v57 = vand.u32 4294901760, %v11570_v24 }
0x1680   :  { %9578 = vmatpush.msrb.mxu1 %v9577_v28 }
0x1682   :  { %9584 = vmatpush.msrb.mxu1 %v9583_v40 }
0x1686   :  { %9307 = vmatmul.f32.gmra.mxu2 %v9110_v15  ;;  %9348 = vmatmul.f32.gmra.mxu3 %v9118_v34  ;;  %v112_v15 = vld [vmem:[#allocation8 + $0xb8] sm:$0xff] }
0x1687   :  { %v11510_v61 = vand.u32 4294901760, %v112_v15 }
0x1689   :  { %v11521_v29 = vsub.f32 %v112_v15, %v11510_v61  ;;  %9732 = vmatpush.msra.mxu3 %v11510_v61  ;;  %9485 = vmatpush.msrb.mxu0 %v11510_v61  ;;  %v9605_v15 = vand.u32 4294901760, %v11563_v18 }
0x168b   :  { %v9587_v30 = vand.u32 4294901760, %v11521_v29  ;;  %9673 = vmatpush.msra.mxu2 %v11521_v29  ;;  %v9606_v2 = vsub.f32 %v11563_v18, %v9605_v15 }
0x168d   :  { %v9588_v23 = vsub.f32 %v11521_v29, %v9587_v30  ;;  %v11754_v29 = vand.u32 4294901760, %v11587_v5 }
0x168e   :  { %9311 = vmatmul.f32.gmra.mxu2 %v9118_v34  ;;  %v111_v34 = vld [vmem:[#allocation8 + $0xb0] sm:$0xff] }
0x168f   :  { %v11514_v27 = vand.u32 4294901760, %v111_v34  ;;  %v9589_v55 = vand.u32 4294901760, %v9588_v23  ;;  %v9612_v23 = vsub.f32 %v11570_v24, %v9611_v57 }
0x1691   :  { %v11527_v22 = vsub.f32 %v111_v34, %v11514_v27  ;;  %9734 = vmatpush.msra.mxu3 %v11514_v27  ;;  %9487 = vmatpush.msrb.mxu0 %v11514_v27  ;;  %v106_v34 = vld [vmem:[#allocation8 + $0x88] sm:$0xff] }
0x1692   :  { %9590 = vmatpush.msrb.mxu1 %v9589_v55  ;;  %v11590_v40 = vand.u32 4294901760, %v106_v34 }
0x1693   :  { %v9593_v49 = vand.u32 4294901760, %v11527_v22  ;;  %9676 = vmatpush.msra.mxu2 %v11527_v22  ;;  %9736 = vmatpush.msra.mxu3 %v11533_v63 }
0x1694   :  { %9489 = vmatpush.msrb.mxu0 %v11533_v63  ;;  %v11599_v55 = vsub.f32 %v106_v34, %v11590_v40  ;;  %v9619_v34 = vand.u32 4294901760, %v9618_v8 }
0x1695   :  { %v9594_v3 = vsub.f32 %v11527_v22, %v9593_v49  ;;  %9679 = vmatpush.msra.mxu2 %v11547_v44  ;;  %9738 = vmatpush.msra.mxu3 %v11555_v20 }
0x1696   :  { %9491 = vmatpush.msrb.mxu0 %v11555_v20  ;;  %v9623_v4 = vand.u32 4294901760, %v11599_v55 }
0x1697   :  { %v9595_v52 = vand.u32 4294901760, %v9594_v3  ;;  %9682 = vmatpush.msra.mxu2 %v11563_v18  ;;  %9740 = vmatpush.msra.mxu3 %v11558_v31  ;;  %v9607_v3 = vand.u32 4294901760, %v9606_v2  ;;  %v10050_v2 = vld [vmem:[#allocation8 + $0x108] sm:$0xff] }
0x1698   :  { %9493 = vmatpush.msrb.mxu0 %v11558_v31 }
0x1699   :  { %9596 = vmatpush.msrb.mxu1 %v9595_v52  ;;  %9685 = vmatpush.msra.mxu2 %v11570_v24  ;;  %v9613_v52 = vand.u32 4294901760, %v9612_v23  ;;  %v11614_v23 = vperm.slane %v10050_v2, 3 }
0x169a   :  { %9742 = vmatpush.msra.mxu3 %v11576_v54  ;;  %9495 = vmatpush.msrb.mxu0 %v11576_v54 }
0x169b   :  { %9602 = vmatpush.msrb.mxu1 %v9601_v60  ;;  %9688 = vmatpush.msra.mxu2 %v11587_v5  ;;  %v9624_v60 = vsub.f32 %v11599_v55, %v9623_v4 }
0x169c   :  { %9744 = vmatpush.msra.mxu3 %v11590_v40  ;;  %9497 = vmatpush.msrb.mxu0 %v11590_v40 }
0x169d   :  { %9608 = vmatpush.msrb.mxu1 %v9607_v3  ;;  %9691 = vmatpush.msra.mxu2 %v11599_v55  ;;  %v9625_v62 = vand.u32 4294901760, %v9624_v60 }
0x169e   :  { %9773 = vmatpush.msra.mxu0 %v9533_v33 }
0x169f   :  { %9614 = vmatpush.msrb.mxu1 %v9613_v52 }
0x16a0   :  { %9777 = vmatpush.msra.mxu0 %v9539_v56 }
0x16a1   :  { %9620 = vmatpush.msrb.mxu1 %v9619_v34 }
0x16a2   :  { %9781 = vmatpush.msra.mxu0 %v9545_v46 }
0x16a3   :  { %9626 = vmatpush.msrb.mxu1 %v9625_v62 }
0x16a4   :  { %9785 = vmatpush.msra.mxu0 %v9551_v1 }
0x16a5   :  { %9852 = vmatpush.msra.mxu1 %v11412_v16 }
0x16a6   :  { %9789 = vmatpush.msra.mxu0 %v9557_v11 }
0x16a7   :  { %9854 = vmatpush.msra.mxu1 %v11417_v10 }
0x16a8   :  { %9793 = vmatpush.msra.mxu0 %v9563_v38 }
0x16a9   :  { %9856 = vmatpush.msra.mxu1 %v11426_v36  ;;  %v9413_v36 = vlaneseq }
0x16aa   :  { %9797 = vmatpush.msra.mxu0 %v9569_v53 }
0x16ab   :  { %9858 = vmatpush.msra.mxu1 %v11438_v26  ;;  %v11648_v48 = vand.u32 127, %v9413_v36 }
0x16ac   :  { %9801 = vmatpush.msra.mxu0 %v9575_v45 }
0x16ad   :  { %9860 = vmatpush.msra.mxu1 %v11451_v25  ;;  %vm9415_vm15 = vcmp.lt.s32.totalorder %v11648_v48, 64 }
0x16ae   :  { %9805 = vmatpush.msra.mxu0 %v9581_v17  ;;  %vm11684_vm2 = vmxor %vm9415_vm15, %vm10196_vm1 }
0x16af   :  { %9862 = vmatpush.msra.mxu1 %v11459_v12 }
0x16b0   :  { %9809 = vmatpush.msra.mxu0 %v9587_v30 }
0x16b1   :  { %9864 = vmatpush.msra.mxu1 %v11464_v35  ;;  %v11658_v35 = vperm.slane %v10050_v2, 4 }
0x16b2   :  { %9813 = vmatpush.msra.mxu0 %v9593_v49 }
0x16b3   :  { %9866 = vmatpush.msra.mxu1 %v11481_v51  ;;  %9459 = vrot.lane.b32.xlu0 %v11658_v35, %s10186_s3 }
0x16b4   :  { %9817 = vmatpush.msra.mxu0 %v9599_v47 }
0x16b5   :  { %9868 = vmatpush.msra.mxu1 %v11498_v19 }
0x16b6   :  { %9821 = vmatpush.msra.mxu0 %v9605_v15 }
0x16b7   :  { %9870 = vmatpush.msra.mxu1 %v11510_v61 }
0x16b8   :  { %9825 = vmatpush.msra.mxu0 %v9611_v57 }
0x16b9   :  { %9872 = vmatpush.msra.mxu1 %v11514_v27 }
0x16ba   :  { %9829 = vmatpush.msra.mxu0 %v11754_v29 }
0x16bb   :  { %9874 = vmatpush.msra.mxu1 %v11533_v63 }
0x16bc   :  { %9833 = vmatpush.msra.mxu0 %v9623_v4 }
0x16bd   :  { %9876 = vmatpush.msra.mxu1 %v11555_v20 }
0x16bf   :  { %9878 = vmatpush.msra.mxu1 %v11558_v31 }
0x16c1   :  { %9880 = vmatpush.msra.mxu1 %v11576_v54 }
0x16c3   :  { %9882 = vmatpush.msra.mxu1 %v11590_v40 }
0x16cd   :  { %v9207_v52 = vpop.f32.mrf.mxu0 }
0x16cf   :  { %v9249_v56 = vpop.f32.mrf.mxu1 }
0x16d1   :  { %v11484_v42 = vpop.f32.mrf.mxu3 }
0x16d5   :  { %v9212_v7 = vpop.f32.mrf.mxu0 }
0x16d7   :  { %v9255_v12 = vpop.f32.mrf.mxu1 }
0x16d9   :  { %v11537_v50 = vpop.f32.mrf.mxu2  ;;  %v11539_v32 = vpop.f32.mrf.mxu3 }
0x16da   :  { %v9101_v33 = vadd.f32 %v11537_v50, %v11614_v23 }
0x16dc   :  { %v9166_v21 = vadd.f32 %v11484_v42, %v9101_v33 }
0x16dd   :  { %v9217_v45 = vpop.f32.mrf.mxu0 }
0x16de   :  { %v9208_v10 = vadd.f32 %v9207_v52, %v9166_v21 }
0x16e0   :  { %v9250_v1 = vadd.f32 %v9249_v56, %v9208_v10 }
0x16e1   :  { %v9108_v39 = vpop.f32.mrf.mxu2  ;;  %v11581_v28 = vpop.f32.mrf.mxu3 }
0x16e2   :  { %v9109_v16 = vadd.f32 %v9108_v39, %v11614_v23 }
0x16e4   :  { %v9170_v26 = vadd.f32 %v11539_v32, %v9109_v16  ;;  %v9261_v32 = vpop.f32.mrf.mxu1 }
0x16e5   :  { %v9222_v62 = vpop.f32.mrf.mxu0 }
0x16e6   :  { %v9213_v38 = vadd.f32 %v9212_v7, %v9170_v26 }
0x16e8   :  { %v9256_v19 = vadd.f32 %v9255_v12, %v9213_v38 }
0x16e9   :  { %v9116_v3 = vpop.f32.mrf.mxu2  ;;  %v11620_v58 = vpop.f32.mrf.mxu3 }
0x16ea   :  { %v9117_v11 = vadd.f32 %v9116_v3, %v11614_v23 }
0x16ec   :  { %v9174_v53 = vadd.f32 %v11581_v28, %v9117_v11  ;;  %v9267_v60 = vpop.f32.mrf.mxu1 }
0x16ee   :  { %v9218_v50 = vadd.f32 %v9217_v45, %v9174_v53 }
0x16f0   :  { %v9262_v24 = vadd.f32 %v9261_v32, %v9218_v50 }
0x16f1   :  { %v9124_v13 = vpop.f32.mrf.mxu2  ;;  %v9337_v46 = vpop.f32.mrf.mxu3 }
0x16f2   :  { %v9125_v30 = vadd.f32 %v9124_v13, %v11614_v23 }
0x16f4   :  { %v9178_v20 = vadd.f32 %v11620_v58, %v9125_v30 }
0x16f6   :  { %v9223_v8 = vadd.f32 %v9222_v62, %v9178_v20 }
0x16f8   :  { %v9268_v23 = vadd.f32 %v9267_v60, %v9223_v8 }
0x16f9   :  { %v9300_v25 = vpop.f32.mrf.mxu2  ;;  %v9341_v51 = vpop.f32.mrf.mxu3 }
0x16fa   :  { %v9301_v0 = vadd.f32 %v9300_v25, %v9250_v1 }
0x16fc   :  { %v9338_v41 = vadd.f32 %v9337_v46, %v9301_v0 }
0x16fe   :  { %v9352_v42 = vmax.f32 %v9338_v41, 0.0 }
0x1700   :  { %v9453_v6 = vsel %vm9415_vm15, %v9352_v42, 0.0 }
0x1701   :  { %v11671_v37 = vand.u32 4294901760, %v9453_v6  ;;  %v9304_v61 = vpop.f32.mrf.mxu2  ;;  %v9345_v39 = vpop.f32.mrf.mxu3 }
0x1702   :  { %v9305_v17 = vadd.f32 %v9304_v61, %v9256_v19 }
0x1703   :  { %v9499_v22 = vsub.f32 %v9453_v6, %v11671_v37  ;;  %9628 = vmatmul.f32.vlgmr.msrb.gmra.mxu1 %v11671_v37 }
0x1704   :  { %v9342_v27 = vadd.f32 %v9341_v51, %v9305_v17 }
0x1705   :  { %v9500_v49 = vand.u32 4294901760, %v9499_v22  ;;  %9694 = vmatmul.f32.vlgmr.msra.gmra.mxu2 %v9499_v22 }
0x1706   :  { %v9353_v44 = vmax.f32 %v9342_v27, 0.0 }
0x1707   :  { %v9501_v47 = vsub.f32 %v9499_v22, %v9500_v49  ;;  %9748 = vmatmul.f32.vlgmr.msra.gmra.mxu3 %v9500_v49 }
0x1708   :  { %v9454_v18 = vsel %vm11684_vm2, %v9353_v44, 0.0 }
0x1709   :  { %v9502_v15 = vand.u32 4294901760, %v9501_v47  ;;  %v9506_v57 = vand.u32 4294901760, %v9454_v18  ;;  %v9308_v28 = vpop.f32.mrf.mxu2  ;;  %v9349_v52 = vpop.f32.mrf.mxu3 }
0x170a   :  { %v9309_v5 = vadd.f32 %v9308_v28, %v9262_v24 }
0x170b   :  { %9503 = vmatmul.f32.vlgmr.msrb.gmra.mxu0 %v9502_v15  ;;  %9632 = vmatmul.f32.gmra.mxu1 %v9506_v57  ;;  %v9507_v31 = vsub.f32 %v9454_v18, %v9506_v57 }
0x170c   :  { %v9346_v55 = vadd.f32 %v9345_v39, %v9309_v5 }
0x170d   :  { %9699 = vmatmul.f32.gmra.mxu2 %v9507_v31  ;;  %v9508_v4 = vand.u32 4294901760, %v9507_v31 }
0x170e   :  { %v9354_v34 = vmax.f32 %v9346_v55, 0.0 }
0x170f   :  { %9754 = vmatmul.f32.gmra.mxu3 %v9508_v4  ;;  %v9509_v2 = vsub.f32 %v9507_v31, %v9508_v4 }
0x1710   :  { %v9455_v54 = vsel %vm9415_vm15, %v9354_v34, 0.0 }
0x1711   :  { %v9514_v3 = vand.u32 4294901760, %v9455_v54  ;;  %v9312_v58 = vpop.f32.mrf.mxu2  ;;  %v9510_v33 = vand.u32 4294901760, %v9509_v2 }
0x1712   :  { %v9313_v40 = vadd.f32 %v9312_v58, %v9268_v23 }
0x1713   :  { %9511 = vmatmul.f32.gmra.mxu0 %v9510_v33  ;;  %9636 = vmatmul.f32.gmra.mxu1 %v9514_v3  ;;  %v9515_v21 = vsub.f32 %v9455_v54, %v9514_v3 }
0x1714   :  { %v9350_v56 = vadd.f32 %v9349_v52, %v9313_v40 }
0x1715   :  { %9704 = vmatmul.f32.gmra.mxu2 %v9515_v21  ;;  %v9516_v13 = vand.u32 4294901760, %v9515_v21 }
0x1716   :  { %v9355_v16 = vmax.f32 %v9350_v56, 0.0 }
0x1717   :  { %9760 = vmatmul.f32.gmra.mxu3 %v9516_v13  ;;  %v9517_v10 = vsub.f32 %v9515_v21, %v9516_v13 }
0x1718   :  { %v9456_v46 = vsel %vm11684_vm2, %v9355_v16, 0.0 }
0x1719   :  { %v9522_v36 = vand.u32 4294901760, %v9456_v46  ;;  %v9518_v7 = vand.u32 4294901760, %v9517_v10 }
0x171b   :  { %9519 = vmatmul.f32.gmra.mxu0 %v9518_v7  ;;  %9640 = vmatmul.f32.gmra.mxu1 %v9522_v36  ;;  %v9523_v26 = vsub.f32 %v9456_v46, %v9522_v36 }
0x171d   :  { %9709 = vmatmul.f32.gmra.mxu2 %v9523_v26  ;;  %v9524_v1 = vand.u32 4294901760, %v9523_v26 }
0x171f   :  { %9766 = vmatmul.f32.gmra.mxu3 %v9524_v1  ;;  %v9525_v25 = vsub.f32 %v9523_v26, %v9524_v1 }
0x1721   :  { %v9526_v48 = vand.u32 4294901760, %v9525_v25 }
0x1723   :  { %9527 = vmatmul.f32.gmra.mxu0 %v9526_v48  ;;  %9884 = vmatmul.f32.vlgmr.msra.gmra.mxu1 %v11671_v37 }
0x1725   :  { %v9460_v45 = vpop.permute.xlu0 %9459 }
0x172b   :  { %9835 = vmatmul.f32.vlgmr.msra.gmra.mxu0 %v11671_v37  ;;  %9888 = vmatmul.f32.gmra.mxu1 %v9506_v57 }
0x1733   :  { %9839 = vmatmul.f32.gmra.mxu0 %v9506_v57  ;;  %9892 = vmatmul.f32.gmra.mxu1 %v9514_v3 }
0x173b   :  { %9843 = vmatmul.f32.gmra.mxu0 %v9514_v3  ;;  %9896 = vmatmul.f32.gmra.mxu1 %v9522_v36 }
0x1743   :  { %9847 = vmatmul.f32.gmra.mxu0 %v9522_v36 }
0x1780   :  { %v9629_v0 = vpop.f32.mrf.mxu1 }
0x1788   :  { %v9504_v12 = vpop.f32.mrf.mxu0  ;;  %v9633_v11 = vpop.f32.mrf.mxu1 }
0x1789   :  { %v9505_v53 = vadd.f32 %v9504_v12, %v11658_v35  ;;  %v9695_v6 = vpop.f32.mrf.mxu2 }
0x178a   :  { %v9749_v61 = vpop.f32.mrf.mxu3 }
0x178b   :  { %v9630_v19 = vadd.f32 %v9629_v0, %v9505_v53 }
0x178d   :  { %v9696_v17 = vadd.f32 %v9695_v6, %v9630_v19 }
0x178f   :  { %v9750_v27 = vadd.f32 %v9749_v61, %v9696_v17 }
0x1790   :  { %v9512_v41 = vpop.f32.mrf.mxu0  ;;  %v9637_v38 = vpop.f32.mrf.mxu1 }
0x1791   :  { %v9513_v29 = vadd.f32 %v9512_v41, %v9460_v45  ;;  %v9700_v30 = vpop.f32.mrf.mxu2 }
0x1792   :  { %v9755_v63 = vpop.f32.mrf.mxu3 }
0x1793   :  { %v9634_v50 = vadd.f32 %v9633_v11, %v9513_v29 }
0x1795   :  { %v9701_v44 = vadd.f32 %v9700_v30, %v9634_v50 }
0x1797   :  { %v9756_v15 = vadd.f32 %v9755_v63, %v9701_v44 }
0x1798   :  { %v9520_v42 = vpop.f32.mrf.mxu0  ;;  %v9641_v51 = vpop.f32.mrf.mxu1 }
0x1799   :  { %v9521_v47 = vadd.f32 %v9520_v42, %v11658_v35  ;;  %v9705_v39 = vpop.f32.mrf.mxu2 }
0x179a   :  { %v9761_v8 = vpop.f32.mrf.mxu3 }
0x179b   :  { %v9638_v57 = vadd.f32 %v9637_v38, %v9521_v47 }
0x179d   :  { %v9706_v62 = vadd.f32 %v9705_v39, %v9638_v57 }
0x179f   :  { %v9762_v34 = vadd.f32 %v9761_v8, %v9706_v62 }
0x17a0   :  { %v9528_v37 = vpop.f32.mrf.mxu0  ;;  %v9885_v22 = vpop.f32.mrf.mxu1 }
0x17a1   :  { %v9529_v31 = vadd.f32 %v9528_v37, %v9460_v45  ;;  %v9710_v54 = vpop.f32.mrf.mxu2 }
0x17a2   :  { %v9767_v33 = vpop.f32.mrf.mxu3 }
0x17a3   :  { %v9642_v60 = vadd.f32 %v9641_v51, %v9529_v31 }
0x17a5   :  { %v9711_v23 = vadd.f32 %v9710_v54, %v9642_v60 }
0x17a7   :  { %v9768_v40 = vadd.f32 %v9767_v33, %v9711_v23 }
0x17a8   :  { %v9836_v32 = vpop.f32.mrf.mxu0  ;;  %v9889_v24 = vpop.f32.mrf.mxu1 }
0x17a9   :  { %v9837_v49 = vadd.f32 %v9836_v32, %v9750_v27 }
0x17ab   :  { %v9886_v20 = vadd.f32 %v9885_v22, %v9837_v49 }
0x17ad   :  { %v9900_v18 = vadd.f32 %v9886_v20, %v11395_v9 }
0x17af   :  { %9904 = vst.msk [vmem:[#allocation10] sm:$0xff] %vm123_vm0, %v9900_v18 }
0x17b0   :  { %v9840_v28 = vpop.f32.mrf.mxu0  ;;  %v9893_v35 = vpop.f32.mrf.mxu1 }
0x17b1   :  { %v9841_v5 = vadd.f32 %v9840_v28, %v9756_v15 }
0x17b3   :  { %v9890_v55 = vadd.f32 %v9889_v24, %v9841_v5 }
0x17b5   :  { %v9901_v4 = vadd.f32 %v9890_v55, %v11397_v43 }
0x17b7   :  { %9905 = vst.msk [vmem:[#allocation10 + $0x8] sm:$0xff] %vm123_vm0, %v9901_v4 }
0x17b8   :  { %v9844_v9 = vpop.f32.mrf.mxu0  ;;  %v9897_v56 = vpop.f32.mrf.mxu1 }
0x17b9   :  { %v9845_v2 = vadd.f32 %v9844_v9, %v9762_v34 }
0x17bb   :  { %v9894_v3 = vadd.f32 %v9893_v35, %v9845_v2 }
0x17bd   :  { %v9902_v58 = vadd.f32 %v9894_v3, %v11404_v14 }
0x17bf   :  { %9906 = vst.msk [vmem:[#allocation10 + $0x10] sm:$0xff] %vm123_vm0, %v9902_v58 }
0x17c0   :  { %v9848_v52 = vpop.f32.mrf.mxu0 }
0x17c1   :  { %v9849_v21 = vadd.f32 %v9848_v52, %v9768_v40 }
0x17c3   :  { %v9898_v43 = vadd.f32 %v9897_v56, %v9849_v21 }
0x17c5   :  { %v9903_v13 = vadd.f32 %v9898_v43, %v11408_v59 }
0x17c7   :  { %9907 = vst.msk [vmem:[#allocation10 + $0x18] sm:$0xff] %vm123_vm0, %v9903_v13 }
0x17c8   :  { %9920 = dma.vmem_to_hbm [thread:$0]  %s9913_s16, 512, %s9915_s19, [#allocation4], %s10180_s23, %s10180_s23, %s10181_s24  }
0x17c9   :  { %10177 = dma.done.wait [#allocation4], 512  }
0x17ca   :  { %10178 = vsyncadd [#allocation4], 4294966784 }
0x17cb   :  { %9925 = vsyncpa [#allocation3], 1 }
0x17cc   :  { %9926 = vsyncpa [#allocation6], 1 }
0x17cd   :  { %9927 = vsyncpa [#allocation9], 1 }
0x17ce   :  { %9928 = vsyncpa [#allocation4], 1 }

</bundles_post_ra>
